<compile_context>
chip_gen: v7x
topology: tpu7x:2x2x1
jax: 0.10.0
libtpu: 0.0.40
codegen_flags: <defaults>
</compile_context>

<pallas_src>
import jax
import jax.numpy as jnp
from jax import lax
from jax.experimental import pallas as pl
from jax.experimental.pallas import tpu as pltpu


def rnn_recurrence_kernel(ids_ref, h0_ref, wih_t_ref, whh_t_ref, bias_ref,
                          hiddens_ref, x_buf):
    """Whole time recurrence in a single kernel invocation.

    ids_ref    : SMEM (T, B) int32 token ids (scalar-prefetched)
    h0_ref     : (B, H)  initial hidden state
    wih_t_ref  : (V, H)  W_ih^T, resident in VMEM; rows gathered by token id
    whh_t_ref  : (H, H)  W_hh^T
    bias_ref   : (1, H)  b_ih + b_hh (pre-summed)
    hiddens_ref: (T, B, H) all hidden states (output, lane-dense H)
    x_buf      : VMEM (B, H) scratch holding gathered embedding rows
    """
    T, B, H = hiddens_ref.shape

    whh_t = whh_t_ref[...]     # hoisted: loaded once, reused every step
    bias = bias_ref[...]

    def step(t, h_prev):
        # x_t @ W_ih^T == gather of B rows of W_ih^T selected by token id.
        for b in range(B):
            tok = ids_ref[t, b]
            x_buf[pl.ds(b, 1), :] = wih_t_ref[pl.ds(tok, 1), :]
        pre = (x_buf[...]
               + jnp.dot(h_prev, whh_t, preferred_element_type=jnp.float32)
               + bias)
        h = jnp.tanh(pre)
        hiddens_ref[t] = h
        return h

    lax.fori_loop(0, T, step, h0_ref[...], unroll=True)


def projection_kernel(h_ref, wlin_t_ref, blin_ref, out_ref):
    """Hoisted output projection: (tm, H) @ (H, V) + b, lane-dense output."""
    out_ref[...] = (jnp.dot(h_ref[...], wlin_t_ref[...],
                            preferred_element_type=jnp.float32)
                    + blin_ref[...])


def rnn_model_forward(inputs, state, params):
    """Equivalent of RNNModel.forward.

    inputs : (B, T) integer token ids
    state  : (1, B, H) float32
    returns (output, state) with output shape (T*B, V), state shape (1, B, H).
    """
    B, T = inputs.shape
    H = params["w_hh"].shape[0]
    V = params["w_lin"].shape[0]

    ids = inputs.T.astype(jnp.int32)                     # (T, B), sequence-major
    wih_t = params["w_ih"].T                             # (V, H)
    whh_t = params["w_hh"].T                             # (H, H)
    bias = (params["b_ih"] + params["b_hh"]).reshape(1, H)
    wlin_t = params["w_lin"].T                           # (H, V)
    blin = params["b_lin"].reshape(1, V)
    h0 = state[0]                                        # (B, H)

    # ---- recurrent kernel: one invocation, ids in SMEM, hiddens out ----
    hiddens = pl.pallas_call(
        rnn_recurrence_kernel,
        out_shape=jax.ShapeDtypeStruct((T, B, H), jnp.float32),
        grid_spec=pltpu.PrefetchScalarGridSpec(
            num_scalar_prefetch=1,
            grid=(1,),
            in_specs=[
                pl.BlockSpec((B, H), lambda i, ids_ref: (0, 0)),   # h0
                pl.BlockSpec((V, H), lambda i, ids_ref: (0, 0)),   # W_ih^T
                pl.BlockSpec((H, H), lambda i, ids_ref: (0, 0)),   # W_hh^T
                pl.BlockSpec((1, H), lambda i, ids_ref: (0, 0)),   # bias
            ],
            out_specs=pl.BlockSpec((T, B, H), lambda i, ids_ref: (0, 0, 0)),
            scratch_shapes=[pltpu.VMEM((B, H), jnp.float32)],
        ),
        compiler_params=pltpu.CompilerParams(
            dimension_semantics=("arbitrary",)),     # time recurrence: sequential
    )(ids, h0, wih_t, whh_t, bias)

    # ---- hoisted projection: one big batched matmul over all hiddens ----
    M = T * B
    tm = min(128, M)
    h_flat = hiddens.reshape(M, H)                       # == Y.reshape(-1, H)
    logits = pl.pallas_call(
        projection_kernel,
        out_shape=jax.ShapeDtypeStruct((M, V), jnp.float32),
        grid_spec=pltpu.PrefetchScalarGridSpec(
            num_scalar_prefetch=0,
            grid=(pl.cdiv(M, tm),),
            in_specs=[
                pl.BlockSpec((tm, H), lambda i: (i, 0)),
                pl.BlockSpec((H, V), lambda i: (0, 0)),
                pl.BlockSpec((1, V), lambda i: (0, 0)),
            ],
            out_specs=pl.BlockSpec((tm, V), lambda i: (i, 0)),
        ),
        compiler_params=pltpu.CompilerParams(
            dimension_semantics=("parallel",)),
    )(h_flat, wlin_t, blin)

    state_out = hiddens[T - 1][None]                     # (1, B, H)
    return logits, state_out


def rnn_model_reference(inputs, state, params, vocab_size, hidden_size):
    """Pure-JAX reference mirroring the PyTorch module (one-hot path)."""
    X = jax.nn.one_hot(inputs.T, vocab_size, dtype=jnp.float32)  # (T, B, V)
    w_ih, w_hh = params["w_ih"], params["w_hh"]
    b_ih, b_hh = params["b_ih"], params["b_hh"]
    w_lin, b_lin = params["w_lin"], params["b_lin"]

    def step(h, x_t):
        h_new = jnp.tanh(x_t @ w_ih.T + h @ w_hh.T + b_ih + b_hh)
        return h_new, h_new

    h_last, Y = jax.lax.scan(step, state[0], X)
    output = Y.reshape(-1, hidden_size) @ w_lin.T + b_lin
    return output, h_last[None]


if __name__ == "__main__":
    # Small, (8,128)-aligned shapes consistent with the module's forward.
    vocab_size = 128
    hidden_size = 128
    batch_size = 8
    num_steps = 16

    key = jax.random.PRNGKey(0)
    k_in, k1, k2, k3, k4, k5, k6 = jax.random.split(key, 7)

    # PyTorch-style uniform(-1/sqrt(H), 1/sqrt(H)) init.
    bound = 1.0 / (hidden_size ** 0.5)
    params = {
        "w_ih": jax.random.uniform(k1, (hidden_size, vocab_size),
                                   jnp.float32, -bound, bound),
        "w_hh": jax.random.uniform(k2, (hidden_size, hidden_size),
                                   jnp.float32, -bound, bound),
        "b_ih": jax.random.uniform(k3, (hidden_size,), jnp.float32, -bound, bound),
        "b_hh": jax.random.uniform(k4, (hidden_size,), jnp.float32, -bound, bound),
        "w_lin": jax.random.uniform(k5, (vocab_size, hidden_size),
                                    jnp.float32, -bound, bound),
        "b_lin": jax.random.uniform(k6, (vocab_size,), jnp.float32, -bound, bound),
    }

    inputs = jax.random.randint(k_in, (batch_size, num_steps), 0, vocab_size,
                                dtype=jnp.int32)
    state0 = jnp.zeros((1, batch_size, hidden_size), jnp.float32)

    out, h_final = rnn_model_forward(inputs, state0, params)
    jax.block_until_ready((out, h_final))

    # Validate against pure-JAX reference.
    out_ref, h_ref = rnn_model_reference(inputs, state0, params,
                                         vocab_size, hidden_size)
    assert out.shape == (num_steps * batch_size, vocab_size)
    assert h_final.shape == (1, batch_size, hidden_size)
    assert jnp.allclose(out, out_ref, atol=1e-4, rtol=1e-4)
    assert jnp.allclose(h_final, h_ref, atol=1e-4, rtol=1e-4)

    print("KERNEL_OK")
</pallas_src>

<mosaic_0001>
module attributes {stable_mosaic.version = 11 : i64} {
  func.func @rnn_recurrence_kernel(%arg0: i32, %arg1: memref<16x8xi32, #tpu.memory_space<smem>>, %arg2: memref<8x128xf32, #tpu.memory_space<vmem>>, %arg3: memref<128x128xf32, #tpu.memory_space<vmem>>, %arg4: memref<128x128xf32, #tpu.memory_space<vmem>>, %arg5: memref<1x128xf32, #tpu.memory_space<vmem>>, %arg6: memref<16x8x128xf32, #tpu.memory_space<vmem>>, %arg7: memref<8x128xf32, #tpu.memory_space<vmem>>) attributes {dimension_semantics = [#tpu.dimension_semantics<arbitrary>], iteration_bounds = array<i64: 1>, scalar_prefetch = 1 : i64, scratch_operands = 1 : i64, tpu.core_type = #tpu.core_type<tc>, window_params = [{pipeline_mode = #tpu.pipeline_mode<synchronous>, transform_indices = @transform_0, window_bounds = array<i64: 8, 128>}, {pipeline_mode = #tpu.pipeline_mode<synchronous>, transform_indices = @transform_1, window_bounds = array<i64: 128, 128>}, {pipeline_mode = #tpu.pipeline_mode<synchronous>, transform_indices = @transform_2, window_bounds = array<i64: 128, 128>}, {pipeline_mode = #tpu.pipeline_mode<synchronous>, transform_indices = @transform_3, window_bounds = array<i64: 1, 128>}, {pipeline_mode = #tpu.pipeline_mode<synchronous>, transform_indices = @transform_4, window_bounds = array<i64: 16, 8, 128>}]} {
    %c0 = arith.constant 0 : index
    %c0_0 = arith.constant 0 : index
    %0 = vector.load %arg4[%c0, %c0_0] : memref<128x128xf32, #tpu.memory_space<vmem>>, vector<128x128xf32>
    %c0_1 = arith.constant 0 : index
    %c0_2 = arith.constant 0 : index
    %1 = vector.load %arg5[%c0_1, %c0_2] : memref<1x128xf32, #tpu.memory_space<vmem>>, vector<1x128xf32>
    %c0_3 = arith.constant 0 : index
    %c0_4 = arith.constant 0 : index
    %2 = vector.load %arg2[%c0_3, %c0_4] : memref<8x128xf32, #tpu.memory_space<vmem>>, vector<8x128xf32>
    %c0_i32 = arith.constant 0 : i32
    %3 = arith.index_cast %c0_i32 : i32 to index
    %c0_5 = arith.constant 0 : index
    %4 = memref.load %arg1[%3, %c0_5] : memref<16x8xi32, #tpu.memory_space<smem>>
    %5 = arith.index_cast %4 : i32 to index
    %c0_6 = arith.constant 0 : index
    %6 = vector.load %arg3[%5, %c0_6] : memref<128x128xf32, #tpu.memory_space<vmem>>, vector<1x128xf32>
    %c0_7 = arith.constant 0 : index
    %c0_8 = arith.constant 0 : index
    %7 = vector.load %arg7[%c0_7, %c0_8] : memref<8x128xf32, #tpu.memory_space<vmem>>, vector<1x128xf32>
    tpu.vector_store %arg7[%c0_7, %c0_8], %6 {strides = array<i32>} : memref<8x128xf32, #tpu.memory_space<vmem>>, vector<1x128xf32>,
    %8 = arith.index_cast %c0_i32 : i32 to index
    %c1 = arith.constant 1 : index
    %9 = memref.load %arg1[%8, %c1] : memref<16x8xi32, #tpu.memory_space<smem>>
    %10 = arith.index_cast %9 : i32 to index
    %c0_9 = arith.constant 0 : index
    %11 = vector.load %arg3[%10, %c0_9] : memref<128x128xf32, #tpu.memory_space<vmem>>, vector<1x128xf32>
    %c1_10 = arith.constant 1 : index
    %c0_11 = arith.constant 0 : index
    %12 = vector.load %arg7[%c1_10, %c0_11] : memref<8x128xf32, #tpu.memory_space<vmem>>, vector<1x128xf32>
    tpu.vector_store %arg7[%c1_10, %c0_11], %11 {strides = array<i32>} : memref<8x128xf32, #tpu.memory_space<vmem>>, vector<1x128xf32>,
    %13 = arith.index_cast %c0_i32 : i32 to index
    %c2 = arith.constant 2 : index
    %14 = memref.load %arg1[%13, %c2] : memref<16x8xi32, #tpu.memory_space<smem>>
    %15 = arith.index_cast %14 : i32 to index
    %c0_12 = arith.constant 0 : index
    %16 = vector.load %arg3[%15, %c0_12] : memref<128x128xf32, #tpu.memory_space<vmem>>, vector<1x128xf32>
    %c2_13 = arith.constant 2 : index
    %c0_14 = arith.constant 0 : index
    %17 = vector.load %arg7[%c2_13, %c0_14] : memref<8x128xf32, #tpu.memory_space<vmem>>, vector<1x128xf32>
    tpu.vector_store %arg7[%c2_13, %c0_14], %16 {strides = array<i32>} : memref<8x128xf32, #tpu.memory_space<vmem>>, vector<1x128xf32>,
    %18 = arith.index_cast %c0_i32 : i32 to index
    %c3 = arith.constant 3 : index
    %19 = memref.load %arg1[%18, %c3] : memref<16x8xi32, #tpu.memory_space<smem>>
    %20 = arith.index_cast %19 : i32 to index
    %c0_15 = arith.constant 0 : index
    %21 = vector.load %arg3[%20, %c0_15] : memref<128x128xf32, #tpu.memory_space<vmem>>, vector<1x128xf32>
    %c3_16 = arith.constant 3 : index
    %c0_17 = arith.constant 0 : index
    %22 = vector.load %arg7[%c3_16, %c0_17] : memref<8x128xf32, #tpu.memory_space<vmem>>, vector<1x128xf32>
    tpu.vector_store %arg7[%c3_16, %c0_17], %21 {strides = array<i32>} : memref<8x128xf32, #tpu.memory_space<vmem>>, vector<1x128xf32>,
    %23 = arith.index_cast %c0_i32 : i32 to index
    %c4 = arith.constant 4 : index
    %24 = memref.load %arg1[%23, %c4] : memref<16x8xi32, #tpu.memory_space<smem>>
    %25 = arith.index_cast %24 : i32 to index
    %c0_18 = arith.constant 0 : index
    %26 = vector.load %arg3[%25, %c0_18] : memref<128x128xf32, #tpu.memory_space<vmem>>, vector<1x128xf32>
    %c4_19 = arith.constant 4 : index
    %c0_20 = arith.constant 0 : index
    %27 = vector.load %arg7[%c4_19, %c0_20] : memref<8x128xf32, #tpu.memory_space<vmem>>, vector<1x128xf32>
    tpu.vector_store %arg7[%c4_19, %c0_20], %26 {strides = array<i32>} : memref<8x128xf32, #tpu.memory_space<vmem>>, vector<1x128xf32>,
    %28 = arith.index_cast %c0_i32 : i32 to index
    %c5 = arith.constant 5 : index
    %29 = memref.load %arg1[%28, %c5] : memref<16x8xi32, #tpu.memory_space<smem>>
    %30 = arith.index_cast %29 : i32 to index
    %c0_21 = arith.constant 0 : index
    %31 = vector.load %arg3[%30, %c0_21] : memref<128x128xf32, #tpu.memory_space<vmem>>, vector<1x128xf32>
    %c5_22 = arith.constant 5 : index
    %c0_23 = arith.constant 0 : index
    %32 = vector.load %arg7[%c5_22, %c0_23] : memref<8x128xf32, #tpu.memory_space<vmem>>, vector<1x128xf32>
    tpu.vector_store %arg7[%c5_22, %c0_23], %31 {strides = array<i32>} : memref<8x128xf32, #tpu.memory_space<vmem>>, vector<1x128xf32>,
    %33 = arith.index_cast %c0_i32 : i32 to index
    %c6 = arith.constant 6 : index
    %34 = memref.load %arg1[%33, %c6] : memref<16x8xi32, #tpu.memory_space<smem>>
    %35 = arith.index_cast %34 : i32 to index
    %c0_24 = arith.constant 0 : index
    %36 = vector.load %arg3[%35, %c0_24] : memref<128x128xf32, #tpu.memory_space<vmem>>, vector<1x128xf32>
    %c6_25 = arith.constant 6 : index
    %c0_26 = arith.constant 0 : index
    %37 = vector.load %arg7[%c6_25, %c0_26] : memref<8x128xf32, #tpu.memory_space<vmem>>, vector<1x128xf32>
    tpu.vector_store %arg7[%c6_25, %c0_26], %36 {strides = array<i32>} : memref<8x128xf32, #tpu.memory_space<vmem>>, vector<1x128xf32>,
    %38 = arith.index_cast %c0_i32 : i32 to index
    %c7 = arith.constant 7 : index
    %39 = memref.load %arg1[%38, %c7] : memref<16x8xi32, #tpu.memory_space<smem>>
    %40 = arith.index_cast %39 : i32 to index
    %c0_27 = arith.constant 0 : index
    %41 = vector.load %arg3[%40, %c0_27] : memref<128x128xf32, #tpu.memory_space<vmem>>, vector<1x128xf32>
    %c7_28 = arith.constant 7 : index
    %c0_29 = arith.constant 0 : index
    %42 = vector.load %arg7[%c7_28, %c0_29] : memref<8x128xf32, #tpu.memory_space<vmem>>, vector<1x128xf32>
    tpu.vector_store %arg7[%c7_28, %c0_29], %41 {strides = array<i32>} : memref<8x128xf32, #tpu.memory_space<vmem>>, vector<1x128xf32>,
    %c0_30 = arith.constant 0 : index
    %c0_31 = arith.constant 0 : index
    %43 = vector.load %arg7[%c0_30, %c0_31] : memref<8x128xf32, #tpu.memory_space<vmem>>, vector<8x128xf32>
    %cst = arith.constant dense<0.000000e+00> : vector<8x128xf32>
    %44 = tpu.matmul %2, %0, %cst {dimension_numbers = #tpu.dot_dimension_numbers<[1], [0], [0], [1], [0, 0, 1, 1], [], []>} : vector<8x128xf32>, vector<128x128xf32>, vector<8x128xf32> -> vector<8x128xf32>
    %45 = arith.addf %43, %44 : vector<8x128xf32>
    %46 = vector.broadcast %1 : vector<1x128xf32> to vector<8x128xf32>
    %47 = arith.addf %45, %46 : vector<8x128xf32>
    %48 = math.tanh %47 : vector<8x128xf32>
    %49 = arith.index_cast %c0_i32 : i32 to index
    %c0_32 = arith.constant 0 : index
    %c0_33 = arith.constant 0 : index
    %50 = vector.load %arg6[%49, %c0_32, %c0_33] : memref<16x8x128xf32, #tpu.memory_space<vmem>>, vector<1x8x128xf32>
    %51 = vector.shape_cast %50 : vector<1x8x128xf32> to vector<8x128xf32>
    %52 = vector.shape_cast %48 : vector<8x128xf32> to vector<1x8x128xf32>
    tpu.vector_store %arg6[%49, %c0_32, %c0_33], %52 {strides = array<i32>} : memref<16x8x128xf32, #tpu.memory_space<vmem>>, vector<1x8x128xf32>,
    %c1_i32 = arith.constant 1 : i32
    %53 = arith.index_cast %c1_i32 : i32 to index
    %c0_34 = arith.constant 0 : index
    %54 = memref.load %arg1[%53, %c0_34] : memref<16x8xi32, #tpu.memory_space<smem>>
    %55 = arith.index_cast %54 : i32 to index
    %c0_35 = arith.constant 0 : index
    %56 = vector.load %arg3[%55, %c0_35] : memref<128x128xf32, #tpu.memory_space<vmem>>, vector<1x128xf32>
    %c0_36 = arith.constant 0 : index
    %c0_37 = arith.constant 0 : index
    %57 = vector.load %arg7[%c0_36, %c0_37] : memref<8x128xf32, #tpu.memory_space<vmem>>, vector<1x128xf32>
    tpu.vector_store %arg7[%c0_36, %c0_37], %56 {strides = array<i32>} : memref<8x128xf32, #tpu.memory_space<vmem>>, vector<1x128xf32>,
    %58 = arith.index_cast %c1_i32 : i32 to index
    %c1_38 = arith.constant 1 : index
    %59 = memref.load %arg1[%58, %c1_38] : memref<16x8xi32, #tpu.memory_space<smem>>
    %60 = arith.index_cast %59 : i32 to index
    %c0_39 = arith.constant 0 : index
    %61 = vector.load %arg3[%60, %c0_39] : memref<128x128xf32, #tpu.memory_space<vmem>>, vector<1x128xf32>
    %c1_40 = arith.constant 1 : index
    %c0_41 = arith.constant 0 : index
    %62 = vector.load %arg7[%c1_40, %c0_41] : memref<8x128xf32, #tpu.memory_space<vmem>>, vector<1x128xf32>
    tpu.vector_store %arg7[%c1_40, %c0_41], %61 {strides = array<i32>} : memref<8x128xf32, #tpu.memory_space<vmem>>, vector<1x128xf32>,
    %63 = arith.index_cast %c1_i32 : i32 to index
    %c2_42 = arith.constant 2 : index
    %64 = memref.load %arg1[%63, %c2_42] : memref<16x8xi32, #tpu.memory_space<smem>>
    %65 = arith.index_cast %64 : i32 to index
    %c0_43 = arith.constant 0 : index
    %66 = vector.load %arg3[%65, %c0_43] : memref<128x128xf32, #tpu.memory_space<vmem>>, vector<1x128xf32>
    %c2_44 = arith.constant 2 : index
    %c0_45 = arith.constant 0 : index
    %67 = vector.load %arg7[%c2_44, %c0_45] : memref<8x128xf32, #tpu.memory_space<vmem>>, vector<1x128xf32>
    tpu.vector_store %arg7[%c2_44, %c0_45], %66 {strides = array<i32>} : memref<8x128xf32, #tpu.memory_space<vmem>>, vector<1x128xf32>,
    %68 = arith.index_cast %c1_i32 : i32 to index
    %c3_46 = arith.constant 3 : index
    %69 = memref.load %arg1[%68, %c3_46] : memref<16x8xi32, #tpu.memory_space<smem>>
    %70 = arith.index_cast %69 : i32 to index
    %c0_47 = arith.constant 0 : index
    %71 = vector.load %arg3[%70, %c0_47] : memref<128x128xf32, #tpu.memory_space<vmem>>, vector<1x128xf32>
    %c3_48 = arith.constant 3 : index
    %c0_49 = arith.constant 0 : index
    %72 = vector.load %arg7[%c3_48, %c0_49] : memref<8x128xf32, #tpu.memory_space<vmem>>, vector<1x128xf32>
    tpu.vector_store %arg7[%c3_48, %c0_49], %71 {strides = array<i32>} : memref<8x128xf32, #tpu.memory_space<vmem>>, vector<1x128xf32>,
    %73 = arith.index_cast %c1_i32 : i32 to index
    %c4_50 = arith.constant 4 : index
    %74 = memref.load %arg1[%73, %c4_50] : memref<16x8xi32, #tpu.memory_space<smem>>
    %75 = arith.index_cast %74 : i32 to index
    %c0_51 = arith.constant 0 : index
    %76 = vector.load %arg3[%75, %c0_51] : memref<128x128xf32, #tpu.memory_space<vmem>>, vector<1x128xf32>
    %c4_52 = arith.constant 4 : index
    %c0_53 = arith.constant 0 : index
    %77 = vector.load %arg7[%c4_52, %c0_53] : memref<8x128xf32, #tpu.memory_space<vmem>>, vector<1x128xf32>
    tpu.vector_store %arg7[%c4_52, %c0_53], %76 {strides = array<i32>} : memref<8x128xf32, #tpu.memory_space<vmem>>, vector<1x128xf32>,
    %78 = arith.index_cast %c1_i32 : i32 to index
    %c5_54 = arith.constant 5 : index
    %79 = memref.load %arg1[%78, %c5_54] : memref<16x8xi32, #tpu.memory_space<smem>>
    %80 = arith.index_cast %79 : i32 to index
    %c0_55 = arith.constant 0 : index
    %81 = vector.load %arg3[%80, %c0_55] : memref<128x128xf32, #tpu.memory_space<vmem>>, vector<1x128xf32>
    %c5_56 = arith.constant 5 : index
    %c0_57 = arith.constant 0 : index
    %82 = vector.load %arg7[%c5_56, %c0_57] : memref<8x128xf32, #tpu.memory_space<vmem>>, vector<1x128xf32>
    tpu.vector_store %arg7[%c5_56, %c0_57], %81 {strides = array<i32>} : memref<8x128xf32, #tpu.memory_space<vmem>>, vector<1x128xf32>,
    %83 = arith.index_cast %c1_i32 : i32 to index
    %c6_58 = arith.constant 6 : index
    %84 = memref.load %arg1[%83, %c6_58] : memref<16x8xi32, #tpu.memory_space<smem>>
    %85 = arith.index_cast %84 : i32 to index
    %c0_59 = arith.constant 0 : index
    %86 = vector.load %arg3[%85, %c0_59] : memref<128x128xf32, #tpu.memory_space<vmem>>, vector<1x128xf32>
    %c6_60 = arith.constant 6 : index
    %c0_61 = arith.constant 0 : index
    %87 = vector.load %arg7[%c6_60, %c0_61] : memref<8x128xf32, #tpu.memory_space<vmem>>, vector<1x128xf32>
    tpu.vector_store %arg7[%c6_60, %c0_61], %86 {strides = array<i32>} : memref<8x128xf32, #tpu.memory_space<vmem>>, vector<1x128xf32>,
    %88 = arith.index_cast %c1_i32 : i32 to index
    %c7_62 = arith.constant 7 : index
    %89 = memref.load %arg1[%88, %c7_62] : memref<16x8xi32, #tpu.memory_space<smem>>
    %90 = arith.index_cast %89 : i32 to index
    %c0_63 = arith.constant 0 : index
    %91 = vector.load %arg3[%90, %c0_63] : memref<128x128xf32, #tpu.memory_space<vmem>>, vector<1x128xf32>
    %c7_64 = arith.constant 7 : index
    %c0_65 = arith.constant 0 : index
    %92 = vector.load %arg7[%c7_64, %c0_65] : memref<8x128xf32, #tpu.memory_space<vmem>>, vector<1x128xf32>
    tpu.vector_store %arg7[%c7_64, %c0_65], %91 {strides = array<i32>} : memref<8x128xf32, #tpu.memory_space<vmem>>, vector<1x128xf32>,
    %c0_66 = arith.constant 0 : index
    %c0_67 = arith.constant 0 : index
    %93 = vector.load %arg7[%c0_66, %c0_67] : memref<8x128xf32, #tpu.memory_space<vmem>>, vector<8x128xf32>
    %cst_68 = arith.constant dense<0.000000e+00> : vector<8x128xf32>
    %94 = tpu.matmul %48, %0, %cst_68 {dimension_numbers = #tpu.dot_dimension_numbers<[1], [0], [0], [1], [0, 0, 1, 1], [], []>} : vector<8x128xf32>, vector<128x128xf32>, vector<8x128xf32> -> vector<8x128xf32>
    %95 = arith.addf %93, %94 : vector<8x128xf32>
    %96 = vector.broadcast %1 : vector<1x128xf32> to vector<8x128xf32>
    %97 = arith.addf %95, %96 : vector<8x128xf32>
    %98 = math.tanh %97 : vector<8x128xf32>
    %99 = arith.index_cast %c1_i32 : i32 to index
    %c0_69 = arith.constant 0 : index
    %c0_70 = arith.constant 0 : index
    %100 = vector.load %arg6[%99, %c0_69, %c0_70] : memref<16x8x128xf32, #tpu.memory_space<vmem>>, vector<1x8x128xf32>
    %101 = vector.shape_cast %100 : vector<1x8x128xf32> to vector<8x128xf32>
    %102 = vector.shape_cast %98 : vector<8x128xf32> to vector<1x8x128xf32>
    tpu.vector_store %arg6[%99, %c0_69, %c0_70], %102 {strides = array<i32>} : memref<16x8x128xf32, #tpu.memory_space<vmem>>, vector<1x8x128xf32>,
    %c2_i32 = arith.constant 2 : i32
    %103 = arith.index_cast %c2_i32 : i32 to index
    %c0_71 = arith.constant 0 : index
    %104 = memref.load %arg1[%103, %c0_71] : memref<16x8xi32, #tpu.memory_space<smem>>
    %105 = arith.index_cast %104 : i32 to index
    %c0_72 = arith.constant 0 : index
    %106 = vector.load %arg3[%105, %c0_72] : memref<128x128xf32, #tpu.memory_space<vmem>>, vector<1x128xf32>
    %c0_73 = arith.constant 0 : index
    %c0_74 = arith.constant 0 : index
    %107 = vector.load %arg7[%c0_73, %c0_74] : memref<8x128xf32, #tpu.memory_space<vmem>>, vector<1x128xf32>
    tpu.vector_store %arg7[%c0_73, %c0_74], %106 {strides = array<i32>} : memref<8x128xf32, #tpu.memory_space<vmem>>, vector<1x128xf32>,
    %108 = arith.index_cast %c2_i32 : i32 to index
    %c1_75 = arith.constant 1 : index
    %109 = memref.load %arg1[%108, %c1_75] : memref<16x8xi32, #tpu.memory_space<smem>>
    %110 = arith.index_cast %109 : i32 to index
    %c0_76 = arith.constant 0 : index
    %111 = vector.load %arg3[%110, %c0_76] : memref<128x128xf32, #tpu.memory_space<vmem>>, vector<1x128xf32>
    %c1_77 = arith.constant 1 : index
    %c0_78 = arith.constant 0 : index
    %112 = vector.load %arg7[%c1_77, %c0_78] : memref<8x128xf32, #tpu.memory_space<vmem>>, vector<1x128xf32>
    tpu.vector_store %arg7[%c1_77, %c0_78], %111 {strides = array<i32>} : memref<8x128xf32, #tpu.memory_space<vmem>>, vector<1x128xf32>,
    %113 = arith.index_cast %c2_i32 : i32 to index
    %c2_79 = arith.constant 2 : index
    %114 = memref.load %arg1[%113, %c2_79] : memref<16x8xi32, #tpu.memory_space<smem>>
    %115 = arith.index_cast %114 : i32 to index
    %c0_80 = arith.constant 0 : index
    %116 = vector.load %arg3[%115, %c0_80] : memref<128x128xf32, #tpu.memory_space<vmem>>, vector<1x128xf32>
    %c2_81 = arith.constant 2 : index
    %c0_82 = arith.constant 0 : index
    %117 = vector.load %arg7[%c2_81, %c0_82] : memref<8x128xf32, #tpu.memory_space<vmem>>, vector<1x128xf32>
    tpu.vector_store %arg7[%c2_81, %c0_82], %116 {strides = array<i32>} : memref<8x128xf32, #tpu.memory_space<vmem>>, vector<1x128xf32>,
    %118 = arith.index_cast %c2_i32 : i32 to index
    %c3_83 = arith.constant 3 : index
    %119 = memref.load %arg1[%118, %c3_83] : memref<16x8xi32, #tpu.memory_space<smem>>
    %120 = arith.index_cast %119 : i32 to index
    %c0_84 = arith.constant 0 : index
    %121 = vector.load %arg3[%120, %c0_84] : memref<128x128xf32, #tpu.memory_space<vmem>>, vector<1x128xf32>
    %c3_85 = arith.constant 3 : index
    %c0_86 = arith.constant 0 : index
    %122 = vector.load %arg7[%c3_85, %c0_86] : memref<8x128xf32, #tpu.memory_space<vmem>>, vector<1x128xf32>
    tpu.vector_store %arg7[%c3_85, %c0_86], %121 {strides = array<i32>} : memref<8x128xf32, #tpu.memory_space<vmem>>, vector<1x128xf32>,
    %123 = arith.index_cast %c2_i32 : i32 to index
    %c4_87 = arith.constant 4 : index
    %124 = memref.load %arg1[%123, %c4_87] : memref<16x8xi32, #tpu.memory_space<smem>>
    %125 = arith.index_cast %124 : i32 to index
    %c0_88 = arith.constant 0 : index
    %126 = vector.load %arg3[%125, %c0_88] : memref<128x128xf32, #tpu.memory_space<vmem>>, vector<1x128xf32>
    %c4_89 = arith.constant 4 : index
    %c0_90 = arith.constant 0 : index
    %127 = vector.load %arg7[%c4_89, %c0_90] : memref<8x128xf32, #tpu.memory_space<vmem>>, vector<1x128xf32>
    tpu.vector_store %arg7[%c4_89, %c0_90], %126 {strides = array<i32>} : memref<8x128xf32, #tpu.memory_space<vmem>>, vector<1x128xf32>,
    %128 = arith.index_cast %c2_i32 : i32 to index
    %c5_91 = arith.constant 5 : index
    %129 = memref.load %arg1[%128, %c5_91] : memref<16x8xi32, #tpu.memory_space<smem>>
    %130 = arith.index_cast %129 : i32 to index
    %c0_92 = arith.constant 0 : index
    %131 = vector.load %arg3[%130, %c0_92] : memref<128x128xf32, #tpu.memory_space<vmem>>, vector<1x128xf32>
    %c5_93 = arith.constant 5 : index
    %c0_94 = arith.constant 0 : index
    %132 = vector.load %arg7[%c5_93, %c0_94] : memref<8x128xf32, #tpu.memory_space<vmem>>, vector<1x128xf32>
    tpu.vector_store %arg7[%c5_93, %c0_94], %131 {strides = array<i32>} : memref<8x128xf32, #tpu.memory_space<vmem>>, vector<1x128xf32>,
    %133 = arith.index_cast %c2_i32 : i32 to index
    %c6_95 = arith.constant 6 : index
    %134 = memref.load %arg1[%133, %c6_95] : memref<16x8xi32, #tpu.memory_space<smem>>
    %135 = arith.index_cast %134 : i32 to index
    %c0_96 = arith.constant 0 : index
    %136 = vector.load %arg3[%135, %c0_96] : memref<128x128xf32, #tpu.memory_space<vmem>>, vector<1x128xf32>
    %c6_97 = arith.constant 6 : index
    %c0_98 = arith.constant 0 : index
    %137 = vector.load %arg7[%c6_97, %c0_98] : memref<8x128xf32, #tpu.memory_space<vmem>>, vector<1x128xf32>
    tpu.vector_store %arg7[%c6_97, %c0_98], %136 {strides = array<i32>} : memref<8x128xf32, #tpu.memory_space<vmem>>, vector<1x128xf32>,
    %138 = arith.index_cast %c2_i32 : i32 to index
    %c7_99 = arith.constant 7 : index
    %139 = memref.load %arg1[%138, %c7_99] : memref<16x8xi32, #tpu.memory_space<smem>>
    %140 = arith.index_cast %139 : i32 to index
    %c0_100 = arith.constant 0 : index
    %141 = vector.load %arg3[%140, %c0_100] : memref<128x128xf32, #tpu.memory_space<vmem>>, vector<1x128xf32>
    %c7_101 = arith.constant 7 : index
    %c0_102 = arith.constant 0 : index
    %142 = vector.load %arg7[%c7_101, %c0_102] : memref<8x128xf32, #tpu.memory_space<vmem>>, vector<1x128xf32>
    tpu.vector_store %arg7[%c7_101, %c0_102], %141 {strides = array<i32>} : memref<8x128xf32, #tpu.memory_space<vmem>>, vector<1x128xf32>,
    %c0_103 = arith.constant 0 : index
    %c0_104 = arith.constant 0 : index
    %143 = vector.load %arg7[%c0_103, %c0_104] : memref<8x128xf32, #tpu.memory_space<vmem>>, vector<8x128xf32>
    %cst_105 = arith.constant dense<0.000000e+00> : vector<8x128xf32>
    %144 = tpu.matmul %98, %0, %cst_105 {dimension_numbers = #tpu.dot_dimension_numbers<[1], [0], [0], [1], [0, 0, 1, 1], [], []>} : vector<8x128xf32>, vector<128x128xf32>, vector<8x128xf32> -> vector<8x128xf32>
    %145 = arith.addf %143, %144 : vector<8x128xf32>
    %146 = vector.broadcast %1 : vector<1x128xf32> to vector<8x128xf32>
    %147 = arith.addf %145, %146 : vector<8x128xf32>
    %148 = math.tanh %147 : vector<8x128xf32>
    %149 = arith.index_cast %c2_i32 : i32 to index
    %c0_106 = arith.constant 0 : index
    %c0_107 = arith.constant 0 : index
    %150 = vector.load %arg6[%149, %c0_106, %c0_107] : memref<16x8x128xf32, #tpu.memory_space<vmem>>, vector<1x8x128xf32>
    %151 = vector.shape_cast %150 : vector<1x8x128xf32> to vector<8x128xf32>
    %152 = vector.shape_cast %148 : vector<8x128xf32> to vector<1x8x128xf32>
    tpu.vector_store %arg6[%149, %c0_106, %c0_107], %152 {strides = array<i32>} : memref<16x8x128xf32, #tpu.memory_space<vmem>>, vector<1x8x128xf32>,
    %c3_i32 = arith.constant 3 : i32
    %153 = arith.index_cast %c3_i32 : i32 to index
    %c0_108 = arith.constant 0 : index
    %154 = memref.load %arg1[%153, %c0_108] : memref<16x8xi32, #tpu.memory_space<smem>>
    %155 = arith.index_cast %154 : i32 to index
    %c0_109 = arith.constant 0 : index
    %156 = vector.load %arg3[%155, %c0_109] : memref<128x128xf32, #tpu.memory_space<vmem>>, vector<1x128xf32>
    %c0_110 = arith.constant 0 : index
    %c0_111 = arith.constant 0 : index
    %157 = vector.load %arg7[%c0_110, %c0_111] : memref<8x128xf32, #tpu.memory_space<vmem>>, vector<1x128xf32>
    tpu.vector_store %arg7[%c0_110, %c0_111], %156 {strides = array<i32>} : memref<8x128xf32, #tpu.memory_space<vmem>>, vector<1x128xf32>,
    %158 = arith.index_cast %c3_i32 : i32 to index
    %c1_112 = arith.constant 1 : index
    %159 = memref.load %arg1[%158, %c1_112] : memref<16x8xi32, #tpu.memory_space<smem>>
    %160 = arith.index_cast %159 : i32 to index
    %c0_113 = arith.constant 0 : index
    %161 = vector.load %arg3[%160, %c0_113] : memref<128x128xf32, #tpu.memory_space<vmem>>, vector<1x128xf32>
    %c1_114 = arith.constant 1 : index
    %c0_115 = arith.constant 0 : index
    %162 = vector.load %arg7[%c1_114, %c0_115] : memref<8x128xf32, #tpu.memory_space<vmem>>, vector<1x128xf32>
    tpu.vector_store %arg7[%c1_114, %c0_115], %161 {strides = array<i32>} : memref<8x128xf32, #tpu.memory_space<vmem>>, vector<1x128xf32>,
    %163 = arith.index_cast %c3_i32 : i32 to index
    %c2_116 = arith.constant 2 : index
    %164 = memref.load %arg1[%163, %c2_116] : memref<16x8xi32, #tpu.memory_space<smem>>
    %165 = arith.index_cast %164 : i32 to index
    %c0_117 = arith.constant 0 : index
    %166 = vector.load %arg3[%165, %c0_117] : memref<128x128xf32, #tpu.memory_space<vmem>>, vector<1x128xf32>
    %c2_118 = arith.constant 2 : index
    %c0_119 = arith.constant 0 : index
    %167 = vector.load %arg7[%c2_118, %c0_119] : memref<8x128xf32, #tpu.memory_space<vmem>>, vector<1x128xf32>
    tpu.vector_store %arg7[%c2_118, %c0_119], %166 {strides = array<i32>} : memref<8x128xf32, #tpu.memory_space<vmem>>, vector<1x128xf32>,
    %168 = arith.index_cast %c3_i32 : i32 to index
    %c3_120 = arith.constant 3 : index
    %169 = memref.load %arg1[%168, %c3_120] : memref<16x8xi32, #tpu.memory_space<smem>>
    %170 = arith.index_cast %169 : i32 to index
    %c0_121 = arith.constant 0 : index
    %171 = vector.load %arg3[%170, %c0_121] : memref<128x128xf32, #tpu.memory_space<vmem>>, vector<1x128xf32>
    %c3_122 = arith.constant 3 : index
    %c0_123 = arith.constant 0 : index
    %172 = vector.load %arg7[%c3_122, %c0_123] : memref<8x128xf32, #tpu.memory_space<vmem>>, vector<1x128xf32>
    tpu.vector_store %arg7[%c3_122, %c0_123], %171 {strides = array<i32>} : memref<8x128xf32, #tpu.memory_space<vmem>>, vector<1x128xf32>,
    %173 = arith.index_cast %c3_i32 : i32 to index
    %c4_124 = arith.constant 4 : index
    %174 = memref.load %arg1[%173, %c4_124] : memref<16x8xi32, #tpu.memory_space<smem>>
    %175 = arith.index_cast %174 : i32 to index
    %c0_125 = arith.constant 0 : index
    %176 = vector.load %arg3[%175, %c0_125] : memref<128x128xf32, #tpu.memory_space<vmem>>, vector<1x128xf32>
    %c4_126 = arith.constant 4 : index
    %c0_127 = arith.constant 0 : index
    %177 = vector.load %arg7[%c4_126, %c0_127] : memref<8x128xf32, #tpu.memory_space<vmem>>, vector<1x128xf32>
    tpu.vector_store %arg7[%c4_126, %c0_127], %176 {strides = array<i32>} : memref<8x128xf32, #tpu.memory_space<vmem>>, vector<1x128xf32>,
    %178 = arith.index_cast %c3_i32 : i32 to index
    %c5_128 = arith.constant 5 : index
    %179 = memref.load %arg1[%178, %c5_128] : memref<16x8xi32, #tpu.memory_space<smem>>
    %180 = arith.index_cast %179 : i32 to index
    %c0_129 = arith.constant 0 : index
    %181 = vector.load %arg3[%180, %c0_129] : memref<128x128xf32, #tpu.memory_space<vmem>>, vector<1x128xf32>
    %c5_130 = arith.constant 5 : index
    %c0_131 = arith.constant 0 : index
    %182 = vector.load %arg7[%c5_130, %c0_131] : memref<8x128xf32, #tpu.memory_space<vmem>>, vector<1x128xf32>
    tpu.vector_store %arg7[%c5_130, %c0_131], %181 {strides = array<i32>} : memref<8x128xf32, #tpu.memory_space<vmem>>, vector<1x128xf32>,
    %183 = arith.index_cast %c3_i32 : i32 to index
    %c6_132 = arith.constant 6 : index
    %184 = memref.load %arg1[%183, %c6_132] : memref<16x8xi32, #tpu.memory_space<smem>>
    %185 = arith.index_cast %184 : i32 to index
    %c0_133 = arith.constant 0 : index
    %186 = vector.load %arg3[%185, %c0_133] : memref<128x128xf32, #tpu.memory_space<vmem>>, vector<1x128xf32>
    %c6_134 = arith.constant 6 : index
    %c0_135 = arith.constant 0 : index
    %187 = vector.load %arg7[%c6_134, %c0_135] : memref<8x128xf32, #tpu.memory_space<vmem>>, vector<1x128xf32>
    tpu.vector_store %arg7[%c6_134, %c0_135], %186 {strides = array<i32>} : memref<8x128xf32, #tpu.memory_space<vmem>>, vector<1x128xf32>,
    %188 = arith.index_cast %c3_i32 : i32 to index
    %c7_136 = arith.constant 7 : index
    %189 = memref.load %arg1[%188, %c7_136] : memref<16x8xi32, #tpu.memory_space<smem>>
    %190 = arith.index_cast %189 : i32 to index
    %c0_137 = arith.constant 0 : index
    %191 = vector.load %arg3[%190, %c0_137] : memref<128x128xf32, #tpu.memory_space<vmem>>, vector<1x128xf32>
    %c7_138 = arith.constant 7 : index
    %c0_139 = arith.constant 0 : index
    %192 = vector.load %arg7[%c7_138, %c0_139] : memref<8x128xf32, #tpu.memory_space<vmem>>, vector<1x128xf32>
    tpu.vector_store %arg7[%c7_138, %c0_139], %191 {strides = array<i32>} : memref<8x128xf32, #tpu.memory_space<vmem>>, vector<1x128xf32>,
    %c0_140 = arith.constant 0 : index
    %c0_141 = arith.constant 0 : index
    %193 = vector.load %arg7[%c0_140, %c0_141] : memref<8x128xf32, #tpu.memory_space<vmem>>, vector<8x128xf32>
    %cst_142 = arith.constant dense<0.000000e+00> : vector<8x128xf32>
    %194 = tpu.matmul %148, %0, %cst_142 {dimension_numbers = #tpu.dot_dimension_numbers<[1], [0], [0], [1], [0, 0, 1, 1], [], []>} : vector<8x128xf32>, vector<128x128xf32>, vector<8x128xf32> -> vector<8x128xf32>
    %195 = arith.addf %193, %194 : vector<8x128xf32>
    %196 = vector.broadcast %1 : vector<1x128xf32> to vector<8x128xf32>
    %197 = arith.addf %195, %196 : vector<8x128xf32>
    %198 = math.tanh %197 : vector<8x128xf32>
    %199 = arith.index_cast %c3_i32 : i32 to index
    %c0_143 = arith.constant 0 : index
    %c0_144 = arith.constant 0 : index
    %200 = vector.load %arg6[%199, %c0_143, %c0_144] : memref<16x8x128xf32, #tpu.memory_space<vmem>>, vector<1x8x128xf32>
    %201 = vector.shape_cast %200 : vector<1x8x128xf32> to vector<8x128xf32>
    %202 = vector.shape_cast %198 : vector<8x128xf32> to vector<1x8x128xf32>
    tpu.vector_store %arg6[%199, %c0_143, %c0_144], %202 {strides = array<i32>} : memref<16x8x128xf32, #tpu.memory_space<vmem>>, vector<1x8x128xf32>,
    %c4_i32 = arith.constant 4 : i32
    %203 = arith.index_cast %c4_i32 : i32 to index
    %c0_145 = arith.constant 0 : index
    %204 = memref.load %arg1[%203, %c0_145] : memref<16x8xi32, #tpu.memory_space<smem>>
    %205 = arith.index_cast %204 : i32 to index
    %c0_146 = arith.constant 0 : index
    %206 = vector.load %arg3[%205, %c0_146] : memref<128x128xf32, #tpu.memory_space<vmem>>, vector<1x128xf32>
    %c0_147 = arith.constant 0 : index
    %c0_148 = arith.constant 0 : index
    %207 = vector.load %arg7[%c0_147, %c0_148] : memref<8x128xf32, #tpu.memory_space<vmem>>, vector<1x128xf32>
    tpu.vector_store %arg7[%c0_147, %c0_148], %206 {strides = array<i32>} : memref<8x128xf32, #tpu.memory_space<vmem>>, vector<1x128xf32>,
    %208 = arith.index_cast %c4_i32 : i32 to index
    %c1_149 = arith.constant 1 : index
    %209 = memref.load %arg1[%208, %c1_149] : memref<16x8xi32, #tpu.memory_space<smem>>
    %210 = arith.index_cast %209 : i32 to index
    %c0_150 = arith.constant 0 : index
    %211 = vector.load %arg3[%210, %c0_150] : memref<128x128xf32, #tpu.memory_space<vmem>>, vector<1x128xf32>
    %c1_151 = arith.constant 1 : index
    %c0_152 = arith.constant 0 : index
    %212 = vector.load %arg7[%c1_151, %c0_152] : memref<8x128xf32, #tpu.memory_space<vmem>>, vector<1x128xf32>
    tpu.vector_store %arg7[%c1_151, %c0_152], %211 {strides = array<i32>} : memref<8x128xf32, #tpu.memory_space<vmem>>, vector<1x128xf32>,
    %213 = arith.index_cast %c4_i32 : i32 to index
    %c2_153 = arith.constant 2 : index
    %214 = memref.load %arg1[%213, %c2_153] : memref<16x8xi32, #tpu.memory_space<smem>>
    %215 = arith.index_cast %214 : i32 to index
    %c0_154 = arith.constant 0 : index
    %216 = vector.load %arg3[%215, %c0_154] : memref<128x128xf32, #tpu.memory_space<vmem>>, vector<1x128xf32>
    %c2_155 = arith.constant 2 : index
    %c0_156 = arith.constant 0 : index
    %217 = vector.load %arg7[%c2_155, %c0_156] : memref<8x128xf32, #tpu.memory_space<vmem>>, vector<1x128xf32>
    tpu.vector_store %arg7[%c2_155, %c0_156], %216 {strides = array<i32>} : memref<8x128xf32, #tpu.memory_space<vmem>>, vector<1x128xf32>,
    %218 = arith.index_cast %c4_i32 : i32 to index
    %c3_157 = arith.constant 3 : index
    %219 = memref.load %arg1[%218, %c3_157] : memref<16x8xi32, #tpu.memory_space<smem>>
    %220 = arith.index_cast %219 : i32 to index
    %c0_158 = arith.constant 0 : index
    %221 = vector.load %arg3[%220, %c0_158] : memref<128x128xf32, #tpu.memory_space<vmem>>, vector<1x128xf32>
    %c3_159 = arith.constant 3 : index
    %c0_160 = arith.constant 0 : index
    %222 = vector.load %arg7[%c3_159, %c0_160] : memref<8x128xf32, #tpu.memory_space<vmem>>, vector<1x128xf32>
    tpu.vector_store %arg7[%c3_159, %c0_160], %221 {strides = array<i32>} : memref<8x128xf32, #tpu.memory_space<vmem>>, vector<1x128xf32>,
    %223 = arith.index_cast %c4_i32 : i32 to index
    %c4_161 = arith.constant 4 : index
    %224 = memref.load %arg1[%223, %c4_161] : memref<16x8xi32, #tpu.memory_space<smem>>
    %225 = arith.index_cast %224 : i32 to index
    %c0_162 = arith.constant 0 : index
    %226 = vector.load %arg3[%225, %c0_162] : memref<128x128xf32, #tpu.memory_space<vmem>>, vector<1x128xf32>
    %c4_163 = arith.constant 4 : index
    %c0_164 = arith.constant 0 : index
    %227 = vector.load %arg7[%c4_163, %c0_164] : memref<8x128xf32, #tpu.memory_space<vmem>>, vector<1x128xf32>
    tpu.vector_store %arg7[%c4_163, %c0_164], %226 {strides = array<i32>} : memref<8x128xf32, #tpu.memory_space<vmem>>, vector<1x128xf32>,
    %228 = arith.index_cast %c4_i32 : i32 to index
    %c5_165 = arith.constant 5 : index
    %229 = memref.load %arg1[%228, %c5_165] : memref<16x8xi32, #tpu.memory_space<smem>>
    %230 = arith.index_cast %229 : i32 to index
    %c0_166 = arith.constant 0 : index
    %231 = vector.load %arg3[%230, %c0_166] : memref<128x128xf32, #tpu.memory_space<vmem>>, vector<1x128xf32>
    %c5_167 = arith.constant 5 : index
    %c0_168 = arith.constant 0 : index
    %232 = vector.load %arg7[%c5_167, %c0_168] : memref<8x128xf32, #tpu.memory_space<vmem>>, vector<1x128xf32>
    tpu.vector_store %arg7[%c5_167, %c0_168], %231 {strides = array<i32>} : memref<8x128xf32, #tpu.memory_space<vmem>>, vector<1x128xf32>,
    %233 = arith.index_cast %c4_i32 : i32 to index
    %c6_169 = arith.constant 6 : index
    %234 = memref.load %arg1[%233, %c6_169] : memref<16x8xi32, #tpu.memory_space<smem>>
    %235 = arith.index_cast %234 : i32 to index
    %c0_170 = arith.constant 0 : index
    %236 = vector.load %arg3[%235, %c0_170] : memref<128x128xf32, #tpu.memory_space<vmem>>, vector<1x128xf32>
    %c6_171 = arith.constant 6 : index
    %c0_172 = arith.constant 0 : index
    %237 = vector.load %arg7[%c6_171, %c0_172] : memref<8x128xf32, #tpu.memory_space<vmem>>, vector<1x128xf32>
    tpu.vector_store %arg7[%c6_171, %c0_172], %236 {strides = array<i32>} : memref<8x128xf32, #tpu.memory_space<vmem>>, vector<1x128xf32>,
    %238 = arith.index_cast %c4_i32 : i32 to index
    %c7_173 = arith.constant 7 : index
    %239 = memref.load %arg1[%238, %c7_173] : memref<16x8xi32, #tpu.memory_space<smem>>
    %240 = arith.index_cast %239 : i32 to index
    %c0_174 = arith.constant 0 : index
    %241 = vector.load %arg3[%240, %c0_174] : memref<128x128xf32, #tpu.memory_space<vmem>>, vector<1x128xf32>
    %c7_175 = arith.constant 7 : index
    %c0_176 = arith.constant 0 : index
    %242 = vector.load %arg7[%c7_175, %c0_176] : memref<8x128xf32, #tpu.memory_space<vmem>>, vector<1x128xf32>
    tpu.vector_store %arg7[%c7_175, %c0_176], %241 {strides = array<i32>} : memref<8x128xf32, #tpu.memory_space<vmem>>, vector<1x128xf32>,
    %c0_177 = arith.constant 0 : index
    %c0_178 = arith.constant 0 : index
    %243 = vector.load %arg7[%c0_177, %c0_178] : memref<8x128xf32, #tpu.memory_space<vmem>>, vector<8x128xf32>
    %cst_179 = arith.constant dense<0.000000e+00> : vector<8x128xf32>
    %244 = tpu.matmul %198, %0, %cst_179 {dimension_numbers = #tpu.dot_dimension_numbers<[1], [0], [0], [1], [0, 0, 1, 1], [], []>} : vector<8x128xf32>, vector<128x128xf32>, vector<8x128xf32> -> vector<8x128xf32>
    %245 = arith.addf %243, %244 : vector<8x128xf32>
    %246 = vector.broadcast %1 : vector<1x128xf32> to vector<8x128xf32>
    %247 = arith.addf %245, %246 : vector<8x128xf32>
    %248 = math.tanh %247 : vector<8x128xf32>
    %249 = arith.index_cast %c4_i32 : i32 to index
    %c0_180 = arith.constant 0 : index
    %c0_181 = arith.constant 0 : index
    %250 = vector.load %arg6[%249, %c0_180, %c0_181] : memref<16x8x128xf32, #tpu.memory_space<vmem>>, vector<1x8x128xf32>
    %251 = vector.shape_cast %250 : vector<1x8x128xf32> to vector<8x128xf32>
    %252 = vector.shape_cast %248 : vector<8x128xf32> to vector<1x8x128xf32>
    tpu.vector_store %arg6[%249, %c0_180, %c0_181], %252 {strides = array<i32>} : memref<16x8x128xf32, #tpu.memory_space<vmem>>, vector<1x8x128xf32>,
    %c5_i32 = arith.constant 5 : i32
    %253 = arith.index_cast %c5_i32 : i32 to index
    %c0_182 = arith.constant 0 : index
    %254 = memref.load %arg1[%253, %c0_182] : memref<16x8xi32, #tpu.memory_space<smem>>
    %255 = arith.index_cast %254 : i32 to index
    %c0_183 = arith.constant 0 : index
    %256 = vector.load %arg3[%255, %c0_183] : memref<128x128xf32, #tpu.memory_space<vmem>>, vector<1x128xf32>
    %c0_184 = arith.constant 0 : index
    %c0_185 = arith.constant 0 : index
    %257 = vector.load %arg7[%c0_184, %c0_185] : memref<8x128xf32, #tpu.memory_space<vmem>>, vector<1x128xf32>
    tpu.vector_store %arg7[%c0_184, %c0_185], %256 {strides = array<i32>} : memref<8x128xf32, #tpu.memory_space<vmem>>, vector<1x128xf32>,
    %258 = arith.index_cast %c5_i32 : i32 to index
    %c1_186 = arith.constant 1 : index
    %259 = memref.load %arg1[%258, %c1_186] : memref<16x8xi32, #tpu.memory_space<smem>>
    %260 = arith.index_cast %259 : i32 to index
    %c0_187 = arith.constant 0 : index
    %261 = vector.load %arg3[%260, %c0_187] : memref<128x128xf32, #tpu.memory_space<vmem>>, vector<1x128xf32>
    %c1_188 = arith.constant 1 : index
    %c0_189 = arith.constant 0 : index
    %262 = vector.load %arg7[%c1_188, %c0_189] : memref<8x128xf32, #tpu.memory_space<vmem>>, vector<1x128xf32>
    tpu.vector_store %arg7[%c1_188, %c0_189], %261 {strides = array<i32>} : memref<8x128xf32, #tpu.memory_space<vmem>>, vector<1x128xf32>,
    %263 = arith.index_cast %c5_i32 : i32 to index
    %c2_190 = arith.constant 2 : index
    %264 = memref.load %arg1[%263, %c2_190] : memref<16x8xi32, #tpu.memory_space<smem>>
    %265 = arith.index_cast %264 : i32 to index
    %c0_191 = arith.constant 0 : index
    %266 = vector.load %arg3[%265, %c0_191] : memref<128x128xf32, #tpu.memory_space<vmem>>, vector<1x128xf32>
    %c2_192 = arith.constant 2 : index
    %c0_193 = arith.constant 0 : index
    %267 = vector.load %arg7[%c2_192, %c0_193] : memref<8x128xf32, #tpu.memory_space<vmem>>, vector<1x128xf32>
    tpu.vector_store %arg7[%c2_192, %c0_193], %266 {strides = array<i32>} : memref<8x128xf32, #tpu.memory_space<vmem>>, vector<1x128xf32>,
    %268 = arith.index_cast %c5_i32 : i32 to index
    %c3_194 = arith.constant 3 : index
    %269 = memref.load %arg1[%268, %c3_194] : memref<16x8xi32, #tpu.memory_space<smem>>
    %270 = arith.index_cast %269 : i32 to index
    %c0_195 = arith.constant 0 : index
    %271 = vector.load %arg3[%270, %c0_195] : memref<128x128xf32, #tpu.memory_space<vmem>>, vector<1x128xf32>
    %c3_196 = arith.constant 3 : index
    %c0_197 = arith.constant 0 : index
    %272 = vector.load %arg7[%c3_196, %c0_197] : memref<8x128xf32, #tpu.memory_space<vmem>>, vector<1x128xf32>
    tpu.vector_store %arg7[%c3_196, %c0_197], %271 {strides = array<i32>} : memref<8x128xf32, #tpu.memory_space<vmem>>, vector<1x128xf32>,
    %273 = arith.index_cast %c5_i32 : i32 to index
    %c4_198 = arith.constant 4 : index
    %274 = memref.load %arg1[%273, %c4_198] : memref<16x8xi32, #tpu.memory_space<smem>>
    %275 = arith.index_cast %274 : i32 to index
    %c0_199 = arith.constant 0 : index
    %276 = vector.load %arg3[%275, %c0_199] : memref<128x128xf32, #tpu.memory_space<vmem>>, vector<1x128xf32>
    %c4_200 = arith.constant 4 : index
    %c0_201 = arith.constant 0 : index
    %277 = vector.load %arg7[%c4_200, %c0_201] : memref<8x128xf32, #tpu.memory_space<vmem>>, vector<1x128xf32>
    tpu.vector_store %arg7[%c4_200, %c0_201], %276 {strides = array<i32>} : memref<8x128xf32, #tpu.memory_space<vmem>>, vector<1x128xf32>,
    %278 = arith.index_cast %c5_i32 : i32 to index
    %c5_202 = arith.constant 5 : index
    %279 = memref.load %arg1[%278, %c5_202] : memref<16x8xi32, #tpu.memory_space<smem>>
    %280 = arith.index_cast %279 : i32 to index
    %c0_203 = arith.constant 0 : index
    %281 = vector.load %arg3[%280, %c0_203] : memref<128x128xf32, #tpu.memory_space<vmem>>, vector<1x128xf32>
    %c5_204 = arith.constant 5 : index
    %c0_205 = arith.constant 0 : index
    %282 = vector.load %arg7[%c5_204, %c0_205] : memref<8x128xf32, #tpu.memory_space<vmem>>, vector<1x128xf32>
    tpu.vector_store %arg7[%c5_204, %c0_205], %281 {strides = array<i32>} : memref<8x128xf32, #tpu.memory_space<vmem>>, vector<1x128xf32>,
    %283 = arith.index_cast %c5_i32 : i32 to index
    %c6_206 = arith.constant 6 : index
    %284 = memref.load %arg1[%283, %c6_206] : memref<16x8xi32, #tpu.memory_space<smem>>
    %285 = arith.index_cast %284 : i32 to index
    %c0_207 = arith.constant 0 : index
    %286 = vector.load %arg3[%285, %c0_207] : memref<128x128xf32, #tpu.memory_space<vmem>>, vector<1x128xf32>
    %c6_208 = arith.constant 6 : index
    %c0_209 = arith.constant 0 : index
    %287 = vector.load %arg7[%c6_208, %c0_209] : memref<8x128xf32, #tpu.memory_space<vmem>>, vector<1x128xf32>
    tpu.vector_store %arg7[%c6_208, %c0_209], %286 {strides = array<i32>} : memref<8x128xf32, #tpu.memory_space<vmem>>, vector<1x128xf32>,
    %288 = arith.index_cast %c5_i32 : i32 to index
    %c7_210 = arith.constant 7 : index
    %289 = memref.load %arg1[%288, %c7_210] : memref<16x8xi32, #tpu.memory_space<smem>>
    %290 = arith.index_cast %289 : i32 to index
    %c0_211 = arith.constant 0 : index
    %291 = vector.load %arg3[%290, %c0_211] : memref<128x128xf32, #tpu.memory_space<vmem>>, vector<1x128xf32>
    %c7_212 = arith.constant 7 : index
    %c0_213 = arith.constant 0 : index
    %292 = vector.load %arg7[%c7_212, %c0_213] : memref<8x128xf32, #tpu.memory_space<vmem>>, vector<1x128xf32>
    tpu.vector_store %arg7[%c7_212, %c0_213], %291 {strides = array<i32>} : memref<8x128xf32, #tpu.memory_space<vmem>>, vector<1x128xf32>,
    %c0_214 = arith.constant 0 : index
    %c0_215 = arith.constant 0 : index
    %293 = vector.load %arg7[%c0_214, %c0_215] : memref<8x128xf32, #tpu.memory_space<vmem>>, vector<8x128xf32>
    %cst_216 = arith.constant dense<0.000000e+00> : vector<8x128xf32>
    %294 = tpu.matmul %248, %0, %cst_216 {dimension_numbers = #tpu.dot_dimension_numbers<[1], [0], [0], [1], [0, 0, 1, 1], [], []>} : vector<8x128xf32>, vector<128x128xf32>, vector<8x128xf32> -> vector<8x128xf32>
    %295 = arith.addf %293, %294 : vector<8x128xf32>
    %296 = vector.broadcast %1 : vector<1x128xf32> to vector<8x128xf32>
    %297 = arith.addf %295, %296 : vector<8x128xf32>
    %298 = math.tanh %297 : vector<8x128xf32>
    %299 = arith.index_cast %c5_i32 : i32 to index
    %c0_217 = arith.constant 0 : index
    %c0_218 = arith.constant 0 : index
    %300 = vector.load %arg6[%299, %c0_217, %c0_218] : memref<16x8x128xf32, #tpu.memory_space<vmem>>, vector<1x8x128xf32>
    %301 = vector.shape_cast %300 : vector<1x8x128xf32> to vector<8x128xf32>
    %302 = vector.shape_cast %298 : vector<8x128xf32> to vector<1x8x128xf32>
    tpu.vector_store %arg6[%299, %c0_217, %c0_218], %302 {strides = array<i32>} : memref<16x8x128xf32, #tpu.memory_space<vmem>>, vector<1x8x128xf32>,
    %c6_i32 = arith.constant 6 : i32
    %303 = arith.index_cast %c6_i32 : i32 to index
    %c0_219 = arith.constant 0 : index
    %304 = memref.load %arg1[%303, %c0_219] : memref<16x8xi32, #tpu.memory_space<smem>>
    %305 = arith.index_cast %304 : i32 to index
    %c0_220 = arith.constant 0 : index
    %306 = vector.load %arg3[%305, %c0_220] : memref<128x128xf32, #tpu.memory_space<vmem>>, vector<1x128xf32>
    %c0_221 = arith.constant 0 : index
    %c0_222 = arith.constant 0 : index
    %307 = vector.load %arg7[%c0_221, %c0_222] : memref<8x128xf32, #tpu.memory_space<vmem>>, vector<1x128xf32>
    tpu.vector_store %arg7[%c0_221, %c0_222], %306 {strides = array<i32>} : memref<8x128xf32, #tpu.memory_space<vmem>>, vector<1x128xf32>,
    %308 = arith.index_cast %c6_i32 : i32 to index
    %c1_223 = arith.constant 1 : index
    %309 = memref.load %arg1[%308, %c1_223] : memref<16x8xi32, #tpu.memory_space<smem>>
    %310 = arith.index_cast %309 : i32 to index
    %c0_224 = arith.constant 0 : index
    %311 = vector.load %arg3[%310, %c0_224] : memref<128x128xf32, #tpu.memory_space<vmem>>, vector<1x128xf32>
    %c1_225 = arith.constant 1 : index
    %c0_226 = arith.constant 0 : index
    %312 = vector.load %arg7[%c1_225, %c0_226] : memref<8x128xf32, #tpu.memory_space<vmem>>, vector<1x128xf32>
    tpu.vector_store %arg7[%c1_225, %c0_226], %311 {strides = array<i32>} : memref<8x128xf32, #tpu.memory_space<vmem>>, vector<1x128xf32>,
    %313 = arith.index_cast %c6_i32 : i32 to index
    %c2_227 = arith.constant 2 : index
    %314 = memref.load %arg1[%313, %c2_227] : memref<16x8xi32, #tpu.memory_space<smem>>
    %315 = arith.index_cast %314 : i32 to index
    %c0_228 = arith.constant 0 : index
    %316 = vector.load %arg3[%315, %c0_228] : memref<128x128xf32, #tpu.memory_space<vmem>>, vector<1x128xf32>
    %c2_229 = arith.constant 2 : index
    %c0_230 = arith.constant 0 : index
    %317 = vector.load %arg7[%c2_229, %c0_230] : memref<8x128xf32, #tpu.memory_space<vmem>>, vector<1x128xf32>
    tpu.vector_store %arg7[%c2_229, %c0_230], %316 {strides = array<i32>} : memref<8x128xf32, #tpu.memory_space<vmem>>, vector<1x128xf32>,
    %318 = arith.index_cast %c6_i32 : i32 to index
    %c3_231 = arith.constant 3 : index
    %319 = memref.load %arg1[%318, %c3_231] : memref<16x8xi32, #tpu.memory_space<smem>>
    %320 = arith.index_cast %319 : i32 to index
    %c0_232 = arith.constant 0 : index
    %321 = vector.load %arg3[%320, %c0_232] : memref<128x128xf32, #tpu.memory_space<vmem>>, vector<1x128xf32>
    %c3_233 = arith.constant 3 : index
    %c0_234 = arith.constant 0 : index
    %322 = vector.load %arg7[%c3_233, %c0_234] : memref<8x128xf32, #tpu.memory_space<vmem>>, vector<1x128xf32>
    tpu.vector_store %arg7[%c3_233, %c0_234], %321 {strides = array<i32>} : memref<8x128xf32, #tpu.memory_space<vmem>>, vector<1x128xf32>,
    %323 = arith.index_cast %c6_i32 : i32 to index
    %c4_235 = arith.constant 4 : index
    %324 = memref.load %arg1[%323, %c4_235] : memref<16x8xi32, #tpu.memory_space<smem>>
    %325 = arith.index_cast %324 : i32 to index
    %c0_236 = arith.constant 0 : index
    %326 = vector.load %arg3[%325, %c0_236] : memref<128x128xf32, #tpu.memory_space<vmem>>, vector<1x128xf32>
    %c4_237 = arith.constant 4 : index
    %c0_238 = arith.constant 0 : index
    %327 = vector.load %arg7[%c4_237, %c0_238] : memref<8x128xf32, #tpu.memory_space<vmem>>, vector<1x128xf32>
    tpu.vector_store %arg7[%c4_237, %c0_238], %326 {strides = array<i32>} : memref<8x128xf32, #tpu.memory_space<vmem>>, vector<1x128xf32>,
    %328 = arith.index_cast %c6_i32 : i32 to index
    %c5_239 = arith.constant 5 : index
    %329 = memref.load %arg1[%328, %c5_239] : memref<16x8xi32, #tpu.memory_space<smem>>
    %330 = arith.index_cast %329 : i32 to index
    %c0_240 = arith.constant 0 : index
    %331 = vector.load %arg3[%330, %c0_240] : memref<128x128xf32, #tpu.memory_space<vmem>>, vector<1x128xf32>
    %c5_241 = arith.constant 5 : index
    %c0_242 = arith.constant 0 : index
    %332 = vector.load %arg7[%c5_241, %c0_242] : memref<8x128xf32, #tpu.memory_space<vmem>>, vector<1x128xf32>
    tpu.vector_store %arg7[%c5_241, %c0_242], %331 {strides = array<i32>} : memref<8x128xf32, #tpu.memory_space<vmem>>, vector<1x128xf32>,
    %333 = arith.index_cast %c6_i32 : i32 to index
    %c6_243 = arith.constant 6 : index
    %334 = memref.load %arg1[%333, %c6_243] : memref<16x8xi32, #tpu.memory_space<smem>>
    %335 = arith.index_cast %334 : i32 to index
    %c0_244 = arith.constant 0 : index
    %336 = vector.load %arg3[%335, %c0_244] : memref<128x128xf32, #tpu.memory_space<vmem>>, vector<1x128xf32>
    %c6_245 = arith.constant 6 : index
    %c0_246 = arith.constant 0 : index
    %337 = vector.load %arg7[%c6_245, %c0_246] : memref<8x128xf32, #tpu.memory_space<vmem>>, vector<1x128xf32>
    tpu.vector_store %arg7[%c6_245, %c0_246], %336 {strides = array<i32>} : memref<8x128xf32, #tpu.memory_space<vmem>>, vector<1x128xf32>,
    %338 = arith.index_cast %c6_i32 : i32 to index
    %c7_247 = arith.constant 7 : index
    %339 = memref.load %arg1[%338, %c7_247] : memref<16x8xi32, #tpu.memory_space<smem>>
    %340 = arith.index_cast %339 : i32 to index
    %c0_248 = arith.constant 0 : index
    %341 = vector.load %arg3[%340, %c0_248] : memref<128x128xf32, #tpu.memory_space<vmem>>, vector<1x128xf32>
    %c7_249 = arith.constant 7 : index
    %c0_250 = arith.constant 0 : index
    %342 = vector.load %arg7[%c7_249, %c0_250] : memref<8x128xf32, #tpu.memory_space<vmem>>, vector<1x128xf32>
    tpu.vector_store %arg7[%c7_249, %c0_250], %341 {strides = array<i32>} : memref<8x128xf32, #tpu.memory_space<vmem>>, vector<1x128xf32>,
    %c0_251 = arith.constant 0 : index
    %c0_252 = arith.constant 0 : index
    %343 = vector.load %arg7[%c0_251, %c0_252] : memref<8x128xf32, #tpu.memory_space<vmem>>, vector<8x128xf32>
    %cst_253 = arith.constant dense<0.000000e+00> : vector<8x128xf32>
    %344 = tpu.matmul %298, %0, %cst_253 {dimension_numbers = #tpu.dot_dimension_numbers<[1], [0], [0], [1], [0, 0, 1, 1], [], []>} : vector<8x128xf32>, vector<128x128xf32>, vector<8x128xf32> -> vector<8x128xf32>
    %345 = arith.addf %343, %344 : vector<8x128xf32>
    %346 = vector.broadcast %1 : vector<1x128xf32> to vector<8x128xf32>
    %347 = arith.addf %345, %346 : vector<8x128xf32>
    %348 = math.tanh %347 : vector<8x128xf32>
    %349 = arith.index_cast %c6_i32 : i32 to index
    %c0_254 = arith.constant 0 : index
    %c0_255 = arith.constant 0 : index
    %350 = vector.load %arg6[%349, %c0_254, %c0_255] : memref<16x8x128xf32, #tpu.memory_space<vmem>>, vector<1x8x128xf32>
    %351 = vector.shape_cast %350 : vector<1x8x128xf32> to vector<8x128xf32>
    %352 = vector.shape_cast %348 : vector<8x128xf32> to vector<1x8x128xf32>
    tpu.vector_store %arg6[%349, %c0_254, %c0_255], %352 {strides = array<i32>} : memref<16x8x128xf32, #tpu.memory_space<vmem>>, vector<1x8x128xf32>,
    %c7_i32 = arith.constant 7 : i32
    %353 = arith.index_cast %c7_i32 : i32 to index
    %c0_256 = arith.constant 0 : index
    %354 = memref.load %arg1[%353, %c0_256] : memref<16x8xi32, #tpu.memory_space<smem>>
    %355 = arith.index_cast %354 : i32 to index
    %c0_257 = arith.constant 0 : index
    %356 = vector.load %arg3[%355, %c0_257] : memref<128x128xf32, #tpu.memory_space<vmem>>, vector<1x128xf32>
    %c0_258 = arith.constant 0 : index
    %c0_259 = arith.constant 0 : index
    %357 = vector.load %arg7[%c0_258, %c0_259] : memref<8x128xf32, #tpu.memory_space<vmem>>, vector<1x128xf32>
    tpu.vector_store %arg7[%c0_258, %c0_259], %356 {strides = array<i32>} : memref<8x128xf32, #tpu.memory_space<vmem>>, vector<1x128xf32>,
    %358 = arith.index_cast %c7_i32 : i32 to index
    %c1_260 = arith.constant 1 : index
    %359 = memref.load %arg1[%358, %c1_260] : memref<16x8xi32, #tpu.memory_space<smem>>
    %360 = arith.index_cast %359 : i32 to index
    %c0_261 = arith.constant 0 : index
    %361 = vector.load %arg3[%360, %c0_261] : memref<128x128xf32, #tpu.memory_space<vmem>>, vector<1x128xf32>
    %c1_262 = arith.constant 1 : index
    %c0_263 = arith.constant 0 : index
    %362 = vector.load %arg7[%c1_262, %c0_263] : memref<8x128xf32, #tpu.memory_space<vmem>>, vector<1x128xf32>
    tpu.vector_store %arg7[%c1_262, %c0_263], %361 {strides = array<i32>} : memref<8x128xf32, #tpu.memory_space<vmem>>, vector<1x128xf32>,
    %363 = arith.index_cast %c7_i32 : i32 to index
    %c2_264 = arith.constant 2 : index
    %364 = memref.load %arg1[%363, %c2_264] : memref<16x8xi32, #tpu.memory_space<smem>>
    %365 = arith.index_cast %364 : i32 to index
    %c0_265 = arith.constant 0 : index
    %366 = vector.load %arg3[%365, %c0_265] : memref<128x128xf32, #tpu.memory_space<vmem>>, vector<1x128xf32>
    %c2_266 = arith.constant 2 : index
    %c0_267 = arith.constant 0 : index
    %367 = vector.load %arg7[%c2_266, %c0_267] : memref<8x128xf32, #tpu.memory_space<vmem>>, vector<1x128xf32>
    tpu.vector_store %arg7[%c2_266, %c0_267], %366 {strides = array<i32>} : memref<8x128xf32, #tpu.memory_space<vmem>>, vector<1x128xf32>,
    %368 = arith.index_cast %c7_i32 : i32 to index
    %c3_268 = arith.constant 3 : index
    %369 = memref.load %arg1[%368, %c3_268] : memref<16x8xi32, #tpu.memory_space<smem>>
    %370 = arith.index_cast %369 : i32 to index
    %c0_269 = arith.constant 0 : index
    %371 = vector.load %arg3[%370, %c0_269] : memref<128x128xf32, #tpu.memory_space<vmem>>, vector<1x128xf32>
    %c3_270 = arith.constant 3 : index
    %c0_271 = arith.constant 0 : index
    %372 = vector.load %arg7[%c3_270, %c0_271] : memref<8x128xf32, #tpu.memory_space<vmem>>, vector<1x128xf32>
    tpu.vector_store %arg7[%c3_270, %c0_271], %371 {strides = array<i32>} : memref<8x128xf32, #tpu.memory_space<vmem>>, vector<1x128xf32>,
    %373 = arith.index_cast %c7_i32 : i32 to index
    %c4_272 = arith.constant 4 : index
    %374 = memref.load %arg1[%373, %c4_272] : memref<16x8xi32, #tpu.memory_space<smem>>
    %375 = arith.index_cast %374 : i32 to index
    %c0_273 = arith.constant 0 : index
    %376 = vector.load %arg3[%375, %c0_273] : memref<128x128xf32, #tpu.memory_space<vmem>>, vector<1x128xf32>
    %c4_274 = arith.constant 4 : index
    %c0_275 = arith.constant 0 : index
    %377 = vector.load %arg7[%c4_274, %c0_275] : memref<8x128xf32, #tpu.memory_space<vmem>>, vector<1x128xf32>
    tpu.vector_store %arg7[%c4_274, %c0_275], %376 {strides = array<i32>} : memref<8x128xf32, #tpu.memory_space<vmem>>, vector<1x128xf32>,
    %378 = arith.index_cast %c7_i32 : i32 to index
    %c5_276 = arith.constant 5 : index
    %379 = memref.load %arg1[%378, %c5_276] : memref<16x8xi32, #tpu.memory_space<smem>>
    %380 = arith.index_cast %379 : i32 to index
    %c0_277 = arith.constant 0 : index
    %381 = vector.load %arg3[%380, %c0_277] : memref<128x128xf32, #tpu.memory_space<vmem>>, vector<1x128xf32>
    %c5_278 = arith.constant 5 : index
    %c0_279 = arith.constant 0 : index
    %382 = vector.load %arg7[%c5_278, %c0_279] : memref<8x128xf32, #tpu.memory_space<vmem>>, vector<1x128xf32>
    tpu.vector_store %arg7[%c5_278, %c0_279], %381 {strides = array<i32>} : memref<8x128xf32, #tpu.memory_space<vmem>>, vector<1x128xf32>,
    %383 = arith.index_cast %c7_i32 : i32 to index
    %c6_280 = arith.constant 6 : index
    %384 = memref.load %arg1[%383, %c6_280] : memref<16x8xi32, #tpu.memory_space<smem>>
    %385 = arith.index_cast %384 : i32 to index
    %c0_281 = arith.constant 0 : index
    %386 = vector.load %arg3[%385, %c0_281] : memref<128x128xf32, #tpu.memory_space<vmem>>, vector<1x128xf32>
    %c6_282 = arith.constant 6 : index
    %c0_283 = arith.constant 0 : index
    %387 = vector.load %arg7[%c6_282, %c0_283] : memref<8x128xf32, #tpu.memory_space<vmem>>, vector<1x128xf32>
    tpu.vector_store %arg7[%c6_282, %c0_283], %386 {strides = array<i32>} : memref<8x128xf32, #tpu.memory_space<vmem>>, vector<1x128xf32>,
    %388 = arith.index_cast %c7_i32 : i32 to index
    %c7_284 = arith.constant 7 : index
    %389 = memref.load %arg1[%388, %c7_284] : memref<16x8xi32, #tpu.memory_space<smem>>
    %390 = arith.index_cast %389 : i32 to index
    %c0_285 = arith.constant 0 : index
    %391 = vector.load %arg3[%390, %c0_285] : memref<128x128xf32, #tpu.memory_space<vmem>>, vector<1x128xf32>
    %c7_286 = arith.constant 7 : index
    %c0_287 = arith.constant 0 : index
    %392 = vector.load %arg7[%c7_286, %c0_287] : memref<8x128xf32, #tpu.memory_space<vmem>>, vector<1x128xf32>
    tpu.vector_store %arg7[%c7_286, %c0_287], %391 {strides = array<i32>} : memref<8x128xf32, #tpu.memory_space<vmem>>, vector<1x128xf32>,
    %c0_288 = arith.constant 0 : index
    %c0_289 = arith.constant 0 : index
    %393 = vector.load %arg7[%c0_288, %c0_289] : memref<8x128xf32, #tpu.memory_space<vmem>>, vector<8x128xf32>
    %cst_290 = arith.constant dense<0.000000e+00> : vector<8x128xf32>
    %394 = tpu.matmul %348, %0, %cst_290 {dimension_numbers = #tpu.dot_dimension_numbers<[1], [0], [0], [1], [0, 0, 1, 1], [], []>} : vector<8x128xf32>, vector<128x128xf32>, vector<8x128xf32> -> vector<8x128xf32>
    %395 = arith.addf %393, %394 : vector<8x128xf32>
    %396 = vector.broadcast %1 : vector<1x128xf32> to vector<8x128xf32>
    %397 = arith.addf %395, %396 : vector<8x128xf32>
    %398 = math.tanh %397 : vector<8x128xf32>
    %399 = arith.index_cast %c7_i32 : i32 to index
    %c0_291 = arith.constant 0 : index
    %c0_292 = arith.constant 0 : index
    %400 = vector.load %arg6[%399, %c0_291, %c0_292] : memref<16x8x128xf32, #tpu.memory_space<vmem>>, vector<1x8x128xf32>
    %401 = vector.shape_cast %400 : vector<1x8x128xf32> to vector<8x128xf32>
    %402 = vector.shape_cast %398 : vector<8x128xf32> to vector<1x8x128xf32>
    tpu.vector_store %arg6[%399, %c0_291, %c0_292], %402 {strides = array<i32>} : memref<16x8x128xf32, #tpu.memory_space<vmem>>, vector<1x8x128xf32>,
    %c8_i32 = arith.constant 8 : i32
    %403 = arith.index_cast %c8_i32 : i32 to index
    %c0_293 = arith.constant 0 : index
    %404 = memref.load %arg1[%403, %c0_293] : memref<16x8xi32, #tpu.memory_space<smem>>
    %405 = arith.index_cast %404 : i32 to index
    %c0_294 = arith.constant 0 : index
    %406 = vector.load %arg3[%405, %c0_294] : memref<128x128xf32, #tpu.memory_space<vmem>>, vector<1x128xf32>
    %c0_295 = arith.constant 0 : index
    %c0_296 = arith.constant 0 : index
    %407 = vector.load %arg7[%c0_295, %c0_296] : memref<8x128xf32, #tpu.memory_space<vmem>>, vector<1x128xf32>
    tpu.vector_store %arg7[%c0_295, %c0_296], %406 {strides = array<i32>} : memref<8x128xf32, #tpu.memory_space<vmem>>, vector<1x128xf32>,
    %408 = arith.index_cast %c8_i32 : i32 to index
    %c1_297 = arith.constant 1 : index
    %409 = memref.load %arg1[%408, %c1_297] : memref<16x8xi32, #tpu.memory_space<smem>>
    %410 = arith.index_cast %409 : i32 to index
    %c0_298 = arith.constant 0 : index
    %411 = vector.load %arg3[%410, %c0_298] : memref<128x128xf32, #tpu.memory_space<vmem>>, vector<1x128xf32>
    %c1_299 = arith.constant 1 : index
    %c0_300 = arith.constant 0 : index
    %412 = vector.load %arg7[%c1_299, %c0_300] : memref<8x128xf32, #tpu.memory_space<vmem>>, vector<1x128xf32>
    tpu.vector_store %arg7[%c1_299, %c0_300], %411 {strides = array<i32>} : memref<8x128xf32, #tpu.memory_space<vmem>>, vector<1x128xf32>,
    %413 = arith.index_cast %c8_i32 : i32 to index
    %c2_301 = arith.constant 2 : index
    %414 = memref.load %arg1[%413, %c2_301] : memref<16x8xi32, #tpu.memory_space<smem>>
    %415 = arith.index_cast %414 : i32 to index
    %c0_302 = arith.constant 0 : index
    %416 = vector.load %arg3[%415, %c0_302] : memref<128x128xf32, #tpu.memory_space<vmem>>, vector<1x128xf32>
    %c2_303 = arith.constant 2 : index
    %c0_304 = arith.constant 0 : index
    %417 = vector.load %arg7[%c2_303, %c0_304] : memref<8x128xf32, #tpu.memory_space<vmem>>, vector<1x128xf32>
    tpu.vector_store %arg7[%c2_303, %c0_304], %416 {strides = array<i32>} : memref<8x128xf32, #tpu.memory_space<vmem>>, vector<1x128xf32>,
    %418 = arith.index_cast %c8_i32 : i32 to index
    %c3_305 = arith.constant 3 : index
    %419 = memref.load %arg1[%418, %c3_305] : memref<16x8xi32, #tpu.memory_space<smem>>
    %420 = arith.index_cast %419 : i32 to index
    %c0_306 = arith.constant 0 : index
    %421 = vector.load %arg3[%420, %c0_306] : memref<128x128xf32, #tpu.memory_space<vmem>>, vector<1x128xf32>
    %c3_307 = arith.constant 3 : index
    %c0_308 = arith.constant 0 : index
    %422 = vector.load %arg7[%c3_307, %c0_308] : memref<8x128xf32, #tpu.memory_space<vmem>>, vector<1x128xf32>
    tpu.vector_store %arg7[%c3_307, %c0_308], %421 {strides = array<i32>} : memref<8x128xf32, #tpu.memory_space<vmem>>, vector<1x128xf32>,
    %423 = arith.index_cast %c8_i32 : i32 to index
    %c4_309 = arith.constant 4 : index
    %424 = memref.load %arg1[%423, %c4_309] : memref<16x8xi32, #tpu.memory_space<smem>>
    %425 = arith.index_cast %424 : i32 to index
    %c0_310 = arith.constant 0 : index
    %426 = vector.load %arg3[%425, %c0_310] : memref<128x128xf32, #tpu.memory_space<vmem>>, vector<1x128xf32>
    %c4_311 = arith.constant 4 : index
    %c0_312 = arith.constant 0 : index
    %427 = vector.load %arg7[%c4_311, %c0_312] : memref<8x128xf32, #tpu.memory_space<vmem>>, vector<1x128xf32>
    tpu.vector_store %arg7[%c4_311, %c0_312], %426 {strides = array<i32>} : memref<8x128xf32, #tpu.memory_space<vmem>>, vector<1x128xf32>,
    %428 = arith.index_cast %c8_i32 : i32 to index
    %c5_313 = arith.constant 5 : index
    %429 = memref.load %arg1[%428, %c5_313] : memref<16x8xi32, #tpu.memory_space<smem>>
    %430 = arith.index_cast %429 : i32 to index
    %c0_314 = arith.constant 0 : index
    %431 = vector.load %arg3[%430, %c0_314] : memref<128x128xf32, #tpu.memory_space<vmem>>, vector<1x128xf32>
    %c5_315 = arith.constant 5 : index
    %c0_316 = arith.constant 0 : index
    %432 = vector.load %arg7[%c5_315, %c0_316] : memref<8x128xf32, #tpu.memory_space<vmem>>, vector<1x128xf32>
    tpu.vector_store %arg7[%c5_315, %c0_316], %431 {strides = array<i32>} : memref<8x128xf32, #tpu.memory_space<vmem>>, vector<1x128xf32>,
    %433 = arith.index_cast %c8_i32 : i32 to index
    %c6_317 = arith.constant 6 : index
    %434 = memref.load %arg1[%433, %c6_317] : memref<16x8xi32, #tpu.memory_space<smem>>
    %435 = arith.index_cast %434 : i32 to index
    %c0_318 = arith.constant 0 : index
    %436 = vector.load %arg3[%435, %c0_318] : memref<128x128xf32, #tpu.memory_space<vmem>>, vector<1x128xf32>
    %c6_319 = arith.constant 6 : index
    %c0_320 = arith.constant 0 : index
    %437 = vector.load %arg7[%c6_319, %c0_320] : memref<8x128xf32, #tpu.memory_space<vmem>>, vector<1x128xf32>
    tpu.vector_store %arg7[%c6_319, %c0_320], %436 {strides = array<i32>} : memref<8x128xf32, #tpu.memory_space<vmem>>, vector<1x128xf32>,
    %438 = arith.index_cast %c8_i32 : i32 to index
    %c7_321 = arith.constant 7 : index
    %439 = memref.load %arg1[%438, %c7_321] : memref<16x8xi32, #tpu.memory_space<smem>>
    %440 = arith.index_cast %439 : i32 to index
    %c0_322 = arith.constant 0 : index
    %441 = vector.load %arg3[%440, %c0_322] : memref<128x128xf32, #tpu.memory_space<vmem>>, vector<1x128xf32>
    %c7_323 = arith.constant 7 : index
    %c0_324 = arith.constant 0 : index
    %442 = vector.load %arg7[%c7_323, %c0_324] : memref<8x128xf32, #tpu.memory_space<vmem>>, vector<1x128xf32>
    tpu.vector_store %arg7[%c7_323, %c0_324], %441 {strides = array<i32>} : memref<8x128xf32, #tpu.memory_space<vmem>>, vector<1x128xf32>,
    %c0_325 = arith.constant 0 : index
    %c0_326 = arith.constant 0 : index
    %443 = vector.load %arg7[%c0_325, %c0_326] : memref<8x128xf32, #tpu.memory_space<vmem>>, vector<8x128xf32>
    %cst_327 = arith.constant dense<0.000000e+00> : vector<8x128xf32>
    %444 = tpu.matmul %398, %0, %cst_327 {dimension_numbers = #tpu.dot_dimension_numbers<[1], [0], [0], [1], [0, 0, 1, 1], [], []>} : vector<8x128xf32>, vector<128x128xf32>, vector<8x128xf32> -> vector<8x128xf32>
    %445 = arith.addf %443, %444 : vector<8x128xf32>
    %446 = vector.broadcast %1 : vector<1x128xf32> to vector<8x128xf32>
    %447 = arith.addf %445, %446 : vector<8x128xf32>
    %448 = math.tanh %447 : vector<8x128xf32>
    %449 = arith.index_cast %c8_i32 : i32 to index
    %c0_328 = arith.constant 0 : index
    %c0_329 = arith.constant 0 : index
    %450 = vector.load %arg6[%449, %c0_328, %c0_329] : memref<16x8x128xf32, #tpu.memory_space<vmem>>, vector<1x8x128xf32>
    %451 = vector.shape_cast %450 : vector<1x8x128xf32> to vector<8x128xf32>
    %452 = vector.shape_cast %448 : vector<8x128xf32> to vector<1x8x128xf32>
    tpu.vector_store %arg6[%449, %c0_328, %c0_329], %452 {strides = array<i32>} : memref<16x8x128xf32, #tpu.memory_space<vmem>>, vector<1x8x128xf32>,
    %c9_i32 = arith.constant 9 : i32
    %453 = arith.index_cast %c9_i32 : i32 to index
    %c0_330 = arith.constant 0 : index
    %454 = memref.load %arg1[%453, %c0_330] : memref<16x8xi32, #tpu.memory_space<smem>>
    %455 = arith.index_cast %454 : i32 to index
    %c0_331 = arith.constant 0 : index
    %456 = vector.load %arg3[%455, %c0_331] : memref<128x128xf32, #tpu.memory_space<vmem>>, vector<1x128xf32>
    %c0_332 = arith.constant 0 : index
    %c0_333 = arith.constant 0 : index
    %457 = vector.load %arg7[%c0_332, %c0_333] : memref<8x128xf32, #tpu.memory_space<vmem>>, vector<1x128xf32>
    tpu.vector_store %arg7[%c0_332, %c0_333], %456 {strides = array<i32>} : memref<8x128xf32, #tpu.memory_space<vmem>>, vector<1x128xf32>,
    %458 = arith.index_cast %c9_i32 : i32 to index
    %c1_334 = arith.constant 1 : index
    %459 = memref.load %arg1[%458, %c1_334] : memref<16x8xi32, #tpu.memory_space<smem>>
    %460 = arith.index_cast %459 : i32 to index
    %c0_335 = arith.constant 0 : index
    %461 = vector.load %arg3[%460, %c0_335] : memref<128x128xf32, #tpu.memory_space<vmem>>, vector<1x128xf32>
    %c1_336 = arith.constant 1 : index
    %c0_337 = arith.constant 0 : index
    %462 = vector.load %arg7[%c1_336, %c0_337] : memref<8x128xf32, #tpu.memory_space<vmem>>, vector<1x128xf32>
    tpu.vector_store %arg7[%c1_336, %c0_337], %461 {strides = array<i32>} : memref<8x128xf32, #tpu.memory_space<vmem>>, vector<1x128xf32>,
    %463 = arith.index_cast %c9_i32 : i32 to index
    %c2_338 = arith.constant 2 : index
    %464 = memref.load %arg1[%463, %c2_338] : memref<16x8xi32, #tpu.memory_space<smem>>
    %465 = arith.index_cast %464 : i32 to index
    %c0_339 = arith.constant 0 : index
    %466 = vector.load %arg3[%465, %c0_339] : memref<128x128xf32, #tpu.memory_space<vmem>>, vector<1x128xf32>
    %c2_340 = arith.constant 2 : index
    %c0_341 = arith.constant 0 : index
    %467 = vector.load %arg7[%c2_340, %c0_341] : memref<8x128xf32, #tpu.memory_space<vmem>>, vector<1x128xf32>
    tpu.vector_store %arg7[%c2_340, %c0_341], %466 {strides = array<i32>} : memref<8x128xf32, #tpu.memory_space<vmem>>, vector<1x128xf32>,
    %468 = arith.index_cast %c9_i32 : i32 to index
    %c3_342 = arith.constant 3 : index
    %469 = memref.load %arg1[%468, %c3_342] : memref<16x8xi32, #tpu.memory_space<smem>>
    %470 = arith.index_cast %469 : i32 to index
    %c0_343 = arith.constant 0 : index
    %471 = vector.load %arg3[%470, %c0_343] : memref<128x128xf32, #tpu.memory_space<vmem>>, vector<1x128xf32>
    %c3_344 = arith.constant 3 : index
    %c0_345 = arith.constant 0 : index
    %472 = vector.load %arg7[%c3_344, %c0_345] : memref<8x128xf32, #tpu.memory_space<vmem>>, vector<1x128xf32>
    tpu.vector_store %arg7[%c3_344, %c0_345], %471 {strides = array<i32>} : memref<8x128xf32, #tpu.memory_space<vmem>>, vector<1x128xf32>,
    %473 = arith.index_cast %c9_i32 : i32 to index
    %c4_346 = arith.constant 4 : index
    %474 = memref.load %arg1[%473, %c4_346] : memref<16x8xi32, #tpu.memory_space<smem>>
    %475 = arith.index_cast %474 : i32 to index
    %c0_347 = arith.constant 0 : index
    %476 = vector.load %arg3[%475, %c0_347] : memref<128x128xf32, #tpu.memory_space<vmem>>, vector<1x128xf32>
    %c4_348 = arith.constant 4 : index
    %c0_349 = arith.constant 0 : index
    %477 = vector.load %arg7[%c4_348, %c0_349] : memref<8x128xf32, #tpu.memory_space<vmem>>, vector<1x128xf32>
    tpu.vector_store %arg7[%c4_348, %c0_349], %476 {strides = array<i32>} : memref<8x128xf32, #tpu.memory_space<vmem>>, vector<1x128xf32>,
    %478 = arith.index_cast %c9_i32 : i32 to index
    %c5_350 = arith.constant 5 : index
    %479 = memref.load %arg1[%478, %c5_350] : memref<16x8xi32, #tpu.memory_space<smem>>
    %480 = arith.index_cast %479 : i32 to index
    %c0_351 = arith.constant 0 : index
    %481 = vector.load %arg3[%480, %c0_351] : memref<128x128xf32, #tpu.memory_space<vmem>>, vector<1x128xf32>
    %c5_352 = arith.constant 5 : index
    %c0_353 = arith.constant 0 : index
    %482 = vector.load %arg7[%c5_352, %c0_353] : memref<8x128xf32, #tpu.memory_space<vmem>>, vector<1x128xf32>
    tpu.vector_store %arg7[%c5_352, %c0_353], %481 {strides = array<i32>} : memref<8x128xf32, #tpu.memory_space<vmem>>, vector<1x128xf32>,
    %483 = arith.index_cast %c9_i32 : i32 to index
    %c6_354 = arith.constant 6 : index
    %484 = memref.load %arg1[%483, %c6_354] : memref<16x8xi32, #tpu.memory_space<smem>>
    %485 = arith.index_cast %484 : i32 to index
    %c0_355 = arith.constant 0 : index
    %486 = vector.load %arg3[%485, %c0_355] : memref<128x128xf32, #tpu.memory_space<vmem>>, vector<1x128xf32>
    %c6_356 = arith.constant 6 : index
    %c0_357 = arith.constant 0 : index
    %487 = vector.load %arg7[%c6_356, %c0_357] : memref<8x128xf32, #tpu.memory_space<vmem>>, vector<1x128xf32>
    tpu.vector_store %arg7[%c6_356, %c0_357], %486 {strides = array<i32>} : memref<8x128xf32, #tpu.memory_space<vmem>>, vector<1x128xf32>,
    %488 = arith.index_cast %c9_i32 : i32 to index
    %c7_358 = arith.constant 7 : index
    %489 = memref.load %arg1[%488, %c7_358] : memref<16x8xi32, #tpu.memory_space<smem>>
    %490 = arith.index_cast %489 : i32 to index
    %c0_359 = arith.constant 0 : index
    %491 = vector.load %arg3[%490, %c0_359] : memref<128x128xf32, #tpu.memory_space<vmem>>, vector<1x128xf32>
    %c7_360 = arith.constant 7 : index
    %c0_361 = arith.constant 0 : index
    %492 = vector.load %arg7[%c7_360, %c0_361] : memref<8x128xf32, #tpu.memory_space<vmem>>, vector<1x128xf32>
    tpu.vector_store %arg7[%c7_360, %c0_361], %491 {strides = array<i32>} : memref<8x128xf32, #tpu.memory_space<vmem>>, vector<1x128xf32>,
    %c0_362 = arith.constant 0 : index
    %c0_363 = arith.constant 0 : index
    %493 = vector.load %arg7[%c0_362, %c0_363] : memref<8x128xf32, #tpu.memory_space<vmem>>, vector<8x128xf32>
    %cst_364 = arith.constant dense<0.000000e+00> : vector<8x128xf32>
    %494 = tpu.matmul %448, %0, %cst_364 {dimension_numbers = #tpu.dot_dimension_numbers<[1], [0], [0], [1], [0, 0, 1, 1], [], []>} : vector<8x128xf32>, vector<128x128xf32>, vector<8x128xf32> -> vector<8x128xf32>
    %495 = arith.addf %493, %494 : vector<8x128xf32>
    %496 = vector.broadcast %1 : vector<1x128xf32> to vector<8x128xf32>
    %497 = arith.addf %495, %496 : vector<8x128xf32>
    %498 = math.tanh %497 : vector<8x128xf32>
    %499 = arith.index_cast %c9_i32 : i32 to index
    %c0_365 = arith.constant 0 : index
    %c0_366 = arith.constant 0 : index
    %500 = vector.load %arg6[%499, %c0_365, %c0_366] : memref<16x8x128xf32, #tpu.memory_space<vmem>>, vector<1x8x128xf32>
    %501 = vector.shape_cast %500 : vector<1x8x128xf32> to vector<8x128xf32>
    %502 = vector.shape_cast %498 : vector<8x128xf32> to vector<1x8x128xf32>
    tpu.vector_store %arg6[%499, %c0_365, %c0_366], %502 {strides = array<i32>} : memref<16x8x128xf32, #tpu.memory_space<vmem>>, vector<1x8x128xf32>,
    %c10_i32 = arith.constant 10 : i32
    %503 = arith.index_cast %c10_i32 : i32 to index
    %c0_367 = arith.constant 0 : index
    %504 = memref.load %arg1[%503, %c0_367] : memref<16x8xi32, #tpu.memory_space<smem>>
    %505 = arith.index_cast %504 : i32 to index
    %c0_368 = arith.constant 0 : index
    %506 = vector.load %arg3[%505, %c0_368] : memref<128x128xf32, #tpu.memory_space<vmem>>, vector<1x128xf32>
    %c0_369 = arith.constant 0 : index
    %c0_370 = arith.constant 0 : index
    %507 = vector.load %arg7[%c0_369, %c0_370] : memref<8x128xf32, #tpu.memory_space<vmem>>, vector<1x128xf32>
    tpu.vector_store %arg7[%c0_369, %c0_370], %506 {strides = array<i32>} : memref<8x128xf32, #tpu.memory_space<vmem>>, vector<1x128xf32>,
    %508 = arith.index_cast %c10_i32 : i32 to index
    %c1_371 = arith.constant 1 : index
    %509 = memref.load %arg1[%508, %c1_371] : memref<16x8xi32, #tpu.memory_space<smem>>
    %510 = arith.index_cast %509 : i32 to index
    %c0_372 = arith.constant 0 : index
    %511 = vector.load %arg3[%510, %c0_372] : memref<128x128xf32, #tpu.memory_space<vmem>>, vector<1x128xf32>
    %c1_373 = arith.constant 1 : index
    %c0_374 = arith.constant 0 : index
    %512 = vector.load %arg7[%c1_373, %c0_374] : memref<8x128xf32, #tpu.memory_space<vmem>>, vector<1x128xf32>
    tpu.vector_store %arg7[%c1_373, %c0_374], %511 {strides = array<i32>} : memref<8x128xf32, #tpu.memory_space<vmem>>, vector<1x128xf32>,
    %513 = arith.index_cast %c10_i32 : i32 to index
    %c2_375 = arith.constant 2 : index
    %514 = memref.load %arg1[%513, %c2_375] : memref<16x8xi32, #tpu.memory_space<smem>>
    %515 = arith.index_cast %514 : i32 to index
    %c0_376 = arith.constant 0 : index
    %516 = vector.load %arg3[%515, %c0_376] : memref<128x128xf32, #tpu.memory_space<vmem>>, vector<1x128xf32>
    %c2_377 = arith.constant 2 : index
    %c0_378 = arith.constant 0 : index
    %517 = vector.load %arg7[%c2_377, %c0_378] : memref<8x128xf32, #tpu.memory_space<vmem>>, vector<1x128xf32>
    tpu.vector_store %arg7[%c2_377, %c0_378], %516 {strides = array<i32>} : memref<8x128xf32, #tpu.memory_space<vmem>>, vector<1x128xf32>,
    %518 = arith.index_cast %c10_i32 : i32 to index
    %c3_379 = arith.constant 3 : index
    %519 = memref.load %arg1[%518, %c3_379] : memref<16x8xi32, #tpu.memory_space<smem>>
    %520 = arith.index_cast %519 : i32 to index
    %c0_380 = arith.constant 0 : index
    %521 = vector.load %arg3[%520, %c0_380] : memref<128x128xf32, #tpu.memory_space<vmem>>, vector<1x128xf32>
    %c3_381 = arith.constant 3 : index
    %c0_382 = arith.constant 0 : index
    %522 = vector.load %arg7[%c3_381, %c0_382] : memref<8x128xf32, #tpu.memory_space<vmem>>, vector<1x128xf32>
    tpu.vector_store %arg7[%c3_381, %c0_382], %521 {strides = array<i32>} : memref<8x128xf32, #tpu.memory_space<vmem>>, vector<1x128xf32>,
    %523 = arith.index_cast %c10_i32 : i32 to index
    %c4_383 = arith.constant 4 : index
    %524 = memref.load %arg1[%523, %c4_383] : memref<16x8xi32, #tpu.memory_space<smem>>
    %525 = arith.index_cast %524 : i32 to index
    %c0_384 = arith.constant 0 : index
    %526 = vector.load %arg3[%525, %c0_384] : memref<128x128xf32, #tpu.memory_space<vmem>>, vector<1x128xf32>
    %c4_385 = arith.constant 4 : index
    %c0_386 = arith.constant 0 : index
    %527 = vector.load %arg7[%c4_385, %c0_386] : memref<8x128xf32, #tpu.memory_space<vmem>>, vector<1x128xf32>
    tpu.vector_store %arg7[%c4_385, %c0_386], %526 {strides = array<i32>} : memref<8x128xf32, #tpu.memory_space<vmem>>, vector<1x128xf32>,
    %528 = arith.index_cast %c10_i32 : i32 to index
    %c5_387 = arith.constant 5 : index
    %529 = memref.load %arg1[%528, %c5_387] : memref<16x8xi32, #tpu.memory_space<smem>>
    %530 = arith.index_cast %529 : i32 to index
    %c0_388 = arith.constant 0 : index
    %531 = vector.load %arg3[%530, %c0_388] : memref<128x128xf32, #tpu.memory_space<vmem>>, vector<1x128xf32>
    %c5_389 = arith.constant 5 : index
    %c0_390 = arith.constant 0 : index
    %532 = vector.load %arg7[%c5_389, %c0_390] : memref<8x128xf32, #tpu.memory_space<vmem>>, vector<1x128xf32>
    tpu.vector_store %arg7[%c5_389, %c0_390], %531 {strides = array<i32>} : memref<8x128xf32, #tpu.memory_space<vmem>>, vector<1x128xf32>,
    %533 = arith.index_cast %c10_i32 : i32 to index
    %c6_391 = arith.constant 6 : index
    %534 = memref.load %arg1[%533, %c6_391] : memref<16x8xi32, #tpu.memory_space<smem>>
    %535 = arith.index_cast %534 : i32 to index
    %c0_392 = arith.constant 0 : index
    %536 = vector.load %arg3[%535, %c0_392] : memref<128x128xf32, #tpu.memory_space<vmem>>, vector<1x128xf32>
    %c6_393 = arith.constant 6 : index
    %c0_394 = arith.constant 0 : index
    %537 = vector.load %arg7[%c6_393, %c0_394] : memref<8x128xf32, #tpu.memory_space<vmem>>, vector<1x128xf32>
    tpu.vector_store %arg7[%c6_393, %c0_394], %536 {strides = array<i32>} : memref<8x128xf32, #tpu.memory_space<vmem>>, vector<1x128xf32>,
    %538 = arith.index_cast %c10_i32 : i32 to index
    %c7_395 = arith.constant 7 : index
    %539 = memref.load %arg1[%538, %c7_395] : memref<16x8xi32, #tpu.memory_space<smem>>
    %540 = arith.index_cast %539 : i32 to index
    %c0_396 = arith.constant 0 : index
    %541 = vector.load %arg3[%540, %c0_396] : memref<128x128xf32, #tpu.memory_space<vmem>>, vector<1x128xf32>
    %c7_397 = arith.constant 7 : index
    %c0_398 = arith.constant 0 : index
    %542 = vector.load %arg7[%c7_397, %c0_398] : memref<8x128xf32, #tpu.memory_space<vmem>>, vector<1x128xf32>
    tpu.vector_store %arg7[%c7_397, %c0_398], %541 {strides = array<i32>} : memref<8x128xf32, #tpu.memory_space<vmem>>, vector<1x128xf32>,
    %c0_399 = arith.constant 0 : index
    %c0_400 = arith.constant 0 : index
    %543 = vector.load %arg7[%c0_399, %c0_400] : memref<8x128xf32, #tpu.memory_space<vmem>>, vector<8x128xf32>
    %cst_401 = arith.constant dense<0.000000e+00> : vector<8x128xf32>
    %544 = tpu.matmul %498, %0, %cst_401 {dimension_numbers = #tpu.dot_dimension_numbers<[1], [0], [0], [1], [0, 0, 1, 1], [], []>} : vector<8x128xf32>, vector<128x128xf32>, vector<8x128xf32> -> vector<8x128xf32>
    %545 = arith.addf %543, %544 : vector<8x128xf32>
    %546 = vector.broadcast %1 : vector<1x128xf32> to vector<8x128xf32>
    %547 = arith.addf %545, %546 : vector<8x128xf32>
    %548 = math.tanh %547 : vector<8x128xf32>
    %549 = arith.index_cast %c10_i32 : i32 to index
    %c0_402 = arith.constant 0 : index
    %c0_403 = arith.constant 0 : index
    %550 = vector.load %arg6[%549, %c0_402, %c0_403] : memref<16x8x128xf32, #tpu.memory_space<vmem>>, vector<1x8x128xf32>
    %551 = vector.shape_cast %550 : vector<1x8x128xf32> to vector<8x128xf32>
    %552 = vector.shape_cast %548 : vector<8x128xf32> to vector<1x8x128xf32>
    tpu.vector_store %arg6[%549, %c0_402, %c0_403], %552 {strides = array<i32>} : memref<16x8x128xf32, #tpu.memory_space<vmem>>, vector<1x8x128xf32>,
    %c11_i32 = arith.constant 11 : i32
    %553 = arith.index_cast %c11_i32 : i32 to index
    %c0_404 = arith.constant 0 : index
    %554 = memref.load %arg1[%553, %c0_404] : memref<16x8xi32, #tpu.memory_space<smem>>
    %555 = arith.index_cast %554 : i32 to index
    %c0_405 = arith.constant 0 : index
    %556 = vector.load %arg3[%555, %c0_405] : memref<128x128xf32, #tpu.memory_space<vmem>>, vector<1x128xf32>
    %c0_406 = arith.constant 0 : index
    %c0_407 = arith.constant 0 : index
    %557 = vector.load %arg7[%c0_406, %c0_407] : memref<8x128xf32, #tpu.memory_space<vmem>>, vector<1x128xf32>
    tpu.vector_store %arg7[%c0_406, %c0_407], %556 {strides = array<i32>} : memref<8x128xf32, #tpu.memory_space<vmem>>, vector<1x128xf32>,
    %558 = arith.index_cast %c11_i32 : i32 to index
    %c1_408 = arith.constant 1 : index
    %559 = memref.load %arg1[%558, %c1_408] : memref<16x8xi32, #tpu.memory_space<smem>>
    %560 = arith.index_cast %559 : i32 to index
    %c0_409 = arith.constant 0 : index
    %561 = vector.load %arg3[%560, %c0_409] : memref<128x128xf32, #tpu.memory_space<vmem>>, vector<1x128xf32>
    %c1_410 = arith.constant 1 : index
    %c0_411 = arith.constant 0 : index
    %562 = vector.load %arg7[%c1_410, %c0_411] : memref<8x128xf32, #tpu.memory_space<vmem>>, vector<1x128xf32>
    tpu.vector_store %arg7[%c1_410, %c0_411], %561 {strides = array<i32>} : memref<8x128xf32, #tpu.memory_space<vmem>>, vector<1x128xf32>,
    %563 = arith.index_cast %c11_i32 : i32 to index
    %c2_412 = arith.constant 2 : index
    %564 = memref.load %arg1[%563, %c2_412] : memref<16x8xi32, #tpu.memory_space<smem>>
    %565 = arith.index_cast %564 : i32 to index
    %c0_413 = arith.constant 0 : index
    %566 = vector.load %arg3[%565, %c0_413] : memref<128x128xf32, #tpu.memory_space<vmem>>, vector<1x128xf32>
    %c2_414 = arith.constant 2 : index
    %c0_415 = arith.constant 0 : index
    %567 = vector.load %arg7[%c2_414, %c0_415] : memref<8x128xf32, #tpu.memory_space<vmem>>, vector<1x128xf32>
    tpu.vector_store %arg7[%c2_414, %c0_415], %566 {strides = array<i32>} : memref<8x128xf32, #tpu.memory_space<vmem>>, vector<1x128xf32>,
    %568 = arith.index_cast %c11_i32 : i32 to index
    %c3_416 = arith.constant 3 : index
    %569 = memref.load %arg1[%568, %c3_416] : memref<16x8xi32, #tpu.memory_space<smem>>
    %570 = arith.index_cast %569 : i32 to index
    %c0_417 = arith.constant 0 : index
    %571 = vector.load %arg3[%570, %c0_417] : memref<128x128xf32, #tpu.memory_space<vmem>>, vector<1x128xf32>
    %c3_418 = arith.constant 3 : index
    %c0_419 = arith.constant 0 : index
    %572 = vector.load %arg7[%c3_418, %c0_419] : memref<8x128xf32, #tpu.memory_space<vmem>>, vector<1x128xf32>
    tpu.vector_store %arg7[%c3_418, %c0_419], %571 {strides = array<i32>} : memref<8x128xf32, #tpu.memory_space<vmem>>, vector<1x128xf32>,
    %573 = arith.index_cast %c11_i32 : i32 to index
    %c4_420 = arith.constant 4 : index
    %574 = memref.load %arg1[%573, %c4_420] : memref<16x8xi32, #tpu.memory_space<smem>>
    %575 = arith.index_cast %574 : i32 to index
    %c0_421 = arith.constant 0 : index
    %576 = vector.load %arg3[%575, %c0_421] : memref<128x128xf32, #tpu.memory_space<vmem>>, vector<1x128xf32>
    %c4_422 = arith.constant 4 : index
    %c0_423 = arith.constant 0 : index
    %577 = vector.load %arg7[%c4_422, %c0_423] : memref<8x128xf32, #tpu.memory_space<vmem>>, vector<1x128xf32>
    tpu.vector_store %arg7[%c4_422, %c0_423], %576 {strides = array<i32>} : memref<8x128xf32, #tpu.memory_space<vmem>>, vector<1x128xf32>,
    %578 = arith.index_cast %c11_i32 : i32 to index
    %c5_424 = arith.constant 5 : index
    %579 = memref.load %arg1[%578, %c5_424] : memref<16x8xi32, #tpu.memory_space<smem>>
    %580 = arith.index_cast %579 : i32 to index
    %c0_425 = arith.constant 0 : index
    %581 = vector.load %arg3[%580, %c0_425] : memref<128x128xf32, #tpu.memory_space<vmem>>, vector<1x128xf32>
    %c5_426 = arith.constant 5 : index
    %c0_427 = arith.constant 0 : index
    %582 = vector.load %arg7[%c5_426, %c0_427] : memref<8x128xf32, #tpu.memory_space<vmem>>, vector<1x128xf32>
    tpu.vector_store %arg7[%c5_426, %c0_427], %581 {strides = array<i32>} : memref<8x128xf32, #tpu.memory_space<vmem>>, vector<1x128xf32>,
    %583 = arith.index_cast %c11_i32 : i32 to index
    %c6_428 = arith.constant 6 : index
    %584 = memref.load %arg1[%583, %c6_428] : memref<16x8xi32, #tpu.memory_space<smem>>
    %585 = arith.index_cast %584 : i32 to index
    %c0_429 = arith.constant 0 : index
    %586 = vector.load %arg3[%585, %c0_429] : memref<128x128xf32, #tpu.memory_space<vmem>>, vector<1x128xf32>
    %c6_430 = arith.constant 6 : index
    %c0_431 = arith.constant 0 : index
    %587 = vector.load %arg7[%c6_430, %c0_431] : memref<8x128xf32, #tpu.memory_space<vmem>>, vector<1x128xf32>
    tpu.vector_store %arg7[%c6_430, %c0_431], %586 {strides = array<i32>} : memref<8x128xf32, #tpu.memory_space<vmem>>, vector<1x128xf32>,
    %588 = arith.index_cast %c11_i32 : i32 to index
    %c7_432 = arith.constant 7 : index
    %589 = memref.load %arg1[%588, %c7_432] : memref<16x8xi32, #tpu.memory_space<smem>>
    %590 = arith.index_cast %589 : i32 to index
    %c0_433 = arith.constant 0 : index
    %591 = vector.load %arg3[%590, %c0_433] : memref<128x128xf32, #tpu.memory_space<vmem>>, vector<1x128xf32>
    %c7_434 = arith.constant 7 : index
    %c0_435 = arith.constant 0 : index
    %592 = vector.load %arg7[%c7_434, %c0_435] : memref<8x128xf32, #tpu.memory_space<vmem>>, vector<1x128xf32>
    tpu.vector_store %arg7[%c7_434, %c0_435], %591 {strides = array<i32>} : memref<8x128xf32, #tpu.memory_space<vmem>>, vector<1x128xf32>,
    %c0_436 = arith.constant 0 : index
    %c0_437 = arith.constant 0 : index
    %593 = vector.load %arg7[%c0_436, %c0_437] : memref<8x128xf32, #tpu.memory_space<vmem>>, vector<8x128xf32>
    %cst_438 = arith.constant dense<0.000000e+00> : vector<8x128xf32>
    %594 = tpu.matmul %548, %0, %cst_438 {dimension_numbers = #tpu.dot_dimension_numbers<[1], [0], [0], [1], [0, 0, 1, 1], [], []>} : vector<8x128xf32>, vector<128x128xf32>, vector<8x128xf32> -> vector<8x128xf32>
    %595 = arith.addf %593, %594 : vector<8x128xf32>
    %596 = vector.broadcast %1 : vector<1x128xf32> to vector<8x128xf32>
    %597 = arith.addf %595, %596 : vector<8x128xf32>
    %598 = math.tanh %597 : vector<8x128xf32>
    %599 = arith.index_cast %c11_i32 : i32 to index
    %c0_439 = arith.constant 0 : index
    %c0_440 = arith.constant 0 : index
    %600 = vector.load %arg6[%599, %c0_439, %c0_440] : memref<16x8x128xf32, #tpu.memory_space<vmem>>, vector<1x8x128xf32>
    %601 = vector.shape_cast %600 : vector<1x8x128xf32> to vector<8x128xf32>
    %602 = vector.shape_cast %598 : vector<8x128xf32> to vector<1x8x128xf32>
    tpu.vector_store %arg6[%599, %c0_439, %c0_440], %602 {strides = array<i32>} : memref<16x8x128xf32, #tpu.memory_space<vmem>>, vector<1x8x128xf32>,
    %c12_i32 = arith.constant 12 : i32
    %603 = arith.index_cast %c12_i32 : i32 to index
    %c0_441 = arith.constant 0 : index
    %604 = memref.load %arg1[%603, %c0_441] : memref<16x8xi32, #tpu.memory_space<smem>>
    %605 = arith.index_cast %604 : i32 to index
    %c0_442 = arith.constant 0 : index
    %606 = vector.load %arg3[%605, %c0_442] : memref<128x128xf32, #tpu.memory_space<vmem>>, vector<1x128xf32>
    %c0_443 = arith.constant 0 : index
    %c0_444 = arith.constant 0 : index
    %607 = vector.load %arg7[%c0_443, %c0_444] : memref<8x128xf32, #tpu.memory_space<vmem>>, vector<1x128xf32>
    tpu.vector_store %arg7[%c0_443, %c0_444], %606 {strides = array<i32>} : memref<8x128xf32, #tpu.memory_space<vmem>>, vector<1x128xf32>,
    %608 = arith.index_cast %c12_i32 : i32 to index
    %c1_445 = arith.constant 1 : index
    %609 = memref.load %arg1[%608, %c1_445] : memref<16x8xi32, #tpu.memory_space<smem>>
    %610 = arith.index_cast %609 : i32 to index
    %c0_446 = arith.constant 0 : index
    %611 = vector.load %arg3[%610, %c0_446] : memref<128x128xf32, #tpu.memory_space<vmem>>, vector<1x128xf32>
    %c1_447 = arith.constant 1 : index
    %c0_448 = arith.constant 0 : index
    %612 = vector.load %arg7[%c1_447, %c0_448] : memref<8x128xf32, #tpu.memory_space<vmem>>, vector<1x128xf32>
    tpu.vector_store %arg7[%c1_447, %c0_448], %611 {strides = array<i32>} : memref<8x128xf32, #tpu.memory_space<vmem>>, vector<1x128xf32>,
    %613 = arith.index_cast %c12_i32 : i32 to index
    %c2_449 = arith.constant 2 : index
    %614 = memref.load %arg1[%613, %c2_449] : memref<16x8xi32, #tpu.memory_space<smem>>
    %615 = arith.index_cast %614 : i32 to index
    %c0_450 = arith.constant 0 : index
    %616 = vector.load %arg3[%615, %c0_450] : memref<128x128xf32, #tpu.memory_space<vmem>>, vector<1x128xf32>
    %c2_451 = arith.constant 2 : index
    %c0_452 = arith.constant 0 : index
    %617 = vector.load %arg7[%c2_451, %c0_452] : memref<8x128xf32, #tpu.memory_space<vmem>>, vector<1x128xf32>
    tpu.vector_store %arg7[%c2_451, %c0_452], %616 {strides = array<i32>} : memref<8x128xf32, #tpu.memory_space<vmem>>, vector<1x128xf32>,
    %618 = arith.index_cast %c12_i32 : i32 to index
    %c3_453 = arith.constant 3 : index
    %619 = memref.load %arg1[%618, %c3_453] : memref<16x8xi32, #tpu.memory_space<smem>>
    %620 = arith.index_cast %619 : i32 to index
    %c0_454 = arith.constant 0 : index
    %621 = vector.load %arg3[%620, %c0_454] : memref<128x128xf32, #tpu.memory_space<vmem>>, vector<1x128xf32>
    %c3_455 = arith.constant 3 : index
    %c0_456 = arith.constant 0 : index
    %622 = vector.load %arg7[%c3_455, %c0_456] : memref<8x128xf32, #tpu.memory_space<vmem>>, vector<1x128xf32>
    tpu.vector_store %arg7[%c3_455, %c0_456], %621 {strides = array<i32>} : memref<8x128xf32, #tpu.memory_space<vmem>>, vector<1x128xf32>,
    %623 = arith.index_cast %c12_i32 : i32 to index
    %c4_457 = arith.constant 4 : index
    %624 = memref.load %arg1[%623, %c4_457] : memref<16x8xi32, #tpu.memory_space<smem>>
    %625 = arith.index_cast %624 : i32 to index
    %c0_458 = arith.constant 0 : index
    %626 = vector.load %arg3[%625, %c0_458] : memref<128x128xf32, #tpu.memory_space<vmem>>, vector<1x128xf32>
    %c4_459 = arith.constant 4 : index
    %c0_460 = arith.constant 0 : index
    %627 = vector.load %arg7[%c4_459, %c0_460] : memref<8x128xf32, #tpu.memory_space<vmem>>, vector<1x128xf32>
    tpu.vector_store %arg7[%c4_459, %c0_460], %626 {strides = array<i32>} : memref<8x128xf32, #tpu.memory_space<vmem>>, vector<1x128xf32>,
    %628 = arith.index_cast %c12_i32 : i32 to index
    %c5_461 = arith.constant 5 : index
    %629 = memref.load %arg1[%628, %c5_461] : memref<16x8xi32, #tpu.memory_space<smem>>
    %630 = arith.index_cast %629 : i32 to index
    %c0_462 = arith.constant 0 : index
    %631 = vector.load %arg3[%630, %c0_462] : memref<128x128xf32, #tpu.memory_space<vmem>>, vector<1x128xf32>
    %c5_463 = arith.constant 5 : index
    %c0_464 = arith.constant 0 : index
    %632 = vector.load %arg7[%c5_463, %c0_464] : memref<8x128xf32, #tpu.memory_space<vmem>>, vector<1x128xf32>
    tpu.vector_store %arg7[%c5_463, %c0_464], %631 {strides = array<i32>} : memref<8x128xf32, #tpu.memory_space<vmem>>, vector<1x128xf32>,
    %633 = arith.index_cast %c12_i32 : i32 to index
    %c6_465 = arith.constant 6 : index
    %634 = memref.load %arg1[%633, %c6_465] : memref<16x8xi32, #tpu.memory_space<smem>>
    %635 = arith.index_cast %634 : i32 to index
    %c0_466 = arith.constant 0 : index
    %636 = vector.load %arg3[%635, %c0_466] : memref<128x128xf32, #tpu.memory_space<vmem>>, vector<1x128xf32>
    %c6_467 = arith.constant 6 : index
    %c0_468 = arith.constant 0 : index
    %637 = vector.load %arg7[%c6_467, %c0_468] : memref<8x128xf32, #tpu.memory_space<vmem>>, vector<1x128xf32>
    tpu.vector_store %arg7[%c6_467, %c0_468], %636 {strides = array<i32>} : memref<8x128xf32, #tpu.memory_space<vmem>>, vector<1x128xf32>,
    %638 = arith.index_cast %c12_i32 : i32 to index
    %c7_469 = arith.constant 7 : index
    %639 = memref.load %arg1[%638, %c7_469] : memref<16x8xi32, #tpu.memory_space<smem>>
    %640 = arith.index_cast %639 : i32 to index
    %c0_470 = arith.constant 0 : index
    %641 = vector.load %arg3[%640, %c0_470] : memref<128x128xf32, #tpu.memory_space<vmem>>, vector<1x128xf32>
    %c7_471 = arith.constant 7 : index
    %c0_472 = arith.constant 0 : index
    %642 = vector.load %arg7[%c7_471, %c0_472] : memref<8x128xf32, #tpu.memory_space<vmem>>, vector<1x128xf32>
    tpu.vector_store %arg7[%c7_471, %c0_472], %641 {strides = array<i32>} : memref<8x128xf32, #tpu.memory_space<vmem>>, vector<1x128xf32>,
    %c0_473 = arith.constant 0 : index
    %c0_474 = arith.constant 0 : index
    %643 = vector.load %arg7[%c0_473, %c0_474] : memref<8x128xf32, #tpu.memory_space<vmem>>, vector<8x128xf32>
    %cst_475 = arith.constant dense<0.000000e+00> : vector<8x128xf32>
    %644 = tpu.matmul %598, %0, %cst_475 {dimension_numbers = #tpu.dot_dimension_numbers<[1], [0], [0], [1], [0, 0, 1, 1], [], []>} : vector<8x128xf32>, vector<128x128xf32>, vector<8x128xf32> -> vector<8x128xf32>
    %645 = arith.addf %643, %644 : vector<8x128xf32>
    %646 = vector.broadcast %1 : vector<1x128xf32> to vector<8x128xf32>
    %647 = arith.addf %645, %646 : vector<8x128xf32>
    %648 = math.tanh %647 : vector<8x128xf32>
    %649 = arith.index_cast %c12_i32 : i32 to index
    %c0_476 = arith.constant 0 : index
    %c0_477 = arith.constant 0 : index
    %650 = vector.load %arg6[%649, %c0_476, %c0_477] : memref<16x8x128xf32, #tpu.memory_space<vmem>>, vector<1x8x128xf32>
    %651 = vector.shape_cast %650 : vector<1x8x128xf32> to vector<8x128xf32>
    %652 = vector.shape_cast %648 : vector<8x128xf32> to vector<1x8x128xf32>
    tpu.vector_store %arg6[%649, %c0_476, %c0_477], %652 {strides = array<i32>} : memref<16x8x128xf32, #tpu.memory_space<vmem>>, vector<1x8x128xf32>,
    %c13_i32 = arith.constant 13 : i32
    %653 = arith.index_cast %c13_i32 : i32 to index
    %c0_478 = arith.constant 0 : index
    %654 = memref.load %arg1[%653, %c0_478] : memref<16x8xi32, #tpu.memory_space<smem>>
    %655 = arith.index_cast %654 : i32 to index
    %c0_479 = arith.constant 0 : index
    %656 = vector.load %arg3[%655, %c0_479] : memref<128x128xf32, #tpu.memory_space<vmem>>, vector<1x128xf32>
    %c0_480 = arith.constant 0 : index
    %c0_481 = arith.constant 0 : index
    %657 = vector.load %arg7[%c0_480, %c0_481] : memref<8x128xf32, #tpu.memory_space<vmem>>, vector<1x128xf32>
    tpu.vector_store %arg7[%c0_480, %c0_481], %656 {strides = array<i32>} : memref<8x128xf32, #tpu.memory_space<vmem>>, vector<1x128xf32>,
    %658 = arith.index_cast %c13_i32 : i32 to index
    %c1_482 = arith.constant 1 : index
    %659 = memref.load %arg1[%658, %c1_482] : memref<16x8xi32, #tpu.memory_space<smem>>
    %660 = arith.index_cast %659 : i32 to index
    %c0_483 = arith.constant 0 : index
    %661 = vector.load %arg3[%660, %c0_483] : memref<128x128xf32, #tpu.memory_space<vmem>>, vector<1x128xf32>
    %c1_484 = arith.constant 1 : index
    %c0_485 = arith.constant 0 : index
    %662 = vector.load %arg7[%c1_484, %c0_485] : memref<8x128xf32, #tpu.memory_space<vmem>>, vector<1x128xf32>
    tpu.vector_store %arg7[%c1_484, %c0_485], %661 {strides = array<i32>} : memref<8x128xf32, #tpu.memory_space<vmem>>, vector<1x128xf32>,
    %663 = arith.index_cast %c13_i32 : i32 to index
    %c2_486 = arith.constant 2 : index
    %664 = memref.load %arg1[%663, %c2_486] : memref<16x8xi32, #tpu.memory_space<smem>>
    %665 = arith.index_cast %664 : i32 to index
    %c0_487 = arith.constant 0 : index
    %666 = vector.load %arg3[%665, %c0_487] : memref<128x128xf32, #tpu.memory_space<vmem>>, vector<1x128xf32>
    %c2_488 = arith.constant 2 : index
    %c0_489 = arith.constant 0 : index
    %667 = vector.load %arg7[%c2_488, %c0_489] : memref<8x128xf32, #tpu.memory_space<vmem>>, vector<1x128xf32>
    tpu.vector_store %arg7[%c2_488, %c0_489], %666 {strides = array<i32>} : memref<8x128xf32, #tpu.memory_space<vmem>>, vector<1x128xf32>,
    %668 = arith.index_cast %c13_i32 : i32 to index
    %c3_490 = arith.constant 3 : index
    %669 = memref.load %arg1[%668, %c3_490] : memref<16x8xi32, #tpu.memory_space<smem>>
    %670 = arith.index_cast %669 : i32 to index
    %c0_491 = arith.constant 0 : index
    %671 = vector.load %arg3[%670, %c0_491] : memref<128x128xf32, #tpu.memory_space<vmem>>, vector<1x128xf32>
    %c3_492 = arith.constant 3 : index
    %c0_493 = arith.constant 0 : index
    %672 = vector.load %arg7[%c3_492, %c0_493] : memref<8x128xf32, #tpu.memory_space<vmem>>, vector<1x128xf32>
    tpu.vector_store %arg7[%c3_492, %c0_493], %671 {strides = array<i32>} : memref<8x128xf32, #tpu.memory_space<vmem>>, vector<1x128xf32>,
    %673 = arith.index_cast %c13_i32 : i32 to index
    %c4_494 = arith.constant 4 : index
    %674 = memref.load %arg1[%673, %c4_494] : memref<16x8xi32, #tpu.memory_space<smem>>
    %675 = arith.index_cast %674 : i32 to index
    %c0_495 = arith.constant 0 : index
    %676 = vector.load %arg3[%675, %c0_495] : memref<128x128xf32, #tpu.memory_space<vmem>>, vector<1x128xf32>
    %c4_496 = arith.constant 4 : index
    %c0_497 = arith.constant 0 : index
    %677 = vector.load %arg7[%c4_496, %c0_497] : memref<8x128xf32, #tpu.memory_space<vmem>>, vector<1x128xf32>
    tpu.vector_store %arg7[%c4_496, %c0_497], %676 {strides = array<i32>} : memref<8x128xf32, #tpu.memory_space<vmem>>, vector<1x128xf32>,
    %678 = arith.index_cast %c13_i32 : i32 to index
    %c5_498 = arith.constant 5 : index
    %679 = memref.load %arg1[%678, %c5_498] : memref<16x8xi32, #tpu.memory_space<smem>>
    %680 = arith.index_cast %679 : i32 to index
    %c0_499 = arith.constant 0 : index
    %681 = vector.load %arg3[%680, %c0_499] : memref<128x128xf32, #tpu.memory_space<vmem>>, vector<1x128xf32>
    %c5_500 = arith.constant 5 : index
    %c0_501 = arith.constant 0 : index
    %682 = vector.load %arg7[%c5_500, %c0_501] : memref<8x128xf32, #tpu.memory_space<vmem>>, vector<1x128xf32>
    tpu.vector_store %arg7[%c5_500, %c0_501], %681 {strides = array<i32>} : memref<8x128xf32, #tpu.memory_space<vmem>>, vector<1x128xf32>,
    %683 = arith.index_cast %c13_i32 : i32 to index
    %c6_502 = arith.constant 6 : index
    %684 = memref.load %arg1[%683, %c6_502] : memref<16x8xi32, #tpu.memory_space<smem>>
    %685 = arith.index_cast %684 : i32 to index
    %c0_503 = arith.constant 0 : index
    %686 = vector.load %arg3[%685, %c0_503] : memref<128x128xf32, #tpu.memory_space<vmem>>, vector<1x128xf32>
    %c6_504 = arith.constant 6 : index
    %c0_505 = arith.constant 0 : index
    %687 = vector.load %arg7[%c6_504, %c0_505] : memref<8x128xf32, #tpu.memory_space<vmem>>, vector<1x128xf32>
    tpu.vector_store %arg7[%c6_504, %c0_505], %686 {strides = array<i32>} : memref<8x128xf32, #tpu.memory_space<vmem>>, vector<1x128xf32>,
    %688 = arith.index_cast %c13_i32 : i32 to index
    %c7_506 = arith.constant 7 : index
    %689 = memref.load %arg1[%688, %c7_506] : memref<16x8xi32, #tpu.memory_space<smem>>
    %690 = arith.index_cast %689 : i32 to index
    %c0_507 = arith.constant 0 : index
    %691 = vector.load %arg3[%690, %c0_507] : memref<128x128xf32, #tpu.memory_space<vmem>>, vector<1x128xf32>
    %c7_508 = arith.constant 7 : index
    %c0_509 = arith.constant 0 : index
    %692 = vector.load %arg7[%c7_508, %c0_509] : memref<8x128xf32, #tpu.memory_space<vmem>>, vector<1x128xf32>
    tpu.vector_store %arg7[%c7_508, %c0_509], %691 {strides = array<i32>} : memref<8x128xf32, #tpu.memory_space<vmem>>, vector<1x128xf32>,
    %c0_510 = arith.constant 0 : index
    %c0_511 = arith.constant 0 : index
    %693 = vector.load %arg7[%c0_510, %c0_511] : memref<8x128xf32, #tpu.memory_space<vmem>>, vector<8x128xf32>
    %cst_512 = arith.constant dense<0.000000e+00> : vector<8x128xf32>
    %694 = tpu.matmul %648, %0, %cst_512 {dimension_numbers = #tpu.dot_dimension_numbers<[1], [0], [0], [1], [0, 0, 1, 1], [], []>} : vector<8x128xf32>, vector<128x128xf32>, vector<8x128xf32> -> vector<8x128xf32>
    %695 = arith.addf %693, %694 : vector<8x128xf32>
    %696 = vector.broadcast %1 : vector<1x128xf32> to vector<8x128xf32>
    %697 = arith.addf %695, %696 : vector<8x128xf32>
    %698 = math.tanh %697 : vector<8x128xf32>
    %699 = arith.index_cast %c13_i32 : i32 to index
    %c0_513 = arith.constant 0 : index
    %c0_514 = arith.constant 0 : index
    %700 = vector.load %arg6[%699, %c0_513, %c0_514] : memref<16x8x128xf32, #tpu.memory_space<vmem>>, vector<1x8x128xf32>
    %701 = vector.shape_cast %700 : vector<1x8x128xf32> to vector<8x128xf32>
    %702 = vector.shape_cast %698 : vector<8x128xf32> to vector<1x8x128xf32>
    tpu.vector_store %arg6[%699, %c0_513, %c0_514], %702 {strides = array<i32>} : memref<16x8x128xf32, #tpu.memory_space<vmem>>, vector<1x8x128xf32>,
    %c14_i32 = arith.constant 14 : i32
    %703 = arith.index_cast %c14_i32 : i32 to index
    %c0_515 = arith.constant 0 : index
    %704 = memref.load %arg1[%703, %c0_515] : memref<16x8xi32, #tpu.memory_space<smem>>
    %705 = arith.index_cast %704 : i32 to index
    %c0_516 = arith.constant 0 : index
    %706 = vector.load %arg3[%705, %c0_516] : memref<128x128xf32, #tpu.memory_space<vmem>>, vector<1x128xf32>
    %c0_517 = arith.constant 0 : index
    %c0_518 = arith.constant 0 : index
    %707 = vector.load %arg7[%c0_517, %c0_518] : memref<8x128xf32, #tpu.memory_space<vmem>>, vector<1x128xf32>
    tpu.vector_store %arg7[%c0_517, %c0_518], %706 {strides = array<i32>} : memref<8x128xf32, #tpu.memory_space<vmem>>, vector<1x128xf32>,
    %708 = arith.index_cast %c14_i32 : i32 to index
    %c1_519 = arith.constant 1 : index
    %709 = memref.load %arg1[%708, %c1_519] : memref<16x8xi32, #tpu.memory_space<smem>>
    %710 = arith.index_cast %709 : i32 to index
    %c0_520 = arith.constant 0 : index
    %711 = vector.load %arg3[%710, %c0_520] : memref<128x128xf32, #tpu.memory_space<vmem>>, vector<1x128xf32>
    %c1_521 = arith.constant 1 : index
    %c0_522 = arith.constant 0 : index
    %712 = vector.load %arg7[%c1_521, %c0_522] : memref<8x128xf32, #tpu.memory_space<vmem>>, vector<1x128xf32>
    tpu.vector_store %arg7[%c1_521, %c0_522], %711 {strides = array<i32>} : memref<8x128xf32, #tpu.memory_space<vmem>>, vector<1x128xf32>,
    %713 = arith.index_cast %c14_i32 : i32 to index
    %c2_523 = arith.constant 2 : index
    %714 = memref.load %arg1[%713, %c2_523] : memref<16x8xi32, #tpu.memory_space<smem>>
    %715 = arith.index_cast %714 : i32 to index
    %c0_524 = arith.constant 0 : index
    %716 = vector.load %arg3[%715, %c0_524] : memref<128x128xf32, #tpu.memory_space<vmem>>, vector<1x128xf32>
    %c2_525 = arith.constant 2 : index
    %c0_526 = arith.constant 0 : index
    %717 = vector.load %arg7[%c2_525, %c0_526] : memref<8x128xf32, #tpu.memory_space<vmem>>, vector<1x128xf32>
    tpu.vector_store %arg7[%c2_525, %c0_526], %716 {strides = array<i32>} : memref<8x128xf32, #tpu.memory_space<vmem>>, vector<1x128xf32>,
    %718 = arith.index_cast %c14_i32 : i32 to index
    %c3_527 = arith.constant 3 : index
    %719 = memref.load %arg1[%718, %c3_527] : memref<16x8xi32, #tpu.memory_space<smem>>
    %720 = arith.index_cast %719 : i32 to index
    %c0_528 = arith.constant 0 : index
    %721 = vector.load %arg3[%720, %c0_528] : memref<128x128xf32, #tpu.memory_space<vmem>>, vector<1x128xf32>
    %c3_529 = arith.constant 3 : index
    %c0_530 = arith.constant 0 : index
    %722 = vector.load %arg7[%c3_529, %c0_530] : memref<8x128xf32, #tpu.memory_space<vmem>>, vector<1x128xf32>
    tpu.vector_store %arg7[%c3_529, %c0_530], %721 {strides = array<i32>} : memref<8x128xf32, #tpu.memory_space<vmem>>, vector<1x128xf32>,
    %723 = arith.index_cast %c14_i32 : i32 to index
    %c4_531 = arith.constant 4 : index
    %724 = memref.load %arg1[%723, %c4_531] : memref<16x8xi32, #tpu.memory_space<smem>>
    %725 = arith.index_cast %724 : i32 to index
    %c0_532 = arith.constant 0 : index
    %726 = vector.load %arg3[%725, %c0_532] : memref<128x128xf32, #tpu.memory_space<vmem>>, vector<1x128xf32>
    %c4_533 = arith.constant 4 : index
    %c0_534 = arith.constant 0 : index
    %727 = vector.load %arg7[%c4_533, %c0_534] : memref<8x128xf32, #tpu.memory_space<vmem>>, vector<1x128xf32>
    tpu.vector_store %arg7[%c4_533, %c0_534], %726 {strides = array<i32>} : memref<8x128xf32, #tpu.memory_space<vmem>>, vector<1x128xf32>,
    %728 = arith.index_cast %c14_i32 : i32 to index
    %c5_535 = arith.constant 5 : index
    %729 = memref.load %arg1[%728, %c5_535] : memref<16x8xi32, #tpu.memory_space<smem>>
    %730 = arith.index_cast %729 : i32 to index
    %c0_536 = arith.constant 0 : index
    %731 = vector.load %arg3[%730, %c0_536] : memref<128x128xf32, #tpu.memory_space<vmem>>, vector<1x128xf32>
    %c5_537 = arith.constant 5 : index
    %c0_538 = arith.constant 0 : index
    %732 = vector.load %arg7[%c5_537, %c0_538] : memref<8x128xf32, #tpu.memory_space<vmem>>, vector<1x128xf32>
    tpu.vector_store %arg7[%c5_537, %c0_538], %731 {strides = array<i32>} : memref<8x128xf32, #tpu.memory_space<vmem>>, vector<1x128xf32>,
    %733 = arith.index_cast %c14_i32 : i32 to index
    %c6_539 = arith.constant 6 : index
    %734 = memref.load %arg1[%733, %c6_539] : memref<16x8xi32, #tpu.memory_space<smem>>
    %735 = arith.index_cast %734 : i32 to index
    %c0_540 = arith.constant 0 : index
    %736 = vector.load %arg3[%735, %c0_540] : memref<128x128xf32, #tpu.memory_space<vmem>>, vector<1x128xf32>
    %c6_541 = arith.constant 6 : index
    %c0_542 = arith.constant 0 : index
    %737 = vector.load %arg7[%c6_541, %c0_542] : memref<8x128xf32, #tpu.memory_space<vmem>>, vector<1x128xf32>
    tpu.vector_store %arg7[%c6_541, %c0_542], %736 {strides = array<i32>} : memref<8x128xf32, #tpu.memory_space<vmem>>, vector<1x128xf32>,
    %738 = arith.index_cast %c14_i32 : i32 to index
    %c7_543 = arith.constant 7 : index
    %739 = memref.load %arg1[%738, %c7_543] : memref<16x8xi32, #tpu.memory_space<smem>>
    %740 = arith.index_cast %739 : i32 to index
    %c0_544 = arith.constant 0 : index
    %741 = vector.load %arg3[%740, %c0_544] : memref<128x128xf32, #tpu.memory_space<vmem>>, vector<1x128xf32>
    %c7_545 = arith.constant 7 : index
    %c0_546 = arith.constant 0 : index
    %742 = vector.load %arg7[%c7_545, %c0_546] : memref<8x128xf32, #tpu.memory_space<vmem>>, vector<1x128xf32>
    tpu.vector_store %arg7[%c7_545, %c0_546], %741 {strides = array<i32>} : memref<8x128xf32, #tpu.memory_space<vmem>>, vector<1x128xf32>,
    %c0_547 = arith.constant 0 : index
    %c0_548 = arith.constant 0 : index
    %743 = vector.load %arg7[%c0_547, %c0_548] : memref<8x128xf32, #tpu.memory_space<vmem>>, vector<8x128xf32>
    %cst_549 = arith.constant dense<0.000000e+00> : vector<8x128xf32>
    %744 = tpu.matmul %698, %0, %cst_549 {dimension_numbers = #tpu.dot_dimension_numbers<[1], [0], [0], [1], [0, 0, 1, 1], [], []>} : vector<8x128xf32>, vector<128x128xf32>, vector<8x128xf32> -> vector<8x128xf32>
    %745 = arith.addf %743, %744 : vector<8x128xf32>
    %746 = vector.broadcast %1 : vector<1x128xf32> to vector<8x128xf32>
    %747 = arith.addf %745, %746 : vector<8x128xf32>
    %748 = math.tanh %747 : vector<8x128xf32>
    %749 = arith.index_cast %c14_i32 : i32 to index
    %c0_550 = arith.constant 0 : index
    %c0_551 = arith.constant 0 : index
    %750 = vector.load %arg6[%749, %c0_550, %c0_551] : memref<16x8x128xf32, #tpu.memory_space<vmem>>, vector<1x8x128xf32>
    %751 = vector.shape_cast %750 : vector<1x8x128xf32> to vector<8x128xf32>
    %752 = vector.shape_cast %748 : vector<8x128xf32> to vector<1x8x128xf32>
    tpu.vector_store %arg6[%749, %c0_550, %c0_551], %752 {strides = array<i32>} : memref<16x8x128xf32, #tpu.memory_space<vmem>>, vector<1x8x128xf32>,
    %c15_i32 = arith.constant 15 : i32
    %753 = arith.index_cast %c15_i32 : i32 to index
    %c0_552 = arith.constant 0 : index
    %754 = memref.load %arg1[%753, %c0_552] : memref<16x8xi32, #tpu.memory_space<smem>>
    %755 = arith.index_cast %754 : i32 to index
    %c0_553 = arith.constant 0 : index
    %756 = vector.load %arg3[%755, %c0_553] : memref<128x128xf32, #tpu.memory_space<vmem>>, vector<1x128xf32>
    %c0_554 = arith.constant 0 : index
    %c0_555 = arith.constant 0 : index
    %757 = vector.load %arg7[%c0_554, %c0_555] : memref<8x128xf32, #tpu.memory_space<vmem>>, vector<1x128xf32>
    tpu.vector_store %arg7[%c0_554, %c0_555], %756 {strides = array<i32>} : memref<8x128xf32, #tpu.memory_space<vmem>>, vector<1x128xf32>,
    %758 = arith.index_cast %c15_i32 : i32 to index
    %c1_556 = arith.constant 1 : index
    %759 = memref.load %arg1[%758, %c1_556] : memref<16x8xi32, #tpu.memory_space<smem>>
    %760 = arith.index_cast %759 : i32 to index
    %c0_557 = arith.constant 0 : index
    %761 = vector.load %arg3[%760, %c0_557] : memref<128x128xf32, #tpu.memory_space<vmem>>, vector<1x128xf32>
    %c1_558 = arith.constant 1 : index
    %c0_559 = arith.constant 0 : index
    %762 = vector.load %arg7[%c1_558, %c0_559] : memref<8x128xf32, #tpu.memory_space<vmem>>, vector<1x128xf32>
    tpu.vector_store %arg7[%c1_558, %c0_559], %761 {strides = array<i32>} : memref<8x128xf32, #tpu.memory_space<vmem>>, vector<1x128xf32>,
    %763 = arith.index_cast %c15_i32 : i32 to index
    %c2_560 = arith.constant 2 : index
    %764 = memref.load %arg1[%763, %c2_560] : memref<16x8xi32, #tpu.memory_space<smem>>
    %765 = arith.index_cast %764 : i32 to index
    %c0_561 = arith.constant 0 : index
    %766 = vector.load %arg3[%765, %c0_561] : memref<128x128xf32, #tpu.memory_space<vmem>>, vector<1x128xf32>
    %c2_562 = arith.constant 2 : index
    %c0_563 = arith.constant 0 : index
    %767 = vector.load %arg7[%c2_562, %c0_563] : memref<8x128xf32, #tpu.memory_space<vmem>>, vector<1x128xf32>
    tpu.vector_store %arg7[%c2_562, %c0_563], %766 {strides = array<i32>} : memref<8x128xf32, #tpu.memory_space<vmem>>, vector<1x128xf32>,
    %768 = arith.index_cast %c15_i32 : i32 to index
    %c3_564 = arith.constant 3 : index
    %769 = memref.load %arg1[%768, %c3_564] : memref<16x8xi32, #tpu.memory_space<smem>>
    %770 = arith.index_cast %769 : i32 to index
    %c0_565 = arith.constant 0 : index
    %771 = vector.load %arg3[%770, %c0_565] : memref<128x128xf32, #tpu.memory_space<vmem>>, vector<1x128xf32>
    %c3_566 = arith.constant 3 : index
    %c0_567 = arith.constant 0 : index
    %772 = vector.load %arg7[%c3_566, %c0_567] : memref<8x128xf32, #tpu.memory_space<vmem>>, vector<1x128xf32>
    tpu.vector_store %arg7[%c3_566, %c0_567], %771 {strides = array<i32>} : memref<8x128xf32, #tpu.memory_space<vmem>>, vector<1x128xf32>,
    %773 = arith.index_cast %c15_i32 : i32 to index
    %c4_568 = arith.constant 4 : index
    %774 = memref.load %arg1[%773, %c4_568] : memref<16x8xi32, #tpu.memory_space<smem>>
    %775 = arith.index_cast %774 : i32 to index
    %c0_569 = arith.constant 0 : index
    %776 = vector.load %arg3[%775, %c0_569] : memref<128x128xf32, #tpu.memory_space<vmem>>, vector<1x128xf32>
    %c4_570 = arith.constant 4 : index
    %c0_571 = arith.constant 0 : index
    %777 = vector.load %arg7[%c4_570, %c0_571] : memref<8x128xf32, #tpu.memory_space<vmem>>, vector<1x128xf32>
    tpu.vector_store %arg7[%c4_570, %c0_571], %776 {strides = array<i32>} : memref<8x128xf32, #tpu.memory_space<vmem>>, vector<1x128xf32>,
    %778 = arith.index_cast %c15_i32 : i32 to index
    %c5_572 = arith.constant 5 : index
    %779 = memref.load %arg1[%778, %c5_572] : memref<16x8xi32, #tpu.memory_space<smem>>
    %780 = arith.index_cast %779 : i32 to index
    %c0_573 = arith.constant 0 : index
    %781 = vector.load %arg3[%780, %c0_573] : memref<128x128xf32, #tpu.memory_space<vmem>>, vector<1x128xf32>
    %c5_574 = arith.constant 5 : index
    %c0_575 = arith.constant 0 : index
    %782 = vector.load %arg7[%c5_574, %c0_575] : memref<8x128xf32, #tpu.memory_space<vmem>>, vector<1x128xf32>
    tpu.vector_store %arg7[%c5_574, %c0_575], %781 {strides = array<i32>} : memref<8x128xf32, #tpu.memory_space<vmem>>, vector<1x128xf32>,
    %783 = arith.index_cast %c15_i32 : i32 to index
    %c6_576 = arith.constant 6 : index
    %784 = memref.load %arg1[%783, %c6_576] : memref<16x8xi32, #tpu.memory_space<smem>>
    %785 = arith.index_cast %784 : i32 to index
    %c0_577 = arith.constant 0 : index
    %786 = vector.load %arg3[%785, %c0_577] : memref<128x128xf32, #tpu.memory_space<vmem>>, vector<1x128xf32>
    %c6_578 = arith.constant 6 : index
    %c0_579 = arith.constant 0 : index
    %787 = vector.load %arg7[%c6_578, %c0_579] : memref<8x128xf32, #tpu.memory_space<vmem>>, vector<1x128xf32>
    tpu.vector_store %arg7[%c6_578, %c0_579], %786 {strides = array<i32>} : memref<8x128xf32, #tpu.memory_space<vmem>>, vector<1x128xf32>,
    %788 = arith.index_cast %c15_i32 : i32 to index
    %c7_580 = arith.constant 7 : index
    %789 = memref.load %arg1[%788, %c7_580] : memref<16x8xi32, #tpu.memory_space<smem>>
    %790 = arith.index_cast %789 : i32 to index
    %c0_581 = arith.constant 0 : index
    %791 = vector.load %arg3[%790, %c0_581] : memref<128x128xf32, #tpu.memory_space<vmem>>, vector<1x128xf32>
    %c7_582 = arith.constant 7 : index
    %c0_583 = arith.constant 0 : index
    %792 = vector.load %arg7[%c7_582, %c0_583] : memref<8x128xf32, #tpu.memory_space<vmem>>, vector<1x128xf32>
    tpu.vector_store %arg7[%c7_582, %c0_583], %791 {strides = array<i32>} : memref<8x128xf32, #tpu.memory_space<vmem>>, vector<1x128xf32>,
    %c0_584 = arith.constant 0 : index
    %c0_585 = arith.constant 0 : index
    %793 = vector.load %arg7[%c0_584, %c0_585] : memref<8x128xf32, #tpu.memory_space<vmem>>, vector<8x128xf32>
    %cst_586 = arith.constant dense<0.000000e+00> : vector<8x128xf32>
    %794 = tpu.matmul %748, %0, %cst_586 {dimension_numbers = #tpu.dot_dimension_numbers<[1], [0], [0], [1], [0, 0, 1, 1], [], []>} : vector<8x128xf32>, vector<128x128xf32>, vector<8x128xf32> -> vector<8x128xf32>
    %795 = arith.addf %793, %794 : vector<8x128xf32>
    %796 = vector.broadcast %1 : vector<1x128xf32> to vector<8x128xf32>
    %797 = arith.addf %795, %796 : vector<8x128xf32>
    %798 = math.tanh %797 : vector<8x128xf32>
    %799 = arith.index_cast %c15_i32 : i32 to index
    %c0_587 = arith.constant 0 : index
    %c0_588 = arith.constant 0 : index
    %800 = vector.load %arg6[%799, %c0_587, %c0_588] : memref<16x8x128xf32, #tpu.memory_space<vmem>>, vector<1x8x128xf32>
    %801 = vector.shape_cast %800 : vector<1x8x128xf32> to vector<8x128xf32>
    %802 = vector.shape_cast %798 : vector<8x128xf32> to vector<1x8x128xf32>
    tpu.vector_store %arg6[%799, %c0_587, %c0_588], %802 {strides = array<i32>} : memref<16x8x128xf32, #tpu.memory_space<vmem>>, vector<1x8x128xf32>,
    %c16_i32 = arith.constant 16 : i32
    return
  }
  func.func @transform_0(%arg0: i32, %arg1: memref<16x8xi32, #tpu.memory_space<smem>>) -> (i32, i32) {
    %c0_i32 = arith.constant 0 : i32
    %c0_i32_0 = arith.constant 0 : i32
    %c0_i32_1 = arith.constant 0 : i32
    return %c0_i32, %c0_i32_0 : i32, i32
  }
  func.func @transform_1(%arg0: i32, %arg1: memref<16x8xi32, #tpu.memory_space<smem>>) -> (i32, i32) {
    %c0_i32 = arith.constant 0 : i32
    %c0_i32_0 = arith.constant 0 : i32
    %c0_i32_1 = arith.constant 0 : i32
    return %c0_i32, %c0_i32_0 : i32, i32
  }
  func.func @transform_2(%arg0: i32, %arg1: memref<16x8xi32, #tpu.memory_space<smem>>) -> (i32, i32) {
    %c0_i32 = arith.constant 0 : i32
    %c0_i32_0 = arith.constant 0 : i32
    %c0_i32_1 = arith.constant 0 : i32
    return %c0_i32, %c0_i32_0 : i32, i32
  }
  func.func @transform_3(%arg0: i32, %arg1: memref<16x8xi32, #tpu.memory_space<smem>>) -> (i32, i32) {
    %c0_i32 = arith.constant 0 : i32
    %c0_i32_0 = arith.constant 0 : i32
    %c0_i32_1 = arith.constant 0 : i32
    return %c0_i32, %c0_i32_0 : i32, i32
  }
  func.func @transform_4(%arg0: i32, %arg1: memref<16x8xi32, #tpu.memory_space<smem>>) -> (i32, i32, i32) {
    %c0_i32 = arith.constant 0 : i32
    %c0_i32_0 = arith.constant 0 : i32
    %c0_i32_1 = arith.constant 0 : i32
    %c0_i32_2 = arith.constant 0 : i32
    return %c0_i32, %c0_i32_0, %c0_i32_1 : i32, i32, i32
  }
}

</mosaic_0001>

<bundles_post_ra>
// kernel: tpu_custom_call.1
= control target key start
LH: loop header
LB: loop body
LE: loop exit
PB: predicated region body
PF: predicated region fallthrough
CT: control target
= control target key end

     0   :  { %s3857_s0 = inlined_call_operand.vmem [shape: s32[16,8], index: 0, kind: input, shape index: {}]   ;;  %s3858_s1 = inlined_call_operand.vmem [shape: f32[8,128], index: 1, kind: input, shape index: {}]   ;;  %s3859_s2 = inlined_call_operand.hbm [shape: f32[128,128], index: 2, kind: input, shape index: {}]   ;;  %s3860_s3 = inlined_call_operand.hbm [shape: f32[128,128], index: 3, kind: input, shape index: {}]   ;;  %s3861_s4 = inlined_call_operand.vmem [shape: f32[1,128], index: 4, kind: input, shape index: {}]   ;;  %s3862_s5 = inlined_call_operand.hbm [shape: f32[16,8,128], index: 5, kind: output, shape index: {}]  }
   0x1   :  { %s10_s20 = sshll.u32 %s3857_s0, 4  ;;  %s11_s20 = int_to_ptr.vmem [resolvable:$true] %s10_s20 }
   0x2   :  { %s3336_s21 = scalar_lea.vmem %s11_s20, 256  ;;  %p3341_p1 = scmp.lt.s32.totalorder %s11_s20, %s11_s20 }
   0x3   :  { %p3337_p0 = scmp.ne.s32.totalorder %s11_s20, %s3336_s21  ;;  %p3342_p2 = scmp.lt.s32.totalorder %s3336_s21, %s3336_s21 }
   0x5   :  { %p3343_p3 = por %p3342_p2, %p3341_p1 }
   0x7   :  { %p3344_p4 = pnand %p3343_p3, %p3337_p0 }
   0x9   :  { %3347 = shalt.err (!%p3344_p4)  }
   0xa   :  { %s3422_s22 = smov [#allocation4]  }
   0xb   :  { %13 = dma.vmem_to_smem %s11_s20, 256, %s3422_s22, [#allocation3] }
   0xc   :  { %3414 = dma.done.wait [#allocation3], 256 }
   0xd   :  { %3415 = vsyncadd [#allocation3], 4294967040 }
   0xe   :  { %15 = sfence }
   0xf   :  { %16 = vsyncpa [#allocation6], 0 }
  0x10   :  { %17 = vsyncpa [#allocation9], 0 }
  0x11   :  { %18 = vsyncpa [#allocation7], 0  ;;  %s3423_s23 = smov [#allocation5]   ;;  %s3348_s26 = scalar_lea.hbm %s3859_s2, 2048 }
  0x12   :  { %s26_s24 = sshll.u32 %s3423_s23, 4  ;;  %p3349_p5 = scmp.ne.s32.totalorder %s3859_s2, %s3348_s26  ;;  %s27_s24 = int_to_ptr.vmem [resolvable:$true] %s26_s24 }
  0x13   :  { %p3352_p6 = scmp.lt.u32.totalorder %s3348_s26, %s3859_s2 }
  0x15   :  { %p3354_p7 = pnand %p3352_p6, %p3349_p5 }
  0x17   :  { %3357 = shalt.err (!%p3354_p7)
}
  0x18   :  { %s3358_s6 = scalar_lea.vmem %s27_s24, 2048  ;;  %p3363_p9 = scmp.lt.s32.totalorder %s27_s24, %s27_s24 }
  0x19   :  { %p3359_p8 = scmp.ne.s32.totalorder %s27_s24, %s3358_s6  ;;  %p3364_p10 = scmp.lt.s32.totalorder %s3358_s6, %s3358_s6 }
  0x1b   :  { %p3365_p11 = por %p3364_p10, %p3363_p9 }
  0x1d   :  { %p3366_p12 = pnand %p3365_p11, %p3359_p8 }
  0x1f   :  { %3369 = shalt.err (!%p3366_p12)
}
  0x20   :  { %s3424_s7 = smov 128   ;;  %s3425_s8 = smov 8  }
  0x21   :  { %32 = dma.hbm_to_vmem [thread:$0]  %s3859_s2, 2048, %s27_s24, [#allocation6], %s3424_s7, %s3424_s7, %s3425_s8  }
  0x22   :  { %s3426_s11 = smov [#allocation8]   ;;  %s3370_s15 = scalar_lea.hbm %s3860_s3, 2048 }
  0x23   :  { %s38_s12 = sshll.u32 %s3426_s11, 4  ;;  %p3371_p13 = scmp.ne.s32.totalorder %s3860_s3, %s3370_s15  ;;  %s39_s12 = int_to_ptr.vmem [resolvable:$true] %s38_s12 }
  0x24   :  { %p3374_p0 = scmp.lt.u32.totalorder %s3370_s15, %s3860_s3 }
  0x26   :  { %p3376_p1 = pnand %p3374_p0, %p3371_p13 }
  0x28   :  { %3379 = shalt.err (!%p3376_p1)
}
  0x29   :  { %s3380_s20 = scalar_lea.vmem %s39_s12, 2048  ;;  %p3385_p3 = scmp.lt.s32.totalorder %s39_s12, %s39_s12 }
  0x2a   :  { %p3381_p2 = scmp.ne.s32.totalorder %s39_s12, %s3380_s20  ;;  %p3386_p4 = scmp.lt.s32.totalorder %s3380_s20, %s3380_s20 }
  0x2c   :  { %p3387_p5 = por %p3386_p4, %p3385_p3 }
  0x2e   :  { %p3388_p6 = pnand %p3387_p5, %p3381_p2 }
  0x30   :  { %3391 = shalt.err (!%p3388_p6)
}
  0x31   :  { %44 = dma.hbm_to_vmem [thread:$0]  %s3860_s3, 2048, %s39_s12, [#allocation9], %s3424_s7, %s3424_s7, %s3425_s8  }
  0x32   :  { %3416 = dma.done.wait [#allocation6], 2048  }
  0x33   :  { %3417 = vsyncadd [#allocation6], 4294965248 }
  0x34   :  { %3418 = dma.done.wait [#allocation9], 2048  }
  0x35   :  { %3419 = vsyncadd [#allocation9], 4294965248  ;;  %v3427_v0 = vmov 0.0|0.0   ;;  %vm3428_vm0 = vmmov 0   ;;  %v3429_v1 = vmov 0.0   ;;  %s71_s22 = sld [smem:[#allocation4]] }
  0x36   :  { %2910 = vmatprep.subr.bf16.mxu0 %v3427_v0  ;;  %2382 = vmatprep.mubr.msk.f32.mxu0 %vm3428_vm0, %v3429_v1  ;;  %s1950_s23 = sld [smem:[#allocation4 + $0x1]]  ;;  %s1951_s24 = sld [smem:[#allocation4 + $0x2]]  ;;  %v53_v2 = vld [vmem:[#allocation8] sm:$0xff]  ;;  %v54_v3 = vld [vmem:[#allocation8 + $0x8] sm:$0xff]  ;;  %v55_v4 = vld [vmem:[#allocation8 + $0x10] sm:$0xff] }
  0x37   :  { %2934 = vmatprep.subr.bf16.mxu1 %v3427_v0  ;;  %s3498_s0 = sld [smem:[#allocation4 + $0x3]]  ;;  %2417 = vmatprep.mubr.msk.f32.mxu1 %vm3428_vm0, %v3429_v1  ;;  %s3502_s3 = sld [smem:[#allocation4 + $0x4]]  ;;  %v3510_v5 = vpack.c.bf16 %v54_v3, %v53_v2  ;;  %v56_v6 = vld [vmem:[#allocation8 + $0x18] sm:$0xff]  ;;  %v57_v8 = vld [vmem:[#allocation8 + $0x20] sm:$0xff]  ;;  %v58_v9 = vld [vmem:[#allocation8 + $0x28] sm:$0xff] }
  0x38   :  { %s3504_s25 = sld [smem:[#allocation4 + $0x5]]  ;;  %s3506_s26 = sld [smem:[#allocation4 + $0x6]]  ;;  %v3513_v7 = vpack.c.bf16 %v56_v6, %v55_v4  ;;  %v59_v10 = vld [vmem:[#allocation8 + $0x30] sm:$0xff]  ;;  %v3519_v14 = vpack.c.bf16 %v58_v9, %v57_v8  ;;  %v60_v18 = vld [vmem:[#allocation8 + $0x38] sm:$0xff]  ;;  %v61_v22 = vld [vmem:[#allocation8 + $0x40] sm:$0xff] }
  0x39   :  { %s3508_s27 = sld [smem:[#allocation4 + $0x7]]  ;;  %2912 = vmatpush3.bf16.msra.mxu0 %v3510_v5  ;;  %2936 = vmatpush3.bf16.msra.mxu1 %v3510_v5  ;;  %v3530_v21 = vpack.c.bf16 %v60_v18, %v59_v10  ;;  %v62_v23 = vld [vmem:[#allocation8 + $0x48] sm:$0xff]  ;;  %v63_v25 = vld [vmem:[#allocation8 + $0x50] sm:$0xff]  ;;  %v64_v26 = vld [vmem:[#allocation8 + $0x58] sm:$0xff]  ;;  %s1959_s15 = sld [smem:[#allocation4 + $0x81]] }
  0x3a   :  { %2913 = vmatprep.subr.bf16.mxu0 %v3427_v0  ;;  %2937 = vmatprep.subr.bf16.mxu1 %v3427_v0  ;;  %v3536_v24 = vpack.c.bf16 %v62_v23, %v61_v22  ;;  %v3542_v27 = vpack.c.bf16 %v64_v26, %v63_v25  ;;  %v65_v28 = vld [vmem:[#allocation8 + $0x60] sm:$0xff]  ;;  %v66_v29 = vld [vmem:[#allocation8 + $0x68] sm:$0xff]  ;;  %v67_v31 = vld [vmem:[#allocation8 + $0x70] sm:$0xff]  ;;  %s1960_s16 = sld [smem:[#allocation4 + $0x82]]  ;;  %s1961_s17 = sld [smem:[#allocation4 + $0x83]] }
  0x3b   :  { %s72_s28 = scalar_lea.vmem [#allocation5], %s71_s22  ;;  %v3548_v30 = vpack.c.bf16 %v66_v29, %v65_v28  ;;  %v68_v32 = vld [vmem:[#allocation8 + $0x78] sm:$0xff]  ;;  %s1962_s18 = sld [smem:[#allocation4 + $0x84]] }
  0x3c   :  { %v73_v11 = vld [vmem:[%s72_s28] sm:$0x1]  ;;  %s76_s29 = scalar_lea.vmem [#allocation5], %s1950_s23  ;;  %s80_s30 = scalar_lea.vmem [#allocation5], %s1951_s24  ;;  %v3554_v33 = vpack.c.bf16 %v68_v32, %v67_v31 }
  0x3d   :  { %v77_v12 = vld [vmem:[%s76_s29] sm:$0x1]  ;;  %2915 = vmatpush3.bf16.msra.mxu0 %v3513_v7  ;;  %2939 = vmatpush3.bf16.msra.mxu1 %v3513_v7  ;;  %74 = vst [vmem:[#allocation2] sm:$0x1] %v73_v11  ;;  %s84_s6 = scalar_lea.vmem [#allocation5], %s3498_s0  ;;  %s88_s9 = scalar_lea.vmem [#allocation5], %s3502_s3 }
  0x3e   :  { %v81_v13 = vld [vmem:[%s80_s30] sm:$0x1]  ;;  %78 = vst [vmem:[#allocation2 + $0x1] sm:$0x1] %v77_v12  ;;  %s92_s10 = scalar_lea.vmem [#allocation5], %s3504_s25  ;;  %2916 = vmatprep.subr.bf16.mxu0 %v3427_v0  ;;  %2940 = vmatprep.subr.bf16.mxu1 %v3427_v0  ;;  %s96_s11 = scalar_lea.vmem [#allocation5], %s3506_s26 }
  0x3f   :  { %82 = vst [vmem:[#allocation2 + $0x2] sm:$0x1] %v81_v13  ;;  %v85_v15 = vld [vmem:[%s84_s6] sm:$0x1]  ;;  %s100_s12 = scalar_lea.vmem [#allocation5], %s3508_s27  ;;  %s1963_s19 = sld [smem:[#allocation4 + $0x85]] }
  0x40   :  { %v89_v16 = vld [vmem:[%s88_s9] sm:$0x1]  ;;  %86 = vst [vmem:[#allocation2 + $0x3] sm:$0x1] %v85_v15  ;;  %s1964_s20 = sld [smem:[#allocation4 + $0x86]]  ;;  %s1965_s2 = sld [smem:[#allocation4 + $0x87]] }
  0x41   :  { %v93_v17 = vld [vmem:[%s92_s10] sm:$0x1]  ;;  %90 = vst [vmem:[#allocation2 + $0x4] sm:$0x1] %v89_v16  ;;  %2918 = vmatpush3.bf16.msra.mxu0 %v3519_v14  ;;  %2942 = vmatpush3.bf16.msra.mxu1 %v3519_v14  ;;  %s189_s22 = scalar_lea.vmem [#allocation5], %s1959_s15  ;;  %s193_s23 = scalar_lea.vmem [#allocation5], %s1960_s16 }
  0x42   :  { %94 = vst [vmem:[#allocation2 + $0x5] sm:$0x1] %v93_v17  ;;  %v97_v19 = vld [vmem:[%s96_s11] sm:$0x1]  ;;  %2919 = vmatprep.subr.bf16.mxu0 %v3427_v0  ;;  %2943 = vmatprep.subr.bf16.mxu1 %v3427_v0  ;;  %s197_s24 = scalar_lea.vmem [#allocation5], %s1961_s17  ;;  %s201_s0 = scalar_lea.vmem [#allocation5], %s1962_s18 }
  0x43   :  { %v101_v20 = vld [vmem:[%s100_s12] sm:$0x1]  ;;  %98 = vst [vmem:[#allocation2 + $0x6] sm:$0x1] %v97_v19  ;;  %s1966_s29 = sld [smem:[#allocation4 + $0x100]]  ;;  %s1967_s30 = sld [smem:[#allocation4 + $0x101]] }
  0x44   :  { %102 = vst [vmem:[#allocation2 + $0x7] sm:$0x1] %v101_v20  ;;  %v70_v34 = vld [vmem:[%s3858_s1] sm:$0xff]  ;;  %s1958_s1 = sld [smem:[#allocation4 + $0x80]]  ;;  %s1968_s6 = sld [smem:[#allocation4 + $0x102]] }
  0x45   :  { %2921 = vmatpush3.bf16.msra.mxu0 %v3530_v21  ;;  %2945 = vmatpush3.bf16.msra.mxu1 %v3530_v21  ;;  %v190_v37 = vld [vmem:[%s189_s22] sm:$0x1]  ;;  %s205_s3 = scalar_lea.vmem [#allocation5], %s1963_s19  ;;  %s1969_s9 = sld [smem:[#allocation4 + $0x103]] }
  0x46   :  { %2922 = vmatprep.subr.bf16.mxu0 %v3427_v0  ;;  %2946 = vmatprep.subr.bf16.mxu1 %v3427_v0  ;;  %v194_v38 = vld [vmem:[%s193_s23] sm:$0x1]  ;;  %s209_s25 = scalar_lea.vmem [#allocation5], %s1964_s20  ;;  %s213_s26 = scalar_lea.vmem [#allocation5], %s1965_s2 }
  0x47   :  { %v198_v39 = vld [vmem:[%s197_s24] sm:$0x1]  ;;  %s1970_s10 = sld [smem:[#allocation4 + $0x104]]  ;;  %s1971_s11 = sld [smem:[#allocation4 + $0x105]] }
  0x48   :  { %v202_v40 = vld [vmem:[%s201_s0] sm:$0x1]  ;;  %s1972_s12 = sld [smem:[#allocation4 + $0x106]]  ;;  %s1973_s13 = sld [smem:[#allocation4 + $0x107]] }
  0x49   :  { %2924 = vmatpush3.bf16.msra.mxu0 %v3536_v24  ;;  %2948 = vmatpush3.bf16.msra.mxu1 %v3536_v24  ;;  %v206_v41 = vld [vmem:[%s205_s3] sm:$0x1]  ;;  %s293_s14 = scalar_lea.vmem [#allocation5], %s1966_s29  ;;  %s1974_s2 = sld [smem:[#allocation4 + $0x180]] }
  0x4a   :  { %2925 = vmatprep.subr.bf16.mxu0 %v3427_v0  ;;  %2949 = vmatprep.subr.bf16.mxu1 %v3427_v0  ;;  %s185_s21 = scalar_lea.vmem [#allocation5], %s1958_s1  ;;  %v210_v42 = vld [vmem:[%s209_s25] sm:$0x1]  ;;  %s297_s1 = scalar_lea.vmem [#allocation5], %s1967_s30 }
  0x4b   :  { %v103_v35 = vld [vmem:[#allocation2] sm:$0xff]  ;;  %s301_s15 = scalar_lea.vmem [#allocation5], %s1968_s6  ;;  %s305_s16 = scalar_lea.vmem [#allocation5], %s1969_s9 }
  0x4c   :  { %v186_v36 = vld [vmem:[%s185_s21] sm:$0x1]  ;;  %191 = vst [vmem:[#allocation2 + $0x1] sm:$0x1] %v190_v37  ;;  %195 = vst [vmem:[#allocation2 + $0x2] sm:$0x1] %v194_v38 }
  0x4d   :  { %2927 = vmatpush3.bf16.msra.mxu0 %v3542_v27  ;;  %2951 = vmatpush3.bf16.msra.mxu1 %v3542_v27  ;;  %187 = vst [vmem:[#allocation2] sm:$0x1] %v186_v36  ;;  %199 = vst [vmem:[#allocation2 + $0x3] sm:$0x1] %v198_v39  ;;  %v214_v43 = vld [vmem:[%s213_s26] sm:$0x1] }
  0x4e   :  { %2928 = vmatprep.subr.bf16.mxu0 %v3427_v0  ;;  %2952 = vmatprep.subr.bf16.mxu1 %v3427_v0  ;;  %203 = vst [vmem:[#allocation2 + $0x4] sm:$0x1] %v202_v40  ;;  %207 = vst [vmem:[#allocation2 + $0x5] sm:$0x1] %v206_v41  ;;  %v3587_v44 = vld [vmem:[%s3861_s4] ss:$0 sm:$0xff] }
  0x4f   :  { %211 = vst [vmem:[#allocation2 + $0x6] sm:$0x1] %v210_v42  ;;  %215 = vst [vmem:[#allocation2 + $0x7] sm:$0x1] %v214_v43  ;;  %v294_v51 = vld [vmem:[%s293_s14] sm:$0x1] }
  0x50   :  { %v298_v52 = vld [vmem:[%s297_s1] sm:$0x1]  ;;  %s309_s17 = scalar_lea.vmem [#allocation5], %s1970_s10  ;;  %s313_s18 = scalar_lea.vmem [#allocation5], %s1971_s11 }
  0x51   :  { %2930 = vmatpush3.bf16.msra.mxu0 %v3548_v30  ;;  %2954 = vmatpush3.bf16.msra.mxu1 %v3548_v30  ;;  %v302_v53 = vld [vmem:[%s301_s15] sm:$0x1]  ;;  %s317_s19 = scalar_lea.vmem [#allocation5], %s1972_s12  ;;  %s321_s20 = scalar_lea.vmem [#allocation5], %s1973_s13 }
  0x52   :  { %2931 = vmatprep.subr.bf16.mxu0 %v3427_v0  ;;  %2955 = vmatprep.subr.bf16.mxu1 %v3427_v0  ;;  %v306_v54 = vld [vmem:[%s305_s16] sm:$0x1]  ;;  %s1975_s21 = sld [smem:[#allocation4 + $0x181]]  ;;  %s1976_s22 = sld [smem:[#allocation4 + $0x182]] }
  0x53   :  { %v310_v55 = vld [vmem:[%s309_s17] sm:$0x1]  ;;  %s1977_s23 = sld [smem:[#allocation4 + $0x183]]  ;;  %s1978_s24 = sld [smem:[#allocation4 + $0x184]] }
  0x54   :  { %v314_v56 = vld [vmem:[%s313_s18] sm:$0x1]  ;;  %s1979_s0 = sld [smem:[#allocation4 + $0x185]]  ;;  %s1980_s3 = sld [smem:[#allocation4 + $0x186]] }
  0x55   :  { %2933 = vmatpush3.bf16.msra.mxu0 %v3554_v33  ;;  %2957 = vmatpush3.bf16.msra.mxu1 %v3554_v33  ;;  %v318_v57 = vld [vmem:[%s317_s19] sm:$0x1]  ;;  %s1981_s25 = sld [smem:[#allocation4 + $0x187]]  ;;  %s401_s26 = scalar_lea.vmem [#allocation5], %s1974_s2 }
  0x56   :  { %2958 = vmatprep.subr.bf16.mxu0 %v3427_v0  ;;  %2982 = vmatprep.subr.bf16.mxu1 %v3427_v0  ;;  %v216_v50 = vld [vmem:[#allocation2] sm:$0xff]  ;;  %s1982_s11 = sld [smem:[#allocation4 + $0x200]]  ;;  %s1983_s12 = sld [smem:[#allocation4 + $0x201]] }
  0x57   :  { %295 = vst [vmem:[#allocation2] sm:$0x1] %v294_v51  ;;  %299 = vst [vmem:[#allocation2 + $0x1] sm:$0x1] %v298_v52  ;;  %v322_v58 = vld [vmem:[%s321_s20] sm:$0x1] }
  0x58   :  { %2383 = vmatmul.mubr.f32.vlgmr.msra.gmra.mrb[0].mxu0 %v70_v34  ;;  %303 = vst [vmem:[#allocation2 + $0x2] sm:$0x1] %v302_v53  ;;  %307 = vst [vmem:[#allocation2 + $0x3] sm:$0x1] %v306_v54  ;;  %v402_v3 = vld [vmem:[%s401_s26] sm:$0x1] }
  0x59   :  { %2960 = vmatpush3.bf16.msra.mxu0 %v3510_v5  ;;  %2452 = vmatprep.mubr.msk.f32.mxu0 %vm3428_vm0, %v3429_v1  ;;  %311 = vst [vmem:[#allocation2 + $0x4] sm:$0x1] %v310_v55  ;;  %315 = vst [vmem:[#allocation2 + $0x5] sm:$0x1] %v314_v56  ;;  %s405_s27 = scalar_lea.vmem [#allocation5], %s1975_s21  ;;  %s409_s28 = scalar_lea.vmem [#allocation5], %s1976_s22 }
  0x5a   :  { %2961 = vmatprep.subr.bf16.mxu0 %v3427_v0  ;;  %319 = vst [vmem:[#allocation2 + $0x6] sm:$0x1] %v318_v57  ;;  %323 = vst [vmem:[#allocation2 + $0x7] sm:$0x1] %v322_v58  ;;  %v406_v4 = vld [vmem:[%s405_s27] sm:$0x1] }
  0x5b   :  { %v410_v6 = vld [vmem:[%s409_s28] sm:$0x1]  ;;  %s413_s29 = scalar_lea.vmem [#allocation5], %s1977_s23  ;;  %s417_s30 = scalar_lea.vmem [#allocation5], %s1978_s24 }
  0x5c   :  { %v414_v8 = vld [vmem:[%s413_s29] sm:$0x1]  ;;  %s421_s6 = scalar_lea.vmem [#allocation5], %s1979_s0  ;;  %s425_s9 = scalar_lea.vmem [#allocation5], %s1980_s3 }
  0x5d   :  { %2963 = vmatpush3.bf16.msra.mxu0 %v3513_v7  ;;  %v418_v9 = vld [vmem:[%s417_s30] sm:$0x1]  ;;  %s429_s10 = scalar_lea.vmem [#allocation5], %s1981_s25  ;;  %s1984_s13 = sld [smem:[#allocation4 + $0x202]] }
  0x5e   :  { %2964 = vmatprep.subr.bf16.mxu0 %v3427_v0  ;;  %v422_v10 = vld [vmem:[%s421_s6] sm:$0x1]  ;;  %s1985_s14 = sld [smem:[#allocation4 + $0x203]]  ;;  %s1986_s1 = sld [smem:[#allocation4 + $0x204]] }
  0x5f   :  { %v426_v11 = vld [vmem:[%s425_s9] sm:$0x1]  ;;  %s1987_s15 = sld [smem:[#allocation4 + $0x205]]  ;;  %s1988_s16 = sld [smem:[#allocation4 + $0x206]] }
  0x60   :  { %v430_v12 = vld [vmem:[%s429_s10] sm:$0x1]  ;;  %s1989_s17 = sld [smem:[#allocation4 + $0x207]]  ;;  %s509_s18 = scalar_lea.vmem [#allocation5], %s1982_s11 }
  0x61   :  { %2966 = vmatpush3.bf16.msra.mxu0 %v3519_v14  ;;  %v324_v2 = vld [vmem:[#allocation2] sm:$0xff]  ;;  %s513_s19 = scalar_lea.vmem [#allocation5], %s1983_s12  ;;  %s1990_s0 = sld [smem:[#allocation4 + $0x280]] }
  0x62   :  { %2967 = vmatprep.subr.bf16.mxu0 %v3427_v0  ;;  %403 = vst [vmem:[#allocation2] sm:$0x1] %v402_v3  ;;  %407 = vst [vmem:[#allocation2 + $0x1] sm:$0x1] %v406_v4  ;;  %v510_v20 = vld [vmem:[%s509_s18] sm:$0x1] }
  0x63   :  { %411 = vst [vmem:[#allocation2 + $0x2] sm:$0x1] %v410_v6  ;;  %415 = vst [vmem:[#allocation2 + $0x3] sm:$0x1] %v414_v8  ;;  %v514_v22 = vld [vmem:[%s513_s19] sm:$0x1] }
  0x64   :  { %419 = vst [vmem:[#allocation2 + $0x4] sm:$0x1] %v418_v9  ;;  %423 = vst [vmem:[#allocation2 + $0x5] sm:$0x1] %v422_v10  ;;  %s517_s20 = scalar_lea.vmem [#allocation5], %s1984_s13  ;;  %s521_s2 = scalar_lea.vmem [#allocation5], %s1985_s14 }
  0x65   :  { %2969 = vmatpush3.bf16.msra.mxu0 %v3530_v21  ;;  %427 = vst [vmem:[#allocation2 + $0x6] sm:$0x1] %v426_v11  ;;  %431 = vst [vmem:[#allocation2 + $0x7] sm:$0x1] %v430_v12  ;;  %v518_v23 = vld [vmem:[%s517_s20] sm:$0x1] }
  0x66   :  { %2970 = vmatprep.subr.bf16.mxu0 %v3427_v0  ;;  %v522_v25 = vld [vmem:[%s521_s2] sm:$0x1]  ;;  %s525_s21 = scalar_lea.vmem [#allocation5], %s1986_s1  ;;  %s529_s22 = scalar_lea.vmem [#allocation5], %s1987_s15 }
  0x67   :  { %v526_v26 = vld [vmem:[%s525_s21] sm:$0x1]  ;;  %s533_s23 = scalar_lea.vmem [#allocation5], %s1988_s16  ;;  %s537_s24 = scalar_lea.vmem [#allocation5], %s1989_s17 }
  0x68   :  { %v530_v28 = vld [vmem:[%s529_s22] sm:$0x1]  ;;  %s1991_s3 = sld [smem:[#allocation4 + $0x281]]  ;;  %s1992_s25 = sld [smem:[#allocation4 + $0x282]] }
  0x69   :  { %2972 = vmatpush3.bf16.msra.mxu0 %v3536_v24  ;;  %v534_v29 = vld [vmem:[%s533_s23] sm:$0x1]  ;;  %s1993_s26 = sld [smem:[#allocation4 + $0x283]]  ;;  %s1994_s27 = sld [smem:[#allocation4 + $0x284]] }
  0x6a   :  { %2973 = vmatprep.subr.bf16.mxu0 %v3427_v0  ;;  %v538_v31 = vld [vmem:[%s537_s24] sm:$0x1]  ;;  %s1995_s28 = sld [smem:[#allocation4 + $0x285]]  ;;  %s1996_s29 = sld [smem:[#allocation4 + $0x286]] }
  0x6b   :  { %s1997_s30 = sld [smem:[#allocation4 + $0x287]]  ;;  %s617_s6 = scalar_lea.vmem [#allocation5], %s1990_s0 }
  0x6c   :  { %v432_v19 = vld [vmem:[#allocation2] sm:$0xff]  ;;  %s1998_s15 = sld [smem:[#allocation4 + $0x300]]  ;;  %s1999_s16 = sld [smem:[#allocation4 + $0x301]] }
  0x6d   :  { %2975 = vmatpush3.bf16.msra.mxu0 %v3542_v27  ;;  %511 = vst [vmem:[#allocation2] sm:$0x1] %v510_v20  ;;  %515 = vst [vmem:[#allocation2 + $0x1] sm:$0x1] %v514_v22  ;;  %v618_v39 = vld [vmem:[%s617_s6] sm:$0x1] }
  0x6e   :  { %2976 = vmatprep.subr.bf16.mxu0 %v3427_v0  ;;  %519 = vst [vmem:[#allocation2 + $0x2] sm:$0x1] %v518_v23  ;;  %523 = vst [vmem:[#allocation2 + $0x3] sm:$0x1] %v522_v25  ;;  %s621_s9 = scalar_lea.vmem [#allocation5], %s1991_s3  ;;  %s625_s10 = scalar_lea.vmem [#allocation5], %s1992_s25 }
  0x6f   :  { %527 = vst [vmem:[#allocation2 + $0x4] sm:$0x1] %v526_v26  ;;  %531 = vst [vmem:[#allocation2 + $0x5] sm:$0x1] %v530_v28  ;;  %v622_v40 = vld [vmem:[%s621_s9] sm:$0x1] }
  0x70   :  { %535 = vst [vmem:[#allocation2 + $0x6] sm:$0x1] %v534_v29  ;;  %539 = vst [vmem:[#allocation2 + $0x7] sm:$0x1] %v538_v31  ;;  %v626_v41 = vld [vmem:[%s625_s10] sm:$0x1] }
  0x71   :  { %2978 = vmatpush3.bf16.msra.mxu0 %v3548_v30  ;;  %s629_s11 = scalar_lea.vmem [#allocation5], %s1993_s26  ;;  %s633_s12 = scalar_lea.vmem [#allocation5], %s1994_s27 }
  0x72   :  { %2979 = vmatprep.subr.bf16.mxu0 %v3427_v0  ;;  %v630_v42 = vld [vmem:[%s629_s11] sm:$0x1]  ;;  %s637_s13 = scalar_lea.vmem [#allocation5], %s1995_s28  ;;  %s641_s14 = scalar_lea.vmem [#allocation5], %s1996_s29 }
  0x73   :  { %v634_v43 = vld [vmem:[%s633_s12] sm:$0x1]  ;;  %s645_s1 = scalar_lea.vmem [#allocation5], %s1997_s30  ;;  %s2000_s17 = sld [smem:[#allocation4 + $0x302]] }
  0x74   :  { %s2001_s18 = sld [smem:[#allocation4 + $0x303]]  ;;  %s2002_s19 = sld [smem:[#allocation4 + $0x304]] }
  0x75   :  { %2981 = vmatpush3.bf16.msra.mxu0 %v3554_v33  ;;  %s2003_s20 = sld [smem:[#allocation4 + $0x305]]  ;;  %s2004_s2 = sld [smem:[#allocation4 + $0x306]] }
  0x76   :  { %3006 = vmatprep.subr.bf16.mxu0 %v3427_v0  ;;  %s2005_s21 = sld [smem:[#allocation4 + $0x307]]  ;;  %s725_s22 = scalar_lea.vmem [#allocation5], %s1998_s15 }
  0x77   :  { %v540_v38 = vld [vmem:[#allocation2] sm:$0xff]  ;;  %s729_s23 = scalar_lea.vmem [#allocation5], %s1999_s16  ;;  %s2006_s28 = sld [smem:[#allocation4 + $0x380]] }
  0x78   :  { %619 = vst [vmem:[#allocation2] sm:$0x1] %v618_v39  ;;  %623 = vst [vmem:[#allocation2 + $0x1] sm:$0x1] %v622_v40  ;;  %v726_v54 = vld [vmem:[%s725_s22] sm:$0x1] }
  0x79   :  { %627 = vst [vmem:[#allocation2 + $0x2] sm:$0x1] %v626_v41  ;;  %631 = vst [vmem:[#allocation2 + $0x3] sm:$0x1] %v630_v42  ;;  %v730_v55 = vld [vmem:[%s729_s23] sm:$0x1] }
  0x7a   :  { %635 = vst [vmem:[#allocation2 + $0x4] sm:$0x1] %v634_v43  ;;  %s733_s24 = scalar_lea.vmem [#allocation5], %s2000_s17  ;;  %s737_s0 = scalar_lea.vmem [#allocation5], %s2001_s18 }
  0x7b   :  { %v734_v56 = vld [vmem:[%s733_s24] sm:$0x1]  ;;  %s741_s3 = scalar_lea.vmem [#allocation5], %s2002_s19  ;;  %s745_s25 = scalar_lea.vmem [#allocation5], %s2003_s20 }
  0x7c   :  { %v738_v57 = vld [vmem:[%s737_s0] sm:$0x1]  ;;  %s749_s26 = scalar_lea.vmem [#allocation5], %s2004_s2  ;;  %s753_s27 = scalar_lea.vmem [#allocation5], %s2005_s21 }
  0x7d   :  { %v742_v58 = vld [vmem:[%s741_s3] sm:$0x1]  ;;  %s2007_s29 = sld [smem:[#allocation4 + $0x381]]  ;;  %s2008_s30 = sld [smem:[#allocation4 + $0x382]] }
  0x7e   :  { %s2009_s6 = sld [smem:[#allocation4 + $0x383]]  ;;  %s2010_s9 = sld [smem:[#allocation4 + $0x384]] }
  0x7f   :  { %s2011_s10 = sld [smem:[#allocation4 + $0x385]]  ;;  %s2012_s11 = sld [smem:[#allocation4 + $0x386]] }
  0x80   :  { %s2013_s12 = sld [smem:[#allocation4 + $0x387]]  ;;  %s2014_s20 = sld [smem:[#allocation4 + $0x400]] }
  0x81   :  { %s2015_s2 = sld [smem:[#allocation4 + $0x401]]  ;;  %s2016_s21 = sld [smem:[#allocation4 + $0x402]] }
  0x82   :  { %s2017_s22 = sld [smem:[#allocation4 + $0x403]]  ;;  %s2018_s23 = sld [smem:[#allocation4 + $0x404]] }
  0x83   :  { %s2019_s24 = sld [smem:[#allocation4 + $0x405]]  ;;  %s2020_s0 = sld [smem:[#allocation4 + $0x406]] }
  0x84   :  { %s845_s15 = scalar_lea.vmem [#allocation5], %s2009_s6  ;;  %s849_s16 = scalar_lea.vmem [#allocation5], %s2010_s9 }
  0x85   :  { %v846_v11 = vld [vmem:[%s845_s15] sm:$0x1]  ;;  %s853_s17 = scalar_lea.vmem [#allocation5], %s2011_s10  ;;  %s857_s18 = scalar_lea.vmem [#allocation5], %s2012_s11 }
  0x86   :  { %v850_v12 = vld [vmem:[%s849_s16] sm:$0x1]  ;;  %s861_s19 = scalar_lea.vmem [#allocation5], %s2013_s12  ;;  %s2021_s3 = sld [smem:[#allocation4 + $0x407]] }
  0x87   :  { %s2022_s10 = sld [smem:[#allocation4 + $0x480]]  ;;  %s2023_s11 = sld [smem:[#allocation4 + $0x481]] }
  0x88   :  { %s2024_s12 = sld [smem:[#allocation4 + $0x482]]  ;;  %s2028_s15 = sld [smem:[#allocation4 + $0x486]] }
  0x89   :  { %s965_s6 = scalar_lea.vmem [#allocation5], %s2020_s0  ;;  %s2029_s16 = sld [smem:[#allocation4 + $0x487]] }
  0x8a   :  { %s2031_s0 = sld [smem:[#allocation4 + $0x501]] }
  0x8c   :  { %s969_s9 = scalar_lea.vmem [#allocation5], %s2021_s3  ;;  %s2032_s3 = sld [smem:[#allocation4 + $0x502]] }
 0x12b   :  { %v170_v45 = vpop.f32.mrb[0].mxu0 }
 0x12c   :  { %v174_v46 = vadd.f32 %v170_v45, %v103_v35  ;;  %v2384_v47 = vpop.f32.mrb[1].mxu0  ;;  %v638_v45 = vld [vmem:[%s637_s13] sm:$0x1]  ;;  %s833_s13 = scalar_lea.vmem [#allocation5], %s2006_s28  ;;  %s953_s28 = scalar_lea.vmem [#allocation5], %s2017_s22 }
 0x12d   :  { %639 = vst [vmem:[#allocation2 + $0x5] sm:$0x1] %v638_v45  ;;  %v646_v47 = vld [vmem:[%s645_s1] sm:$0x1]  ;;  %s841_s1 = scalar_lea.vmem [#allocation5], %s2008_s30  ;;  %s961_s30 = scalar_lea.vmem [#allocation5], %s2019_s24 }
 0x12e   :  { %v181_v48 = vadd.f32 %v3587_v44, %v174_v46  ;;  %v642_v46 = vld [vmem:[%s641_s14] sm:$0x1]  ;;  %647 = vst [vmem:[#allocation2 + $0x7] sm:$0x1] %v646_v47  ;;  %s837_s14 = scalar_lea.vmem [#allocation5], %s2007_s29  ;;  %s957_s29 = scalar_lea.vmem [#allocation5], %s2018_s23 }
 0x12f   :  { %643 = vst [vmem:[#allocation2 + $0x6] sm:$0x1] %v642_v46  ;;  %v834_v8 = vld [vmem:[%s833_s13] sm:$0x1]  ;;  %s2025_s13 = sld [smem:[#allocation4 + $0x483]]  ;;  %s1073_s22 = scalar_lea.vmem [#allocation5], %s2028_s15 }
 0x130   :  { %3303 = vtanh.f32 %v181_v48  ;;  %v838_v9 = vld [vmem:[%s837_s14] sm:$0x1]  ;;  %s2026_s14 = sld [smem:[#allocation4 + $0x484]]  ;;  %s1077_s23 = scalar_lea.vmem [#allocation5], %s2029_s16 }
 0x131   :  { %v842_v10 = vld [vmem:[%s841_s1] sm:$0x1]  ;;  %s2027_s1 = sld [smem:[#allocation4 + $0x485]]  ;;  %s2030_s24 = sld [smem:[#allocation4 + $0x500]] }
 0x132   :  { %v954_v29 = vld [vmem:[%s953_s28] sm:$0x1]  ;;  %s2036_s28 = sld [smem:[#allocation4 + $0x506]]  ;;  %s2039_s16 = sld [smem:[#allocation4 + $0x581]] }
 0x133   :  { %v958_v31 = vld [vmem:[%s957_s29] sm:$0x1]  ;;  %s2037_s29 = sld [smem:[#allocation4 + $0x507]] }
 0x136   :  { %v648_v53 = vld [vmem:[#allocation2] sm:$0xff] }
 0x137   :  { %727 = vst [vmem:[#allocation2] sm:$0x1] %v726_v54  ;;  %731 = vst [vmem:[#allocation2 + $0x1] sm:$0x1] %v730_v55 }
 0x138   :  { %735 = vst [vmem:[#allocation2 + $0x2] sm:$0x1] %v734_v56  ;;  %739 = vst [vmem:[#allocation2 + $0x3] sm:$0x1] %v738_v57 }
 0x139   :  { %743 = vst [vmem:[#allocation2 + $0x4] sm:$0x1] %v742_v58 }
 0x13a   :  { %v3304_v49 = vpop.eup %3303 }
 0x13b   :  { %183 = vst [vmem:[#allocation10] sm:$0xff] %v3304_v49  ;;  %2418 = vmatmul.mubr.f32.vlgmr.msra.gmra.mrb[0].mxu1 %v3304_v49 }
 0x13c   :  { %2984 = vmatpush3.bf16.msra.mxu1 %v3510_v5  ;;  %2487 = vmatprep.mubr.msk.f32.mxu1 %vm3428_vm0, %v3429_v1 }
 0x13d   :  { %2985 = vmatprep.subr.bf16.mxu1 %v3427_v0 }
 0x140   :  { %2987 = vmatpush3.bf16.msra.mxu1 %v3513_v7 }
 0x141   :  { %2988 = vmatprep.subr.bf16.mxu1 %v3427_v0 }
 0x144   :  { %2990 = vmatpush3.bf16.msra.mxu1 %v3519_v14 }
 0x145   :  { %2991 = vmatprep.subr.bf16.mxu1 %v3427_v0 }
 0x148   :  { %2993 = vmatpush3.bf16.msra.mxu1 %v3530_v21 }
 0x149   :  { %2994 = vmatprep.subr.bf16.mxu1 %v3427_v0 }
 0x14c   :  { %2996 = vmatpush3.bf16.msra.mxu1 %v3536_v24 }
 0x14d   :  { %2997 = vmatprep.subr.bf16.mxu1 %v3427_v0 }
 0x150   :  { %2999 = vmatpush3.bf16.msra.mxu1 %v3542_v27 }
 0x151   :  { %3000 = vmatprep.subr.bf16.mxu1 %v3427_v0 }
 0x154   :  { %3002 = vmatpush3.bf16.msra.mxu1 %v3548_v30 }
 0x155   :  { %3003 = vmatprep.subr.bf16.mxu1 %v3427_v0 }
 0x158   :  { %3005 = vmatpush3.bf16.msra.mxu1 %v3554_v33 }
 0x159   :  { %3030 = vmatprep.subr.bf16.mxu1 %v3427_v0 }
 0x20e   :  { %v283_v59 = vpop.f32.mrb[0].mxu1 }
 0x20f   :  { %v287_v60 = vadd.f32 %v283_v59, %v216_v50  ;;  %v2419_v61 = vpop.f32.mrb[1].mxu1  ;;  %v746_v59 = vld [vmem:[%s745_s25] sm:$0x1]  ;;  %s941_s25 = scalar_lea.vmem [#allocation5], %s2014_s20  ;;  %s1061_s20 = scalar_lea.vmem [#allocation5], %s2025_s13 }
 0x210   :  { %747 = vst [vmem:[#allocation2 + $0x5] sm:$0x1] %v746_v59  ;;  %v754_v61 = vld [vmem:[%s753_s27] sm:$0x1]  ;;  %s949_s27 = scalar_lea.vmem [#allocation5], %s2016_s21  ;;  %s1069_s21 = scalar_lea.vmem [#allocation5], %s2027_s1 }
 0x211   :  { %v288_v62 = vadd.f32 %v3587_v44, %v287_v60  ;;  %v750_v60 = vld [vmem:[%s749_s26] sm:$0x1]  ;;  %755 = vst [vmem:[#allocation2 + $0x7] sm:$0x1] %v754_v61  ;;  %s945_s26 = scalar_lea.vmem [#allocation5], %s2015_s2  ;;  %s1065_s2 = scalar_lea.vmem [#allocation5], %s2026_s14 }
 0x212   :  { %751 = vst [vmem:[#allocation2 + $0x6] sm:$0x1] %v750_v60  ;;  %v942_v25 = vld [vmem:[%s941_s25] sm:$0x1]  ;;  %s2033_s25 = sld [smem:[#allocation4 + $0x503]]  ;;  %s1181_s13 = scalar_lea.vmem [#allocation5], %s2036_s28 }
 0x213   :  { %3305 = vtanh.f32 %v288_v62  ;;  %v946_v26 = vld [vmem:[%s945_s26] sm:$0x1]  ;;  %s2034_s26 = sld [smem:[#allocation4 + $0x504]]  ;;  %s1185_s14 = scalar_lea.vmem [#allocation5], %s2037_s29 }
 0x214   :  { %v950_v28 = vld [vmem:[%s949_s27] sm:$0x1]  ;;  %s2035_s27 = sld [smem:[#allocation4 + $0x505]]  ;;  %s2046_s28 = sld [smem:[#allocation4 + $0x600]] }
 0x215   :  { %v1062_v46 = vld [vmem:[%s1061_s20] sm:$0x1]  ;;  %s2043_s20 = sld [smem:[#allocation4 + $0x585]]  ;;  %s2047_s29 = sld [smem:[#allocation4 + $0x601]] }
 0x216   :  { %v1066_v47 = vld [vmem:[%s1065_s2] sm:$0x1]  ;;  %s2044_s2 = sld [smem:[#allocation4 + $0x586]] }
 0x219   :  { %v756_v6 = vld [vmem:[#allocation2] sm:$0xff] }
 0x21a   :  { %835 = vst [vmem:[#allocation2] sm:$0x1] %v834_v8  ;;  %839 = vst [vmem:[#allocation2 + $0x1] sm:$0x1] %v838_v9 }
 0x21b   :  { %843 = vst [vmem:[#allocation2 + $0x2] sm:$0x1] %v842_v10  ;;  %847 = vst [vmem:[#allocation2 + $0x3] sm:$0x1] %v846_v11 }
 0x21c   :  { %851 = vst [vmem:[#allocation2 + $0x4] sm:$0x1] %v850_v12 }
 0x21d   :  { %v3306_v63 = vpop.eup %3305 }
 0x21e   :  { %291 = vst [vmem:[#allocation10 + $0x8] sm:$0xff] %v3306_v63  ;;  %2453 = vmatmul.mubr.f32.vlgmr.msra.gmra.mrb[2].mxu0 %v3306_v63 }
 0x21f   :  { %3008 = vmatpush3.bf16.msra.mxu0 %v3510_v5  ;;  %2522 = vmatprep.mubr.msk.f32.mxu0 %vm3428_vm0, %v3429_v1 }
 0x220   :  { %3009 = vmatprep.subr.bf16.mxu0 %v3427_v0 }
 0x223   :  { %3011 = vmatpush3.bf16.msra.mxu0 %v3513_v7 }
 0x224   :  { %3012 = vmatprep.subr.bf16.mxu0 %v3427_v0 }
 0x227   :  { %3014 = vmatpush3.bf16.msra.mxu0 %v3519_v14 }
 0x228   :  { %3015 = vmatprep.subr.bf16.mxu0 %v3427_v0 }
 0x22b   :  { %3017 = vmatpush3.bf16.msra.mxu0 %v3530_v21 }
 0x22c   :  { %3018 = vmatprep.subr.bf16.mxu0 %v3427_v0 }
 0x22f   :  { %3020 = vmatpush3.bf16.msra.mxu0 %v3536_v24 }
 0x230   :  { %3021 = vmatprep.subr.bf16.mxu0 %v3427_v0 }
 0x233   :  { %3023 = vmatpush3.bf16.msra.mxu0 %v3542_v27 }
 0x234   :  { %3024 = vmatprep.subr.bf16.mxu0 %v3427_v0 }
 0x237   :  { %3026 = vmatpush3.bf16.msra.mxu0 %v3548_v30 }
 0x238   :  { %3027 = vmatprep.subr.bf16.mxu0 %v3427_v0 }
 0x23b   :  { %3029 = vmatpush3.bf16.msra.mxu0 %v3554_v33 }
 0x23c   :  { %3054 = vmatprep.subr.bf16.mxu0 %v3427_v0 }
 0x2f1   :  { %v391_v13 = vpop.f32.mrb[2].mxu0 }
 0x2f2   :  { %v395_v15 = vadd.f32 %v391_v13, %v324_v2  ;;  %v2454_v16 = vpop.f32.mrb[3].mxu0  ;;  %v854_v13 = vld [vmem:[%s853_s17] sm:$0x1]  ;;  %s1049_s17 = scalar_lea.vmem [#allocation5], %s2022_s10  ;;  %s1169_s10 = scalar_lea.vmem [#allocation5], %s2033_s25 }
 0x2f3   :  { %855 = vst [vmem:[#allocation2 + $0x5] sm:$0x1] %v854_v13  ;;  %v862_v16 = vld [vmem:[%s861_s19] sm:$0x1]  ;;  %s1057_s19 = scalar_lea.vmem [#allocation5], %s2024_s12  ;;  %s1177_s12 = scalar_lea.vmem [#allocation5], %s2035_s27 }
 0x2f4   :  { %v396_v17 = vadd.f32 %v3587_v44, %v395_v15  ;;  %v858_v15 = vld [vmem:[%s857_s18] sm:$0x1]  ;;  %863 = vst [vmem:[#allocation2 + $0x7] sm:$0x1] %v862_v16  ;;  %s1053_s18 = scalar_lea.vmem [#allocation5], %s2023_s11  ;;  %s1173_s11 = scalar_lea.vmem [#allocation5], %s2034_s26 }
 0x2f5   :  { %859 = vst [vmem:[#allocation2 + $0x6] sm:$0x1] %v858_v15  ;;  %v1050_v42 = vld [vmem:[%s1049_s17] sm:$0x1]  ;;  %s2040_s17 = sld [smem:[#allocation4 + $0x582]]  ;;  %s1285_s25 = scalar_lea.vmem [#allocation5], %s2043_s20 }
 0x2f6   :  { %3307 = vtanh.f32 %v396_v17  ;;  %v1054_v43 = vld [vmem:[%s1053_s18] sm:$0x1]  ;;  %s2041_s18 = sld [smem:[#allocation4 + $0x583]]  ;;  %s1289_s26 = scalar_lea.vmem [#allocation5], %s2044_s2 }
 0x2f7   :  { %v1058_v45 = vld [vmem:[%s1057_s19] sm:$0x1]  ;;  %s2042_s19 = sld [smem:[#allocation4 + $0x584]]  ;;  %s2055_s20 = sld [smem:[#allocation4 + $0x681]] }
 0x2f8   :  { %v1170_v59 = vld [vmem:[%s1169_s10] sm:$0x1]  ;;  %s2051_s10 = sld [smem:[#allocation4 + $0x605]]  ;;  %s2056_s2 = sld [smem:[#allocation4 + $0x682]] }
 0x2f9   :  { %v1174_v60 = vld [vmem:[%s1173_s11] sm:$0x1]  ;;  %s2052_s11 = sld [smem:[#allocation4 + $0x606]] }
 0x2fa   :  { %v1178_v61 = vld [vmem:[%s1177_s12] sm:$0x1]  ;;  %s2053_s12 = sld [smem:[#allocation4 + $0x607]] }
 0x2fc   :  { %v864_v23 = vld [vmem:[#allocation2] sm:$0xff] }
 0x2fd   :  { %943 = vst [vmem:[#allocation2] sm:$0x1] %v942_v25  ;;  %947 = vst [vmem:[#allocation2 + $0x1] sm:$0x1] %v946_v26 }
 0x2fe   :  { %951 = vst [vmem:[#allocation2 + $0x2] sm:$0x1] %v950_v28  ;;  %955 = vst [vmem:[#allocation2 + $0x3] sm:$0x1] %v954_v29 }
 0x2ff   :  { %959 = vst [vmem:[#allocation2 + $0x4] sm:$0x1] %v958_v31 }
 0x300   :  { %v3308_v18 = vpop.eup %3307 }
 0x301   :  { %399 = vst [vmem:[#allocation10 + $0x10] sm:$0xff] %v3308_v18  ;;  %2488 = vmatmul.mubr.f32.vlgmr.msra.gmra.mrb[2].mxu1 %v3308_v18 }
 0x302   :  { %3032 = vmatpush3.bf16.msra.mxu1 %v3510_v5  ;;  %2557 = vmatprep.mubr.msk.f32.mxu1 %vm3428_vm0, %v3429_v1 }
 0x303   :  { %3033 = vmatprep.subr.bf16.mxu1 %v3427_v0 }
 0x306   :  { %3035 = vmatpush3.bf16.msra.mxu1 %v3513_v7 }
 0x307   :  { %3036 = vmatprep.subr.bf16.mxu1 %v3427_v0 }
 0x30a   :  { %3038 = vmatpush3.bf16.msra.mxu1 %v3519_v14 }
 0x30b   :  { %3039 = vmatprep.subr.bf16.mxu1 %v3427_v0 }
 0x30e   :  { %3041 = vmatpush3.bf16.msra.mxu1 %v3530_v21 }
 0x30f   :  { %3042 = vmatprep.subr.bf16.mxu1 %v3427_v0 }
 0x312   :  { %3044 = vmatpush3.bf16.msra.mxu1 %v3536_v24 }
 0x313   :  { %3045 = vmatprep.subr.bf16.mxu1 %v3427_v0 }
 0x316   :  { %3047 = vmatpush3.bf16.msra.mxu1 %v3542_v27 }
 0x317   :  { %3048 = vmatprep.subr.bf16.mxu1 %v3427_v0 }
 0x31a   :  { %3050 = vmatpush3.bf16.msra.mxu1 %v3548_v30 }
 0x31b   :  { %3051 = vmatprep.subr.bf16.mxu1 %v3427_v0 }
 0x31e   :  { %3053 = vmatpush3.bf16.msra.mxu1 %v3554_v33 }
 0x31f   :  { %3078 = vmatprep.subr.bf16.mxu1 %v3427_v0 }
 0x3d4   :  { %v499_v32 = vpop.f32.mrb[2].mxu1 }
 0x3d5   :  { %v503_v34 = vadd.f32 %v499_v32, %v432_v19  ;;  %v2489_v35 = vpop.f32.mrb[3].mxu1  ;;  %v962_v32 = vld [vmem:[%s961_s30] sm:$0x1]  ;;  %s1157_s30 = scalar_lea.vmem [#allocation5], %s2030_s24  ;;  %s1273_s24 = scalar_lea.vmem [#allocation5], %s2040_s17 }
 0x3d6   :  { %963 = vst [vmem:[#allocation2 + $0x5] sm:$0x1] %v962_v32  ;;  %v970_v35 = vld [vmem:[%s969_s9] sm:$0x1]  ;;  %s1165_s9 = scalar_lea.vmem [#allocation5], %s2032_s3  ;;  %s1281_s3 = scalar_lea.vmem [#allocation5], %s2042_s19 }
 0x3d7   :  { %v504_v36 = vadd.f32 %v3587_v44, %v503_v34  ;;  %v966_v34 = vld [vmem:[%s965_s6] sm:$0x1]  ;;  %971 = vst [vmem:[#allocation2 + $0x7] sm:$0x1] %v970_v35  ;;  %s1161_s6 = scalar_lea.vmem [#allocation5], %s2031_s0  ;;  %s1277_s0 = scalar_lea.vmem [#allocation5], %s2041_s18 }
 0x3d8   :  { %967 = vst [vmem:[#allocation2 + $0x6] sm:$0x1] %v966_v34  ;;  %v1158_v56 = vld [vmem:[%s1157_s30] sm:$0x1]  ;;  %s2048_s30 = sld [smem:[#allocation4 + $0x602]]  ;;  %s1397_s17 = scalar_lea.vmem [#allocation5], %s2052_s11 }
 0x3d9   :  { %3309 = vtanh.f32 %v504_v36  ;;  %v1162_v57 = vld [vmem:[%s1161_s6] sm:$0x1]  ;;  %s2049_s6 = sld [smem:[#allocation4 + $0x603]]  ;;  %s1401_s18 = scalar_lea.vmem [#allocation5], %s2053_s12 }
 0x3da   :  { %v1166_v58 = vld [vmem:[%s1165_s9] sm:$0x1]  ;;  %s2050_s9 = sld [smem:[#allocation4 + $0x604]]  ;;  %s2054_s19 = sld [smem:[#allocation4 + $0x680]] }
 0x3db   :  { %v1274_v13 = vld [vmem:[%s1273_s24] sm:$0x1]  ;;  %s2060_s24 = sld [smem:[#allocation4 + $0x686]]  ;;  %s2064_s11 = sld [smem:[#allocation4 + $0x702]] }
 0x3dc   :  { %v1278_v15 = vld [vmem:[%s1277_s0] sm:$0x1]  ;;  %s2061_s0 = sld [smem:[#allocation4 + $0x687]]  ;;  %s2065_s12 = sld [smem:[#allocation4 + $0x703]] }
 0x3dd   :  { %v1282_v16 = vld [vmem:[%s1281_s3] sm:$0x1] }
 0x3de   :  { %s1381_s1 = scalar_lea.vmem [#allocation5], %s2048_s30 }
 0x3df   :  { %v972_v41 = vld [vmem:[#allocation2] sm:$0xff]  ;;  %s1385_s15 = scalar_lea.vmem [#allocation5], %s2049_s6 }
 0x3e0   :  { %1051 = vst [vmem:[#allocation2] sm:$0x1] %v1050_v42  ;;  %1055 = vst [vmem:[#allocation2 + $0x1] sm:$0x1] %v1054_v43  ;;  %v1382_v32 = vld [vmem:[%s1381_s1] sm:$0x1] }
 0x3e1   :  { %1059 = vst [vmem:[#allocation2 + $0x2] sm:$0x1] %v1058_v45  ;;  %1063 = vst [vmem:[#allocation2 + $0x3] sm:$0x1] %v1062_v46  ;;  %v1386_v34 = vld [vmem:[%s1385_s15] sm:$0x1] }
 0x3e2   :  { %1067 = vst [vmem:[#allocation2 + $0x4] sm:$0x1] %v1066_v47  ;;  %s1481_s3 = scalar_lea.vmem [#allocation5], %s2054_s19  ;;  %s1505_s30 = scalar_lea.vmem [#allocation5], %s2060_s24 }
 0x3e3   :  { %v3310_v37 = vpop.eup %3309  ;;  %v1482_v46 = vld [vmem:[%s1481_s3] sm:$0x1]  ;;  %s1509_s6 = scalar_lea.vmem [#allocation5], %s2061_s0  ;;  %s2068_s1 = sld [smem:[#allocation4 + $0x706]] }
 0x3e4   :  { %507 = vst [vmem:[#allocation10 + $0x18] sm:$0xff] %v3310_v37  ;;  %2523 = vmatmul.mubr.f32.vlgmr.msra.gmra.mrb[4].mxu0 %v3310_v37  ;;  %s2069_s15 = sld [smem:[#allocation4 + $0x707]]  ;;  %s2072_s24 = sld [smem:[#allocation4 + $0x782]] }
 0x3e5   :  { %3056 = vmatpush3.bf16.msra.mxu0 %v3510_v5  ;;  %2592 = vmatprep.mubr.msk.f32.mxu0 %vm3428_vm0, %v3429_v1  ;;  %s2073_s0 = sld [smem:[#allocation4 + $0x783]]  ;;  %s2074_s3 = sld [smem:[#allocation4 + $0x784]] }
 0x3e6   :  { %3057 = vmatprep.subr.bf16.mxu0 %v3427_v0 }
 0x3e9   :  { %3059 = vmatpush3.bf16.msra.mxu0 %v3513_v7 }
 0x3ea   :  { %3060 = vmatprep.subr.bf16.mxu0 %v3427_v0 }
 0x3ed   :  { %3062 = vmatpush3.bf16.msra.mxu0 %v3519_v14 }
 0x3ee   :  { %3063 = vmatprep.subr.bf16.mxu0 %v3427_v0 }
 0x3f1   :  { %3065 = vmatpush3.bf16.msra.mxu0 %v3530_v21 }
 0x3f2   :  { %3066 = vmatprep.subr.bf16.mxu0 %v3427_v0 }
 0x3f5   :  { %3068 = vmatpush3.bf16.msra.mxu0 %v3536_v24 }
 0x3f6   :  { %3069 = vmatprep.subr.bf16.mxu0 %v3427_v0 }
 0x3f9   :  { %3071 = vmatpush3.bf16.msra.mxu0 %v3542_v27 }
 0x3fa   :  { %3072 = vmatprep.subr.bf16.mxu0 %v3427_v0 }
 0x3fd   :  { %3074 = vmatpush3.bf16.msra.mxu0 %v3548_v30 }
 0x3fe   :  { %3075 = vmatprep.subr.bf16.mxu0 %v3427_v0 }
 0x401   :  { %3077 = vmatpush3.bf16.msra.mxu0 %v3554_v33 }
 0x402   :  { %3102 = vmatprep.subr.bf16.mxu0 %v3427_v0 }
 0x4b7   :  { %v607_v48 = vpop.f32.mrb[4].mxu0 }
 0x4b8   :  { %v611_v49 = vadd.f32 %v607_v48, %v540_v38  ;;  %v2524_v50 = vpop.f32.mrb[5].mxu0  ;;  %v1070_v48 = vld [vmem:[%s1069_s21] sm:$0x1]  ;;  %s2045_s21 = sld [smem:[#allocation4 + $0x587]] }
 0x4b9   :  { %1071 = vst [vmem:[#allocation2 + $0x5] sm:$0x1] %v1070_v48  ;;  %v1078_v50 = vld [vmem:[%s1077_s23] sm:$0x1]  ;;  %s1269_s23 = scalar_lea.vmem [#allocation5], %s2039_s16  ;;  %s1393_s16 = scalar_lea.vmem [#allocation5], %s2051_s10 }
 0x4ba   :  { %v612_v51 = vadd.f32 %v3587_v44, %v611_v49  ;;  %v1074_v49 = vld [vmem:[%s1073_s22] sm:$0x1]  ;;  %1079 = vst [vmem:[#allocation2 + $0x7] sm:$0x1] %v1078_v50  ;;  %s2063_s10 = sld [smem:[#allocation4 + $0x701]] }
 0x4bb   :  { %1075 = vst [vmem:[#allocation2 + $0x6] sm:$0x1] %v1074_v49  ;;  %v1270_v12 = vld [vmem:[%s1269_s23] sm:$0x1]  ;;  %s2059_s23 = sld [smem:[#allocation4 + $0x685]] }
 0x4bc   :  { %3311 = vtanh.f32 %v612_v51 }
 0x4be   :  { %s1293_s27 = scalar_lea.vmem [#allocation5], %s2045_s21  ;;  %s2057_s21 = sld [smem:[#allocation4 + $0x683]] }
 0x4c6   :  { %v3312_v52 = vpop.eup %3311 }
 0x4c7   :  { %615 = vst [vmem:[#allocation10 + $0x20] sm:$0xff] %v3312_v52  ;;  %2558 = vmatmul.mubr.f32.vlgmr.msra.gmra.mrb[4].mxu1 %v3312_v52 }
 0x4c8   :  { %3080 = vmatpush3.bf16.msra.mxu1 %v3510_v5  ;;  %2627 = vmatprep.mubr.msk.f32.mxu1 %vm3428_vm0, %v3429_v1 }
 0x4c9   :  { %3081 = vmatprep.subr.bf16.mxu1 %v3427_v0 }
 0x4cc   :  { %3083 = vmatpush3.bf16.msra.mxu1 %v3513_v7 }
 0x4cd   :  { %3084 = vmatprep.subr.bf16.mxu1 %v3427_v0 }
 0x4d0   :  { %3086 = vmatpush3.bf16.msra.mxu1 %v3519_v14 }
 0x4d1   :  { %3087 = vmatprep.subr.bf16.mxu1 %v3427_v0 }
 0x4d4   :  { %3089 = vmatpush3.bf16.msra.mxu1 %v3530_v21 }
 0x4d5   :  { %3090 = vmatprep.subr.bf16.mxu1 %v3427_v0 }
 0x4d8   :  { %3092 = vmatpush3.bf16.msra.mxu1 %v3536_v24 }
 0x4d9   :  { %3093 = vmatprep.subr.bf16.mxu1 %v3427_v0 }
 0x4dc   :  { %3095 = vmatpush3.bf16.msra.mxu1 %v3542_v27 }
 0x4dd   :  { %3096 = vmatprep.subr.bf16.mxu1 %v3427_v0 }
 0x4e0   :  { %3098 = vmatpush3.bf16.msra.mxu1 %v3548_v30 }
 0x4e1   :  { %3099 = vmatprep.subr.bf16.mxu1 %v3427_v0 }
 0x4e4   :  { %3101 = vmatpush3.bf16.msra.mxu1 %v3554_v33 }
 0x4e5   :  { %3126 = vmatprep.subr.bf16.mxu1 %v3427_v0 }
 0x59a   :  { %v715_v62 = vpop.f32.mrb[4].mxu1 }
 0x59b   :  { %v719_v63 = vadd.f32 %v715_v62, %v648_v53  ;;  %v2559_v2 = vpop.f32.mrb[5].mxu1  ;;  %v1182_v62 = vld [vmem:[%s1181_s13] sm:$0x1]  ;;  %s1373_s13 = scalar_lea.vmem [#allocation5], %s2046_s28 }
 0x59c   :  { %v1374_v29 = vld [vmem:[%s1373_s13] sm:$0x1]  ;;  %s2066_s13 = sld [smem:[#allocation4 + $0x704]] }
 0x59d   :  { %v720_v3 = vadd.f32 %v3587_v44, %v719_v63  ;;  %v1186_v63 = vld [vmem:[%s1185_s14] sm:$0x1]  ;;  %s1377_s14 = scalar_lea.vmem [#allocation5], %s2047_s29  ;;  %s1501_s29 = scalar_lea.vmem [#allocation5], %s2059_s23 }
 0x59e   :  { %v1378_v31 = vld [vmem:[%s1377_s14] sm:$0x1]  ;;  %s2067_s14 = sld [smem:[#allocation4 + $0x705]]  ;;  %s2071_s23 = sld [smem:[#allocation4 + $0x781]] }
 0x59f   :  { %3313 = vtanh.f32 %v720_v3 }
 0x5a2   :  { %s1605_s19 = scalar_lea.vmem [#allocation5], %s2066_s13  ;;  %s3430_s13 = smov [#allocation10]  }
 0x5a9   :  { %v3314_v4 = vpop.eup %3313 }
 0x5aa   :  { %723 = vst [vmem:[#allocation10 + $0x28] sm:$0xff] %v3314_v4  ;;  %2593 = vmatmul.mubr.f32.vlgmr.msra.gmra.mrb[6].mxu0 %v3314_v4 }
 0x5ab   :  { %3104 = vmatpush3.bf16.msra.mxu0 %v3510_v5  ;;  %2662 = vmatprep.mubr.msk.f32.mxu0 %vm3428_vm0, %v3429_v1 }
 0x5ac   :  { %3105 = vmatprep.subr.bf16.mxu0 %v3427_v0 }
 0x5af   :  { %3107 = vmatpush3.bf16.msra.mxu0 %v3513_v7 }
 0x5b0   :  { %3108 = vmatprep.subr.bf16.mxu0 %v3427_v0 }
 0x5b3   :  { %3110 = vmatpush3.bf16.msra.mxu0 %v3519_v14 }
 0x5b4   :  { %3111 = vmatprep.subr.bf16.mxu0 %v3427_v0 }
 0x5b7   :  { %3113 = vmatpush3.bf16.msra.mxu0 %v3530_v21 }
 0x5b8   :  { %3114 = vmatprep.subr.bf16.mxu0 %v3427_v0 }
 0x5bb   :  { %3116 = vmatpush3.bf16.msra.mxu0 %v3536_v24 }
 0x5bc   :  { %3117 = vmatprep.subr.bf16.mxu0 %v3427_v0 }
 0x5bf   :  { %3119 = vmatpush3.bf16.msra.mxu0 %v3542_v27 }
 0x5c0   :  { %3120 = vmatprep.subr.bf16.mxu0 %v3427_v0 }
 0x5c3   :  { %3122 = vmatpush3.bf16.msra.mxu0 %v3548_v30 }
 0x5c4   :  { %3123 = vmatprep.subr.bf16.mxu0 %v3427_v0 }
 0x5c7   :  { %3125 = vmatpush3.bf16.msra.mxu0 %v3554_v33 }
 0x5c8   :  { %3150 = vmatprep.subr.bf16.mxu0 %v3427_v0 }
 0x67d   :  { %v823_v17 = vpop.f32.mrb[6].mxu0 }
 0x67e   :  { %v827_v18 = vadd.f32 %v823_v17, %v756_v6  ;;  %v2594_v19 = vpop.f32.mrb[7].mxu0  ;;  %v3763_v6 = vld [vmem:[%s3861_s4] ss:$0 sm:$0xff]  ;;  %s2038_s4 = sld [smem:[#allocation4 + $0x580]] }
 0x67f   :  { %v1286_v17 = vld [vmem:[%s1285_s25] sm:$0x1]  ;;  %s1485_s25 = scalar_lea.vmem [#allocation5], %s2055_s20  ;;  %s1609_s20 = scalar_lea.vmem [#allocation5], %s2067_s14 }
 0x680   :  { %v828_v20 = vadd.f32 %v3587_v44, %v827_v18  ;;  %v1290_v18 = vld [vmem:[%s1289_s26] sm:$0x1]  ;;  %s1489_s26 = scalar_lea.vmem [#allocation5], %s2056_s2  ;;  %s1613_s2 = scalar_lea.vmem [#allocation5], %s2068_s1 }
 0x681   :  { %v1294_v19 = vld [vmem:[%s1293_s27] sm:$0x1]  ;;  %s1493_s27 = scalar_lea.vmem [#allocation5], %s2057_s21  ;;  %s1617_s21 = scalar_lea.vmem [#allocation5], %s2069_s15 }
 0x682   :  { %3315 = vtanh.f32 %v828_v20  ;;  %v1486_v47 = vld [vmem:[%s1485_s25] sm:$0x1]  ;;  %s2075_s25 = sld [smem:[#allocation4 + $0x785]]  ;;  %s1809_s14 = sshll.u32 %s3430_s13, 4  ;;  %s1810_s14 = int_to_ptr.vmem [resolvable:$true] %s1809_s14 }
 0x683   :  { %v1490_v48 = vld [vmem:[%s1489_s26] sm:$0x1]  ;;  %s2076_s26 = sld [smem:[#allocation4 + $0x786]]  ;;  %s3392_s1 = scalar_lea.vmem %s1810_s14, 2048 }
 0x684   :  { %s1265_s22 = scalar_lea.vmem [#allocation5], %s2038_s4  ;;  %s1389_s4 = scalar_lea.vmem [#allocation5], %s2050_s9  ;;  %v1494_v49 = vld [vmem:[%s1493_s27] sm:$0x1] }
 0x685   :  { %v1266_v11 = vld [vmem:[%s1265_s22] sm:$0x1]  ;;  %s2058_s22 = sld [smem:[#allocation4 + $0x684]]  ;;  %s2062_s9 = sld [smem:[#allocation4 + $0x700]] }
 0x686   :  { %v1390_v35 = vld [vmem:[%s1389_s4] sm:$0x1]  ;;  %s2077_s27 = sld [smem:[#allocation4 + $0x787]]  ;;  %p3393_p7 = scmp.ne.s32.totalorder %s1810_s14, %s3392_s1 }
 0x687   :  { %p3397_p8 = scmp.lt.s32.totalorder %s1810_s14, %s1810_s14  ;;  %p3398_p9 = scmp.lt.s32.totalorder %s3392_s1, %s3392_s1 }
 0x689   :  { %p3399_p10 = por %p3398_p9, %p3397_p8 }
 0x68b   :  { %s1497_s28 = scalar_lea.vmem [#allocation5], %s2058_s22  ;;  %s1589_s4 = scalar_lea.vmem [#allocation5], %s2062_s9 }
 0x68c   :  { %v3316_v22 = vpop.eup %3315  ;;  %v1498_v50 = vld [vmem:[%s1497_s28] sm:$0x1]  ;;  %s2070_s22 = sld [smem:[#allocation4 + $0x780]]  ;;  %s1713_s9 = scalar_lea.vmem [#allocation5], %s2074_s3 }
 0x68d   :  { %831 = vst [vmem:[#allocation10 + $0x30] sm:$0xff] %v3316_v22  ;;  %2628 = vmatmul.mubr.f32.vlgmr.msra.gmra.mrb[6].mxu1 %v3316_v22  ;;  %p3400_p11 = pnand %p3399_p10, %p3393_p7 }
 0x68e   :  { %3128 = vmatpush3.bf16.msra.mxu1 %v3510_v5  ;;  %2697 = vmatprep.mubr.msk.f32.mxu1 %vm3428_vm0, %v3429_v1 }
 0x68f   :  { %3129 = vmatprep.subr.bf16.mxu1 %v3427_v0 }
 0x692   :  { %3131 = vmatpush3.bf16.msra.mxu1 %v3513_v7  ;;  %s1697_s28 = scalar_lea.vmem [#allocation5], %s2070_s22 }
 0x693   :  { %3132 = vmatprep.subr.bf16.mxu1 %v3427_v0 }
 0x696   :  { %3134 = vmatpush3.bf16.msra.mxu1 %v3519_v14 }
 0x697   :  { %3135 = vmatprep.subr.bf16.mxu1 %v3427_v0 }
 0x69a   :  { %3137 = vmatpush3.bf16.msra.mxu1 %v3530_v21 }
 0x69b   :  { %3138 = vmatprep.subr.bf16.mxu1 %v3427_v0 }
 0x69e   :  { %3140 = vmatpush3.bf16.msra.mxu1 %v3536_v24 }
 0x69f   :  { %3141 = vmatprep.subr.bf16.mxu1 %v3427_v0 }
 0x6a2   :  { %3143 = vmatpush3.bf16.msra.mxu1 %v3542_v27 }
 0x6a3   :  { %3144 = vmatprep.subr.bf16.mxu1 %v3427_v0 }
 0x6a6   :  { %3146 = vmatpush3.bf16.msra.mxu1 %v3548_v30 }
 0x6a7   :  { %3147 = vmatprep.subr.bf16.mxu1 %v3427_v0 }
 0x6aa   :  { %3149 = vmatpush3.bf16.msra.mxu1 %v3554_v33 }
 0x6ab   :  { %3174 = vmatprep.subr.bf16.mxu1 %v3427_v0 }
 0x760   :  { %v931_v36 = vpop.f32.mrb[6].mxu1 }
 0x761   :  { %v935_v37 = vadd.f32 %v931_v36, %v864_v23  ;;  %v2629_v38 = vpop.f32.mrb[7].mxu1  ;;  %v1394_v36 = vld [vmem:[%s1393_s16] sm:$0x1]  ;;  %s1593_s16 = scalar_lea.vmem [#allocation5], %s2063_s10  ;;  %s1717_s10 = scalar_lea.vmem [#allocation5], %s2075_s25 }
 0x762   :  { %v1402_v38 = vld [vmem:[%s1401_s18] sm:$0x1]  ;;  %s1601_s18 = scalar_lea.vmem [#allocation5], %s2065_s12  ;;  %s1725_s12 = scalar_lea.vmem [#allocation5], %s2077_s27 }
 0x763   :  { %v936_v39 = vadd.f32 %v3587_v44, %v935_v37  ;;  %v1398_v37 = vld [vmem:[%s1397_s17] sm:$0x1]  ;;  %s1597_s17 = scalar_lea.vmem [#allocation5], %s2064_s11  ;;  %s1721_s11 = scalar_lea.vmem [#allocation5], %s2076_s26 }
 0x765   :  { %3317 = vtanh.f32 %v936_v39 }
 0x76f   :  { %v3318_v40 = vpop.eup %3317 }
 0x770   :  { %939 = vst [vmem:[#allocation10 + $0x38] sm:$0xff] %v3318_v40  ;;  %2663 = vmatmul.mubr.f32.vlgmr.msra.gmra.mrb[8].mxu0 %v3318_v40 }
 0x771   :  { %3152 = vmatpush3.bf16.msra.mxu0 %v3510_v5  ;;  %2732 = vmatprep.mubr.msk.f32.mxu0 %vm3428_vm0, %v3429_v1 }
 0x772   :  { %3153 = vmatprep.subr.bf16.mxu0 %v3427_v0 }
 0x775   :  { %3155 = vmatpush3.bf16.msra.mxu0 %v3513_v7 }
 0x776   :  { %3156 = vmatprep.subr.bf16.mxu0 %v3427_v0 }
 0x779   :  { %3158 = vmatpush3.bf16.msra.mxu0 %v3519_v14 }
 0x77a   :  { %3159 = vmatprep.subr.bf16.mxu0 %v3427_v0 }
 0x77d   :  { %3161 = vmatpush3.bf16.msra.mxu0 %v3530_v21 }
 0x77e   :  { %3162 = vmatprep.subr.bf16.mxu0 %v3427_v0 }
 0x781   :  { %3164 = vmatpush3.bf16.msra.mxu0 %v3536_v24 }
 0x782   :  { %3165 = vmatprep.subr.bf16.mxu0 %v3427_v0 }
 0x785   :  { %3167 = vmatpush3.bf16.msra.mxu0 %v3542_v27 }
 0x786   :  { %3168 = vmatprep.subr.bf16.mxu0 %v3427_v0 }
 0x789   :  { %3170 = vmatpush3.bf16.msra.mxu0 %v3548_v30 }
 0x78a   :  { %3171 = vmatprep.subr.bf16.mxu0 %v3427_v0 }
 0x78d   :  { %3173 = vmatpush3.bf16.msra.mxu0 %v3554_v33 }
 0x78e   :  { %3198 = vmatprep.subr.bf16.mxu0 %v3427_v0 }
 0x843   :  { %v1039_v51 = vpop.f32.mrb[8].mxu0 }
 0x844   :  { %v1043_v52 = vadd.f32 %v1039_v51, %v972_v41  ;;  %v2664_v53 = vpop.f32.mrb[9].mxu0  ;;  %v1502_v51 = vld [vmem:[%s1501_s29] sm:$0x1]  ;;  %s1701_s29 = scalar_lea.vmem [#allocation5], %s2071_s23 }
 0x845   :  { %v1510_v53 = vld [vmem:[%s1509_s6] sm:$0x1]  ;;  %s1709_s6 = scalar_lea.vmem [#allocation5], %s2073_s0 }
 0x846   :  { %v1044_v54 = vadd.f32 %v3587_v44, %v1043_v52  ;;  %v1080_v44 = vld [vmem:[#allocation2] sm:$0xff] }
 0x847   :  { %1159 = vst [vmem:[#allocation2] sm:$0x1] %v1158_v56  ;;  %1163 = vst [vmem:[#allocation2 + $0x1] sm:$0x1] %v1162_v57  ;;  %v1506_v52 = vld [vmem:[%s1505_s30] sm:$0x1] }
 0x848   :  { %3319 = vtanh.f32 %v1044_v54  ;;  %1167 = vst [vmem:[#allocation2 + $0x2] sm:$0x1] %v1166_v58  ;;  %1171 = vst [vmem:[#allocation2 + $0x3] sm:$0x1] %v1170_v59  ;;  %s1705_s30 = scalar_lea.vmem [#allocation5], %s2072_s24 }
 0x849   :  { %1175 = vst [vmem:[#allocation2 + $0x4] sm:$0x1] %v1174_v60  ;;  %1179 = vst [vmem:[#allocation2 + $0x5] sm:$0x1] %v1178_v61 }
 0x84a   :  { %1183 = vst [vmem:[#allocation2 + $0x6] sm:$0x1] %v1182_v62  ;;  %1187 = vst [vmem:[#allocation2 + $0x7] sm:$0x1] %v1186_v63  ;;  %v1698_v63 = vld [vmem:[%s1697_s28] sm:$0x1] }
 0x851   :  { %v1188_v10 = vld [vmem:[#allocation2] sm:$0xff] }
 0x852   :  { %v3320_v55 = vpop.eup %3319  ;;  %1267 = vst [vmem:[#allocation2] sm:$0x1] %v1266_v11  ;;  %1271 = vst [vmem:[#allocation2 + $0x1] sm:$0x1] %v1270_v12  ;;  %v1726_v11 = vld [vmem:[%s1725_s12] sm:$0x1] }
 0x853   :  { %1047 = vst [vmem:[#allocation10 + $0x40] sm:$0xff] %v3320_v55  ;;  %2698 = vmatmul.mubr.f32.vlgmr.msra.gmra.mrb[8].mxu1 %v3320_v55  ;;  %1275 = vst [vmem:[#allocation2 + $0x2] sm:$0x1] %v1274_v13 }
 0x854   :  { %3176 = vmatpush3.bf16.msra.mxu1 %v3510_v5  ;;  %2767 = vmatprep.mubr.msk.f32.mxu1 %vm3428_vm0, %v3429_v1  ;;  %1279 = vst [vmem:[#allocation2 + $0x3] sm:$0x1] %v1278_v15  ;;  %1283 = vst [vmem:[#allocation2 + $0x4] sm:$0x1] %v1282_v16 }
 0x855   :  { %3177 = vmatprep.subr.bf16.mxu1 %v3427_v0  ;;  %1287 = vst [vmem:[#allocation2 + $0x5] sm:$0x1] %v1286_v17  ;;  %1291 = vst [vmem:[#allocation2 + $0x6] sm:$0x1] %v1290_v18 }
 0x856   :  { %1295 = vst [vmem:[#allocation2 + $0x7] sm:$0x1] %v1294_v19 }
 0x858   :  { %3179 = vmatpush3.bf16.msra.mxu1 %v3513_v7 }
 0x859   :  { %3180 = vmatprep.subr.bf16.mxu1 %v3427_v0 }
 0x85c   :  { %3182 = vmatpush3.bf16.msra.mxu1 %v3519_v14 }
 0x85d   :  { %3183 = vmatprep.subr.bf16.mxu1 %v3427_v0  ;;  %v1296_v28 = vld [vmem:[#allocation2] sm:$0xff] }
 0x85e   :  { %1375 = vst [vmem:[#allocation2] sm:$0x1] %v1374_v29  ;;  %1379 = vst [vmem:[#allocation2 + $0x1] sm:$0x1] %v1378_v31 }
 0x85f   :  { %1383 = vst [vmem:[#allocation2 + $0x2] sm:$0x1] %v1382_v32  ;;  %1387 = vst [vmem:[#allocation2 + $0x3] sm:$0x1] %v1386_v34 }
 0x860   :  { %3185 = vmatpush3.bf16.msra.mxu1 %v3530_v21  ;;  %1391 = vst [vmem:[#allocation2 + $0x4] sm:$0x1] %v1390_v35  ;;  %1395 = vst [vmem:[#allocation2 + $0x5] sm:$0x1] %v1394_v36 }
 0x861   :  { %3186 = vmatprep.subr.bf16.mxu1 %v3427_v0  ;;  %1399 = vst [vmem:[#allocation2 + $0x6] sm:$0x1] %v1398_v37  ;;  %1403 = vst [vmem:[#allocation2 + $0x7] sm:$0x1] %v1402_v38 }
 0x864   :  { %3188 = vmatpush3.bf16.msra.mxu1 %v3536_v24 }
 0x865   :  { %3189 = vmatprep.subr.bf16.mxu1 %v3427_v0 }
 0x868   :  { %3191 = vmatpush3.bf16.msra.mxu1 %v3542_v27  ;;  %v1404_v45 = vld [vmem:[#allocation2] sm:$0xff] }
 0x869   :  { %3192 = vmatprep.subr.bf16.mxu1 %v3427_v0  ;;  %1483 = vst [vmem:[#allocation2] sm:$0x1] %v1482_v46  ;;  %1487 = vst [vmem:[#allocation2 + $0x1] sm:$0x1] %v1486_v47 }
 0x86a   :  { %1491 = vst [vmem:[#allocation2 + $0x2] sm:$0x1] %v1490_v48  ;;  %1495 = vst [vmem:[#allocation2 + $0x3] sm:$0x1] %v1494_v49 }
 0x86b   :  { %1499 = vst [vmem:[#allocation2 + $0x4] sm:$0x1] %v1498_v50  ;;  %1503 = vst [vmem:[#allocation2 + $0x5] sm:$0x1] %v1502_v51 }
 0x86c   :  { %3194 = vmatpush3.bf16.msra.mxu1 %v3548_v30  ;;  %1507 = vst [vmem:[#allocation2 + $0x6] sm:$0x1] %v1506_v52  ;;  %1511 = vst [vmem:[#allocation2 + $0x7] sm:$0x1] %v1510_v53 }
 0x86d   :  { %3195 = vmatprep.subr.bf16.mxu1 %v3427_v0 }
 0x870   :  { %3197 = vmatpush3.bf16.msra.mxu1 %v3554_v33 }
 0x871   :  { %3222 = vmatprep.subr.bf16.mxu1 %v3427_v0 }
 0x926   :  { %v1147_v2 = vpop.f32.mrb[8].mxu1 }
 0x927   :  { %v1151_v3 = vadd.f32 %v1147_v2, %v1080_v44  ;;  %v2699_v4 = vpop.f32.mrb[9].mxu1  ;;  %v1702_v2 = vld [vmem:[%s1701_s29] sm:$0x1] }
 0x928   :  { %v1710_v4 = vld [vmem:[%s1709_s6] sm:$0x1] }
 0x929   :  { %v1152_v8 = vadd.f32 %v3763_v6, %v1151_v3  ;;  %v1706_v3 = vld [vmem:[%s1705_s30] sm:$0x1] }
 0x92b   :  { %3321 = vtanh.f32 %v1152_v8  ;;  %v1714_v8 = vld [vmem:[%s1713_s9] sm:$0x1] }
 0x935   :  { %v3322_v9 = vpop.eup %3321 }
 0x936   :  { %1155 = vst [vmem:[#allocation10 + $0x48] sm:$0xff] %v3322_v9  ;;  %2733 = vmatmul.mubr.f32.vlgmr.msra.gmra.mrb[10].mxu0 %v3322_v9  ;;  %v1718_v9 = vld [vmem:[%s1717_s10] sm:$0x1] }
 0x937   :  { %3200 = vmatpush3.bf16.msra.mxu0 %v3510_v5  ;;  %2802 = vmatprep.mubr.msk.f32.mxu0 %vm3428_vm0, %v3429_v1 }
 0x938   :  { %3201 = vmatprep.subr.bf16.mxu0 %v3427_v0 }
 0x93b   :  { %3203 = vmatpush3.bf16.msra.mxu0 %v3513_v7 }
 0x93c   :  { %3204 = vmatprep.subr.bf16.mxu0 %v3427_v0 }
 0x93f   :  { %3206 = vmatpush3.bf16.msra.mxu0 %v3519_v14 }
 0x940   :  { %3207 = vmatprep.subr.bf16.mxu0 %v3427_v0 }
 0x943   :  { %3209 = vmatpush3.bf16.msra.mxu0 %v3530_v21 }
 0x944   :  { %3210 = vmatprep.subr.bf16.mxu0 %v3427_v0 }
 0x947   :  { %3212 = vmatpush3.bf16.msra.mxu0 %v3536_v24 }
 0x948   :  { %3213 = vmatprep.subr.bf16.mxu0 %v3427_v0 }
 0x94b   :  { %3215 = vmatpush3.bf16.msra.mxu0 %v3542_v27 }
 0x94c   :  { %3216 = vmatprep.subr.bf16.mxu0 %v3427_v0 }
 0x94f   :  { %3218 = vmatpush3.bf16.msra.mxu0 %v3548_v30 }
 0x950   :  { %3219 = vmatprep.subr.bf16.mxu0 %v3427_v0 }
 0x953   :  { %3221 = vmatpush3.bf16.msra.mxu0 %v3554_v33 }
 0x954   :  { %3246 = vmatprep.subr.bf16.mxu0 %v3427_v0 }
 0xa09   :  { %v1255_v20 = vpop.f32.mrb[10].mxu0 }
 0xa0a   :  { %v1259_v22 = vadd.f32 %v1255_v20, %v1188_v10  ;;  %v2734_v23 = vpop.f32.mrb[11].mxu0  ;;  %v1722_v10 = vld [vmem:[%s1721_s11] sm:$0x1] }
 0xa0c   :  { %v1260_v25 = vadd.f32 %v3763_v6, %v1259_v22 }
 0xa0e   :  { %3323 = vtanh.f32 %v1260_v25 }
 0xa18   :  { %v3324_v26 = vpop.eup %3323 }
 0xa19   :  { %1263 = vst [vmem:[#allocation10 + $0x50] sm:$0xff] %v3324_v26  ;;  %2768 = vmatmul.mubr.f32.vlgmr.msra.gmra.mrb[10].mxu1 %v3324_v26 }
 0xa1a   :  { %3224 = vmatpush3.bf16.msra.mxu1 %v3510_v5  ;;  %2837 = vmatprep.mubr.msk.f32.mxu1 %vm3428_vm0, %v3429_v1 }
 0xa1b   :  { %3225 = vmatprep.subr.bf16.mxu1 %v3427_v0 }
 0xa1e   :  { %3227 = vmatpush3.bf16.msra.mxu1 %v3513_v7 }
 0xa1f   :  { %3228 = vmatprep.subr.bf16.mxu1 %v3427_v0 }
 0xa22   :  { %3230 = vmatpush3.bf16.msra.mxu1 %v3519_v14 }
 0xa23   :  { %3231 = vmatprep.subr.bf16.mxu1 %v3427_v0 }
 0xa26   :  { %3233 = vmatpush3.bf16.msra.mxu1 %v3530_v21 }
 0xa27   :  { %3234 = vmatprep.subr.bf16.mxu1 %v3427_v0 }
 0xa2a   :  { %3236 = vmatpush3.bf16.msra.mxu1 %v3536_v24 }
 0xa2b   :  { %3237 = vmatprep.subr.bf16.mxu1 %v3427_v0 }
 0xa2e   :  { %3239 = vmatpush3.bf16.msra.mxu1 %v3542_v27 }
 0xa2f   :  { %3240 = vmatprep.subr.bf16.mxu1 %v3427_v0 }
 0xa32   :  { %3242 = vmatpush3.bf16.msra.mxu1 %v3548_v30 }
 0xa33   :  { %3243 = vmatprep.subr.bf16.mxu1 %v3427_v0 }
 0xa36   :  { %3245 = vmatpush3.bf16.msra.mxu1 %v3554_v33 }
 0xa37   :  { %3270 = vmatprep.subr.bf16.mxu1 %v3427_v0 }
 0xaec   :  { %v1363_v39 = vpop.f32.mrb[10].mxu1 }
 0xaed   :  { %v1367_v40 = vadd.f32 %v1363_v39, %v1296_v28  ;;  %v2769_v41 = vpop.f32.mrb[11].mxu1 }
 0xaef   :  { %v1368_v42 = vadd.f32 %v3763_v6, %v1367_v40 }
 0xaf1   :  { %3325 = vtanh.f32 %v1368_v42 }
 0xafb   :  { %v3326_v43 = vpop.eup %3325 }
 0xafc   :  { %1371 = vst [vmem:[#allocation10 + $0x58] sm:$0xff] %v3326_v43  ;;  %2803 = vmatmul.mubr.f32.vlgmr.msra.gmra.mrb[12].mxu0 %v3326_v43 }
 0xafd   :  { %3248 = vmatpush3.bf16.msra.mxu0 %v3510_v5  ;;  %2872 = vmatprep.mubr.msk.f32.mxu0 %vm3428_vm0, %v3429_v1 }
 0xafe   :  { %3249 = vmatprep.subr.bf16.mxu0 %v3427_v0 }
 0xb01   :  { %3251 = vmatpush3.bf16.msra.mxu0 %v3513_v7 }
 0xb02   :  { %3252 = vmatprep.subr.bf16.mxu0 %v3427_v0 }
 0xb05   :  { %3254 = vmatpush3.bf16.msra.mxu0 %v3519_v14 }
 0xb06   :  { %3255 = vmatprep.subr.bf16.mxu0 %v3427_v0 }
 0xb09   :  { %3257 = vmatpush3.bf16.msra.mxu0 %v3530_v21 }
 0xb0a   :  { %3258 = vmatprep.subr.bf16.mxu0 %v3427_v0 }
 0xb0d   :  { %3260 = vmatpush3.bf16.msra.mxu0 %v3536_v24 }
 0xb0e   :  { %3261 = vmatprep.subr.bf16.mxu0 %v3427_v0 }
 0xb11   :  { %3263 = vmatpush3.bf16.msra.mxu0 %v3542_v27 }
 0xb12   :  { %3264 = vmatprep.subr.bf16.mxu0 %v3427_v0 }
 0xb15   :  { %3266 = vmatpush3.bf16.msra.mxu0 %v3548_v30 }
 0xb16   :  { %3267 = vmatprep.subr.bf16.mxu0 %v3427_v0 }
 0xb19   :  { %3269 = vmatpush3.bf16.msra.mxu0 %v3554_v33 }
 0xbcf   :  { %v1471_v54 = vpop.f32.mrb[12].mxu0 }
 0xbd0   :  { %v1475_v55 = vadd.f32 %v1471_v54, %v1404_v45  ;;  %v2804_v44 = vpop.f32.mrb[13].mxu0 }
 0xbd2   :  { %v1476_v56 = vadd.f32 %v3763_v6, %v1475_v55 }
 0xbd4   :  { %3327 = vtanh.f32 %v1476_v56 }
 0xbde   :  { %v3328_v57 = vpop.eup %3327 }
 0xbdf   :  { %1479 = vst [vmem:[#allocation10 + $0x60] sm:$0xff] %v3328_v57  ;;  %2838 = vmatmul.mubr.f32.vlgmr.msra.gmra.mrb[12].mxu1 %v3328_v57 }
 0xbe0   :  { %3272 = vmatpush3.bf16.msra.mxu1 %v3510_v5  ;;  %2907 = vmatprep.mubr.msk.f32.mxu1 %vm3428_vm0, %v3429_v1  ;;  %v1512_v1 = vld [vmem:[#allocation2] sm:$0xff] }
 0xbe1   :  { %3273 = vmatprep.subr.bf16.mxu1 %v3427_v0  ;;  %v1590_v5 = vld [vmem:[%s1589_s4] sm:$0x1] }
 0xbe2   :  { %1591 = vst [vmem:[#allocation2] sm:$0x1] %v1590_v5 }
 0xbe4   :  { %3275 = vmatpush3.bf16.msra.mxu1 %v3513_v7  ;;  %v1594_v7 = vld [vmem:[%s1593_s16] sm:$0x1] }
 0xbe5   :  { %3276 = vmatprep.subr.bf16.mxu1 %v3427_v0  ;;  %1595 = vst [vmem:[#allocation2 + $0x1] sm:$0x1] %v1594_v7 }
 0xbe8   :  { %3278 = vmatpush3.bf16.msra.mxu1 %v3519_v14  ;;  %v1598_v14 = vld [vmem:[%s1597_s17] sm:$0x1] }
 0xbe9   :  { %3279 = vmatprep.subr.bf16.mxu1 %v3427_v0  ;;  %1599 = vst [vmem:[#allocation2 + $0x2] sm:$0x1] %v1598_v14 }
 0xbec   :  { %3281 = vmatpush3.bf16.msra.mxu1 %v3530_v21  ;;  %v1606_v21 = vld [vmem:[%s1605_s19] sm:$0x1] }
 0xbed   :  { %3282 = vmatprep.subr.bf16.mxu1 %v3427_v0  ;;  %1607 = vst [vmem:[#allocation2 + $0x4] sm:$0x1] %v1606_v21 }
 0xbf0   :  { %3284 = vmatpush3.bf16.msra.mxu1 %v3536_v24  ;;  %v1610_v24 = vld [vmem:[%s1609_s20] sm:$0x1] }
 0xbf1   :  { %3285 = vmatprep.subr.bf16.mxu1 %v3427_v0  ;;  %1611 = vst [vmem:[#allocation2 + $0x5] sm:$0x1] %v1610_v24 }
 0xbf4   :  { %3287 = vmatpush3.bf16.msra.mxu1 %v3542_v27  ;;  %v1614_v27 = vld [vmem:[%s1613_s2] sm:$0x1] }
 0xbf5   :  { %3288 = vmatprep.subr.bf16.mxu1 %v3427_v0  ;;  %1615 = vst [vmem:[#allocation2 + $0x6] sm:$0x1] %v1614_v27 }
 0xbf8   :  { %3290 = vmatpush3.bf16.msra.mxu1 %v3548_v30  ;;  %v1618_v30 = vld [vmem:[%s1617_s21] sm:$0x1] }
 0xbf9   :  { %3291 = vmatprep.subr.bf16.mxu1 %v3427_v0  ;;  %v1602_v0 = vld [vmem:[%s1601_s18] sm:$0x1]  ;;  %1619 = vst [vmem:[#allocation2 + $0x7] sm:$0x1] %v1618_v30 }
 0xbfa   :  { %1603 = vst [vmem:[#allocation2 + $0x3] sm:$0x1] %v1602_v0 }
 0xbfc   :  { %3293 = vmatpush3.bf16.msra.mxu1 %v3554_v33 }
 0xc01   :  { %v1620_v62 = vld [vmem:[#allocation2] sm:$0xff] }
 0xc02   :  { %1699 = vst [vmem:[#allocation2] sm:$0x1] %v1698_v63  ;;  %1703 = vst [vmem:[#allocation2 + $0x1] sm:$0x1] %v1702_v2 }
 0xc03   :  { %1707 = vst [vmem:[#allocation2 + $0x2] sm:$0x1] %v1706_v3  ;;  %1711 = vst [vmem:[#allocation2 + $0x3] sm:$0x1] %v1710_v4 }
 0xc04   :  { %1715 = vst [vmem:[#allocation2 + $0x4] sm:$0x1] %v1714_v8  ;;  %1719 = vst [vmem:[#allocation2 + $0x5] sm:$0x1] %v1718_v9 }
 0xc05   :  { %1723 = vst [vmem:[#allocation2 + $0x6] sm:$0x1] %v1722_v10  ;;  %1727 = vst [vmem:[#allocation2 + $0x7] sm:$0x1] %v1726_v11 }
 0xc0c   :  { %v1728_v18 = vld [vmem:[#allocation2] sm:$0xff] }
 0xcb2   :  { %v1579_v33 = vpop.f32.mrb[12].mxu1 }
 0xcb3   :  { %v1583_v58 = vadd.f32 %v1579_v33, %v1512_v1  ;;  %v2839_v59 = vpop.f32.mrb[13].mxu1 }
 0xcb5   :  { %v1584_v60 = vadd.f32 %v3763_v6, %v1583_v58 }
 0xcb7   :  { %3329 = vtanh.f32 %v1584_v60 }
 0xcc1   :  { %v3330_v61 = vpop.eup %3329 }
 0xcc2   :  { %1587 = vst [vmem:[#allocation10 + $0x68] sm:$0xff] %v3330_v61  ;;  %2873 = vmatmul.mubr.f32.vlgmr.msra.gmra.mrb[14].mxu0 %v3330_v61 }
 0xd95   :  { %v1687_v12 = vpop.f32.mrb[14].mxu0 }
 0xd96   :  { %v1691_v13 = vadd.f32 %v1687_v12, %v1620_v62  ;;  %v2874_v15 = vpop.f32.mrb[15].mxu0 }
 0xd98   :  { %v1692_v16 = vadd.f32 %v3763_v6, %v1691_v13 }
 0xd9a   :  { %3331 = vtanh.f32 %v1692_v16 }
 0xda4   :  { %v3332_v17 = vpop.eup %3331 }
 0xda5   :  { %1695 = vst [vmem:[#allocation10 + $0x70] sm:$0xff] %v3332_v17  ;;  %2908 = vmatmul.mubr.f32.vlgmr.msra.gmra.mrb[14].mxu1 %v3332_v17 }
 0xe78   :  { %v1795_v19 = vpop.f32.mrb[14].mxu1 }
 0xe79   :  { %v1799_v20 = vadd.f32 %v1795_v19, %v1728_v18  ;;  %v2909_v22 = vpop.f32.mrb[15].mxu1 }
 0xe7b   :  { %v1800_v23 = vadd.f32 %v3763_v6, %v1799_v20 }
 0xe7d   :  { %3333 = vtanh.f32 %v1800_v23 }
 0xe87   :  { %v3334_v25 = vpop.eup %3333 }
 0xe88   :  { %1803 = vst [vmem:[#allocation10 + $0x78] sm:$0xff] %v3334_v25 }
 0xe89   :  { %3403 = shalt.err (!%p3400_p11)
}
 0xe8a   :  { %s3404_s16 = scalar_lea.hbm %s3862_s5, 2048 }
 0xe8b   :  { %p3405_p12 = scmp.ne.s32.totalorder %s3862_s5, %s3404_s16  ;;  %p3408_p13 = scmp.lt.u32.totalorder %s3404_s16, %s3862_s5 }
 0xe8d   :  { %p3410_p0 = pnand %p3408_p13, %p3405_p12 }
 0xe8f   :  { %3413 = shalt.err (!%p3410_p0)
}
 0xe90   :  { %1815 = dma.vmem_to_hbm [thread:$0]  %s1810_s14, 2048, %s3862_s5, [#allocation7], %s3424_s7, %s3424_s7, %s3425_s8  }
 0xe91   :  { %3420 = dma.done.wait [#allocation7], 2048  }
 0xe92   :  { %3421 = vsyncadd [#allocation7], 4294965248 }
 0xe93   :  { %1819 = vsyncpa [#allocation6], 1 }
 0xe94   :  { %1820 = vsyncpa [#allocation9], 1 }
 0xe95   :  { %1821 = vsyncpa [#allocation7], 1 }

</bundles_post_ra>
